<compile_context>
chip_gen: v5e
topology: v5e:2x2
jax: 0.10.0
libtpu: 0.0.40
codegen_flags: <defaults>
</compile_context>

<pallas_src>
import functools

import numpy as np

import jax
import jax.numpy as jnp
from jax.experimental import pallas as pl
from jax.experimental.pallas import tpu as pltpu

BN_EPS = 1e-5


# ------------------------------ small helpers ------------------------------- #

def _act(y, act):
    if act == "relu6":
        return jnp.clip(y, 0.0, 6.0)
    if act == "relu":
        return jnp.maximum(y, 0.0)
    return y


def _bn_scale_bias(bn):
    scale = bn["gamma"] / jnp.sqrt(bn["var"] + BN_EPS)
    bias = bn["beta"] - bn["mean"] * scale
    return scale, bias


def _conv_out(h, stride):
    # 3x3 kernel, pad=1
    return (h + 2 - 3) // stride + 1


def _tap_masks(h, w):
    """(9, h*w, 1) f32 validity masks for a 3x3 / pad=1 / stride=1 conv.

    mask[k, oh*w+ow] == 1  iff input pixel (oh+di-1, ow+dj-1) with k = 3*di+dj lies
    inside the image.  The shifted-slice trick can read neighbouring-row data for
    out-of-image taps; the mask zeroes those contributions.
    """
    m = np.zeros((9, h * w, 1), np.float32)
    for di in range(3):
        for dj in range(3):
            k = di * 3 + dj
            for oh in range(h):
                ih = oh + di - 1
                if not (0 <= ih < h):
                    continue
                for ow in range(w):
                    iw = ow + dj - 1
                    if 0 <= iw < w:
                        m[k, oh * w + ow, 0] = 1.0
    return jnp.asarray(m)


def _subsample_mat(h_in, w_in, h_out, w_out):
    """(h_out*w_out, h_in*w_in) 0/1 matrix picking input pixel (2*oh, 2*ow)."""
    s = np.zeros((h_out * w_out, h_in * w_in), np.float32)
    for oh in range(h_out):
        for ow in range(w_out):
            s[oh * w_out + ow, (2 * oh) * w_in + 2 * ow] = 1.0
    return jnp.asarray(s).astype(jnp.bfloat16)


def _stem_im2col(x_nhwc, h1, w1):
    """Tap-stacked im2col of the network input for the 3x3/stride-2 stem conv.

    Returns (N, h1*w1, 9*Cin); column order = (di, dj, cin) row-major, matching the
    (3,3,Cin,Cout) -> (9*Cin, Cout) weight reshape.
    """
    n = x_nhwc.shape[0]
    c = x_nhwc.shape[-1]
    xp = jnp.pad(x_nhwc, ((0, 0), (1, 1), (1, 1), (0, 0)))
    taps = [xp[:, di:di + 2 * h1:2, dj:dj + 2 * w1:2, :]
            for di in range(3) for dj in range(3)]
    return jnp.concatenate(taps, axis=-1).reshape(n, h1 * w1, 9 * c)


# ------------------------------ forward wrapper ------------------------------ #

def pose_resnet_forward(params, x_nchw, heads):
    head_names = list(heads.keys())
    N, Cin, H, W = x_nchw.shape
    x_nhwc = jnp.transpose(x_nchw, (0, 2, 3, 1)).astype(jnp.float32)

    H1, W1 = _conv_out(H, 2), _conv_out(W, 2)
    H2, W2 = _conv_out(H1, 2), _conv_out(W1, 2)
    M1, M2 = H1 * W1, H2 * W2

    # Stem im2col is built on the kernel INPUT in the wrapper -> one K=27 matmul in-kernel.
    xim = _stem_im2col(x_nhwc, H1, W1)                     # (N, M1, 27)

    # Tiny per-tap validity masks and the stride-2 subsample selector (trace-time consts).
    masks1 = _tap_masks(H1, W1)                            # (9, M1, 1)
    masks2 = _tap_masks(H2, W2)                            # (9, M2, 1)
    ssub = _subsample_mat(H1, W1, H2, W2)                  # (M2, M1) bf16 0/1

    # ---- fold BN scale into conv weights (MXU weights -> bf16, keep f32 biases) ----
    def fold_pw(w, bn):                        # (Cin, Cout) -> bf16
        s, b = _bn_scale_bias(bn)
        return (w * s[None, :]).astype(jnp.bfloat16), b.reshape(1, -1)

    def fold_dw(w, bn):                        # (3, 3, C) -> (9, 1, C) f32 (VPU path)
        s, b = _bn_scale_bias(bn)
        c = w.shape[-1]
        return (w.reshape(9, c) * s[None, :]).reshape(9, 1, c), b.reshape(1, -1)

    def fold_stem(w, bn):                      # (3, 3, Cin, Cout) HWIO -> (9*Cin, Cout)
        s, b = _bn_scale_bias(bn)
        ci, co = w.shape[2], w.shape[3]
        return ((w * s[None, None, None, :]).reshape(9 * ci, co).astype(jnp.bfloat16),
                b.reshape(1, -1))

    ws, bs = fold_stem(params["stem"]["w"], params["stem"]["bn"])
    p = params["b1"]
    wd1, bd1 = fold_dw(p["dw_w"], p["dw_bn"]); wp1, bp1 = fold_pw(p["pw_w"], p["pw_bn"])
    p = params["b2"]
    we2, be2 = fold_pw(p["e_w"], p["e_bn"])
    wd2, bd2 = fold_dw(p["dw_w"], p["dw_bn"]); wp2, bp2 = fold_pw(p["p_w"], p["p_bn"])
    p = params["b3"]
    we3, be3 = fold_pw(p["e_w"], p["e_bn"])
    wd3, bd3 = fold_dw(p["dw_w"], p["dw_bn"]); wp3, bp3 = fold_pw(p["p_w"], p["p_bn"])

    # ---- fuse both heads: concat 3x3 convs (one K=9*24 matmul), block-diagonal 1x1
    #      padded to 128 output lanes so the final store is lane-dense ----
    c2 = params["heads"][head_names[0]]["w1"].shape[-2]
    hc = params["heads"][head_names[0]]["w1"].shape[-1]
    n_outs = [heads[h] for h in head_names]
    total_out = sum(n_outs)
    out_pad = ((total_out + 127) // 128) * 128

    wh1 = jnp.concatenate(
        [params["heads"][h]["w1"].reshape(9 * c2, hc) for h in head_names],
        axis=-1).astype(jnp.bfloat16)                       # (9*24, n_heads*hc)
    bh1 = jnp.concatenate(
        [params["heads"][h]["b1"] for h in head_names]).reshape(1, -1)
    wh2 = jnp.zeros((len(head_names) * hc, out_pad), jnp.float32)
    bh2 = jnp.zeros((out_pad,), jnp.float32)
    off = 0
    for i, hname in enumerate(head_names):
        wh2 = wh2.at[i * hc:(i + 1) * hc, off:off + n_outs[i]].set(
            params["heads"][hname]["w2"])
        bh2 = bh2.at[off:off + n_outs[i]].set(params["heads"][hname]["b2"])
        off += n_outs[i]
    wh2 = wh2.astype(jnp.bfloat16)
    bh2 = bh2.reshape(1, -1)

    # --------------------------- the fused kernel -------------------------------- #
    def kernel(xim_ref, ws_ref, bs_ref, m1_ref, wd1_ref, bd1_ref, wp1_ref, bp1_ref,
               we2_ref, be2_ref, wd2_ref, bd2_ref, ss_ref, wp2_ref, bp2_ref,
               we3_ref, be3_ref, m2_ref, wd3_ref, bd3_ref, wp3_ref, bp3_ref,
               wh1_ref, bh1_ref, wh2_ref, bh2_ref, o_ref):
        bf16, f32 = jnp.bfloat16, jnp.float32

        def bdot(a, w):                        # bf16 MXU matmul, f32 accumulation
            return jnp.dot(a.astype(bf16), w, preferred_element_type=f32)

        def relu6(v):
            return jnp.clip(v, 0.0, 6.0)

        def taps3x3(x, w_sp, masks):
            """9 copies of x:(H*W, C) shifted by (di-1, dj-1), zero outside the image."""
            m, c = x.shape
            pad = w_sp + 1                      # covers the largest flat shift (+-(W+1))
            z = jnp.zeros((pad, c), x.dtype)
            xp = jnp.concatenate([z, x, z], axis=0)
            out = []
            for di in range(3):
                for dj in range(3):
                    off_k = (di - 1) * w_sp + (dj - 1)
                    t = xp[pad + off_k: pad + off_k + m, :]     # static sublane shift
                    out.append(t * masks[di * 3 + dj])
            return out

        def dw3x3(x, w_sp, masks, wdw, bias):  # depthwise 3x3 (stride 1) + bias + ReLU6
            t = taps3x3(x, w_sp, masks)
            acc = t[0] * wdw[0]
            for k in range(1, 9):
                acc = acc + t[k] * wdw[k]      # pure VPU FMAs, no MXU
            return relu6(acc + bias)

        m1 = m1_ref[...]                       # (9, M1, 1)
        m2 = m2_ref[...]                       # (9, M2, 1)

        # stem: 3x3/s2 conv (+folded BN) + ReLU6 as ONE K=27 matmul on wrapper im2col
        x1 = relu6(bdot(xim_ref[0], ws_ref[...]) + bs_ref[...])       # (M1, 32)

        # block 1 (t=1): dw3x3 s1 + ReLU6 -> pw 1x1 (no act)
        h = dw3x3(x1, W1, m1, wd1_ref[...], bd1_ref[...])
        x2 = bdot(h, wp1_ref[...]) + bp1_ref[...]                      # (M1, 16)

        # block 2 (t=6, s=2): expand -> dw3x3 (stride-1 then subsample) -> project
        h = relu6(bdot(x2, we2_ref[...]) + be2_ref[...])               # (M1, 96)
        h = dw3x3(h, W1, m1, wd2_ref[...], bd2_ref[...])               # (M1, 96)
        h = jnp.dot(ss_ref[...], h.astype(bf16),
                    preferred_element_type=f32)                        # (M2, 96)
        x3 = bdot(h, wp2_ref[...]) + bp2_ref[...]                      # (M2, 24)

        # block 3 (t=6, s=1): expand -> dw3x3 -> project + identity residual
        h = relu6(bdot(x3, we3_ref[...]) + be3_ref[...])               # (M2, 144)
        h = dw3x3(h, W2, m2, wd3_ref[...], bd3_ref[...])               # (M2, 144)
        x4 = x3 + bdot(h, wp3_ref[...]) + bp3_ref[...]                 # (M2, 24)

        # fused heads: tap-stacked im2col (M2, 9*24) -> ONE matmul (K=216) -> ReLU
        #              -> block-diag 1x1 padded to 128 lanes (lane-dense store)
        col = jnp.concatenate(taps3x3(x4, W2, m2), axis=-1)            # (M2, 216)
        hh = jnp.maximum(bdot(col, wh1_ref[...]) + bh1_ref[...], 0.0)  # (M2, n_heads*hc)
        out = bdot(hh, wh2_ref[...]) + bh2_ref[...]                    # (M2, out_pad)
        o_ref[0] = out.astype(o_ref.dtype)

    args = [xim, ws, bs, masks1, wd1, bd1, wp1, bp1,
            we2, be2, wd2, bd2, ssub, wp2, bp2,
            we3, be3, masks2, wd3, bd3, wp3, bp3,
            wh1, bh1, wh2, bh2]

    in_specs = [pl.BlockSpec((1, M1, 9 * Cin), lambda n: (n, 0, 0))]
    for a in args[1:]:
        # constants: whole-array blocks, same block for every grid step
        in_specs.append(pl.BlockSpec(a.shape, lambda n, nd=a.ndim: (0,) * nd))

    out = pl.pallas_call(
        kernel,
        grid=(N,),
        in_specs=in_specs,
        out_specs=pl.BlockSpec((1, M2, out_pad), lambda n: (n, 0, 0)),
        out_shape=jax.ShapeDtypeStruct((N, M2, out_pad), jnp.float32),
        compiler_params=pltpu.CompilerParams(
            dimension_semantics=("parallel",),
            # budgeted for v7x's 64 MiB/TC; actual residency here is well under 1 MiB
            vmem_limit_bytes=48 * 1024 * 1024),
    )(*args)

    out = out[..., :total_out].reshape(N, H2, W2, total_out)
    ret = {}
    off = 0
    for i, hname in enumerate(head_names):
        ret[hname] = jnp.transpose(out[..., off:off + n_outs[i]], (0, 3, 1, 2))  # NCHW
        off += n_outs[i]
    return [ret]


# ------------------------------ parameters ---------------------------------- #

def _make_divisible(v, divisor, min_value=None):
    if min_value is None:
        min_value = divisor
    new_v = max(min_value, int(v + divisor / 2) // divisor * divisor)
    if new_v < 0.9 * v:
        new_v += divisor
    return new_v


def init_params(key, heads, head_conv):
    it = iter(jax.random.split(key, 64))

    def conv_w(kh, kw, cin, cout):
        fan = kh * kw * cin
        return jax.random.normal(next(it), (kh, kw, cin, cout), jnp.float32) / jnp.sqrt(fan)

    def pw_w(cin, cout):
        return jax.random.normal(next(it), (cin, cout), jnp.float32) / jnp.sqrt(cin)

    def dw_w(c):
        return jax.random.normal(next(it), (3, 3, c), jnp.float32) / 3.0

    def bn(c):
        return dict(
            gamma=1.0 + 0.1 * jax.random.normal(next(it), (c,), jnp.float32),
            beta=0.05 * jax.random.normal(next(it), (c,), jnp.float32),
            mean=0.05 * jax.random.normal(next(it), (c,), jnp.float32),
            var=jnp.abs(1.0 + 0.1 * jax.random.normal(next(it), (c,), jnp.float32)),
        )

    c_stem = _make_divisible(32 * 1.0, 8)   # 32
    c1 = _make_divisible(16 * 1.0, 8)       # 16  (cfg [1, 16, 1, 1])
    c2 = _make_divisible(24 * 1.0, 8)       # 24  (cfg [6, 24, 2, 2])
    h2 = round(c1 * 6)                      # 96
    h3 = round(c2 * 6)                      # 144

    params = {
        "stem": dict(w=conv_w(3, 3, 3, c_stem), bn=bn(c_stem)),
        "b1": dict(dw_w=dw_w(c_stem), dw_bn=bn(c_stem),
                   pw_w=pw_w(c_stem, c1), pw_bn=bn(c1)),
        "b2": dict(e_w=pw_w(c1, h2), e_bn=bn(h2),
                   dw_w=dw_w(h2), dw_bn=bn(h2),
                   p_w=pw_w(h2, c2), p_bn=bn(c2)),
        "b3": dict(e_w=pw_w(c2, h3), e_bn=bn(h3),
                   dw_w=dw_w(h3), dw_bn=bn(h3),
                   p_w=pw_w(h3, c2), p_bn=bn(c2)),
        "heads": {},
    }
    for head in sorted(heads):
        n_out = heads[head]
        params["heads"][head] = dict(
            w1=conv_w(3, 3, c2, head_conv),
            b1=0.05 * jax.random.normal(next(it), (head_conv,), jnp.float32),
            w2=pw_w(head_conv, n_out),
            b2=0.05 * jax.random.normal(next(it), (n_out,), jnp.float32),
        )
    return params


# ----------------------- pure-JAX reference (lax.conv) ----------------------- #

def _ref_forward(params, x_nchw, heads):
    x = jnp.transpose(x_nchw, (0, 2, 3, 1)).astype(jnp.float32)

    def conv(x, w, stride, pad, groups=1):
        return jax.lax.conv_general_dilated(
            x, w, (stride, stride), ((pad, pad), (pad, pad)),
            dimension_numbers=("NHWC", "HWIO", "NHWC"),
            feature_group_count=groups)

    def bn_act(x, bnp, act):
        s, b = _bn_scale_bias(bnp)
        return _act(x * s + b, act)

    x = bn_act(conv(x, params["stem"]["w"], 2, 1), params["stem"]["bn"], "relu6")

    p = params["b1"]
    c = p["dw_w"].shape[-1]
    h = bn_act(conv(x, p["dw_w"].reshape(3, 3, 1, c), 1, 1, groups=c), p["dw_bn"], "relu6")
    x = bn_act(conv(h, p["pw_w"].reshape(1, 1, *p["pw_w"].shape), 1, 0), p["pw_bn"], "none")

    p = params["b2"]
    h = bn_act(conv(x, p["e_w"].reshape(1, 1, *p["e_w"].shape), 1, 0), p["e_bn"], "relu6")
    c = p["dw_w"].shape[-1]
    h = bn_act(conv(h, p["dw_w"].reshape(3, 3, 1, c), 2, 1, groups=c), p["dw_bn"], "relu6")
    x = bn_act(conv(h, p["p_w"].reshape(1, 1, *p["p_w"].shape), 1, 0), p["p_bn"], "none")

    p = params["b3"]
    h = bn_act(conv(x, p["e_w"].reshape(1, 1, *p["e_w"].shape), 1, 0), p["e_bn"], "relu6")
    c = p["dw_w"].shape[-1]
    h = bn_act(conv(h, p["dw_w"].reshape(3, 3, 1, c), 1, 1, groups=c), p["dw_bn"], "relu6")
    x = x + bn_act(conv(h, p["p_w"].reshape(1, 1, *p["p_w"].shape), 1, 0), p["p_bn"], "none")

    ret = {}
    for head in heads:
        hp = params["heads"][head]
        y = jnp.maximum(conv(x, hp["w1"], 1, 1) + hp["b1"], 0.0)
        y = conv(y, hp["w2"].reshape(1, 1, *hp["w2"].shape), 1, 0) + hp["b2"]
        ret[head] = jnp.transpose(y, (0, 3, 1, 2))
    return [ret]


# --------------------------------- main -------------------------------------- #

if __name__ == "__main__":
    heads = {"hm": 3, "wh": 2}
    head_conv = 32

    key = jax.random.PRNGKey(0)
    kx, kp = jax.random.split(key)
    x = jax.random.normal(kx, (2, 3, 16, 16), jnp.float32)   # NCHW, like PyTorch
    params = init_params(kp, heads, head_conv)

    fwd = jax.jit(functools.partial(pose_resnet_forward, heads=heads))
    outs = fwd(params, x)
    jax.block_until_ready(outs)

    ref = _ref_forward(params, x, heads)
    for head in heads:
        a = outs[0][head]
        b = ref[0][head]
        assert a.shape == b.shape == (2, heads[head], 4, 4), (a.shape, b.shape)
        # kernel uses bf16 MXU operands (f32 accumulate) vs the f32 lax.conv reference
        if not jnp.allclose(a, b, atol=5e-2, rtol=5e-2):
            max_err = float(jnp.max(jnp.abs(a - b)))
            raise AssertionError(f"mismatch in head {head}: max|diff|={max_err}")

    print("KERNEL_OK")
</pallas_src>

<mosaic_0001>
module attributes {stable_mosaic.version = 11 : i64} {
  func.func @kernel(%arg0: i32, %arg1: memref<1x64x27xf32, #tpu.memory_space<vmem>>, %arg2: memref<27x32xbf16, #tpu.memory_space<vmem>>, %arg3: memref<1x32xf32, #tpu.memory_space<vmem>>, %arg4: memref<9x64x1xf32, #tpu.memory_space<vmem>>, %arg5: memref<9x1x32xf32, #tpu.memory_space<vmem>>, %arg6: memref<1x32xf32, #tpu.memory_space<vmem>>, %arg7: memref<32x16xbf16, #tpu.memory_space<vmem>>, %arg8: memref<1x16xf32, #tpu.memory_space<vmem>>, %arg9: memref<16x96xbf16, #tpu.memory_space<vmem>>, %arg10: memref<1x96xf32, #tpu.memory_space<vmem>>, %arg11: memref<9x1x96xf32, #tpu.memory_space<vmem>>, %arg12: memref<1x96xf32, #tpu.memory_space<vmem>>, %arg13: memref<16x64xbf16, #tpu.memory_space<vmem>>, %arg14: memref<96x24xbf16, #tpu.memory_space<vmem>>, %arg15: memref<1x24xf32, #tpu.memory_space<vmem>>, %arg16: memref<24x144xbf16, #tpu.memory_space<vmem>>, %arg17: memref<1x144xf32, #tpu.memory_space<vmem>>, %arg18: memref<9x16x1xf32, #tpu.memory_space<vmem>>, %arg19: memref<9x1x144xf32, #tpu.memory_space<vmem>>, %arg20: memref<1x144xf32, #tpu.memory_space<vmem>>, %arg21: memref<144x24xbf16, #tpu.memory_space<vmem>>, %arg22: memref<1x24xf32, #tpu.memory_space<vmem>>, %arg23: memref<216x64xbf16, #tpu.memory_space<vmem>>, %arg24: memref<1x64xf32, #tpu.memory_space<vmem>>, %arg25: memref<64x128xbf16, #tpu.memory_space<vmem>>, %arg26: memref<1x128xf32, #tpu.memory_space<vmem>>, %arg27: memref<1x16x128xf32, #tpu.memory_space<vmem>>) attributes {dimension_semantics = [#tpu.dimension_semantics<parallel>], iteration_bounds = array<i64: 2>, scalar_prefetch = 0 : i64, scratch_operands = 0 : i64, tpu.core_type = #tpu.core_type<tc>, window_params = [{transform_indices = @transform_0, window_bounds = array<i64: 1, 64, 27>}, {pipeline_mode = #tpu.pipeline_mode<synchronous>, transform_indices = @transform_1, window_bounds = array<i64: 27, 32>}, {pipeline_mode = #tpu.pipeline_mode<synchronous>, transform_indices = @transform_2, window_bounds = array<i64: 1, 32>}, {pipeline_mode = #tpu.pipeline_mode<synchronous>, transform_indices = @transform_3, window_bounds = array<i64: 9, 64, 1>}, {pipeline_mode = #tpu.pipeline_mode<synchronous>, transform_indices = @transform_4, window_bounds = array<i64: 9, 1, 32>}, {pipeline_mode = #tpu.pipeline_mode<synchronous>, transform_indices = @transform_5, window_bounds = array<i64: 1, 32>}, {pipeline_mode = #tpu.pipeline_mode<synchronous>, transform_indices = @transform_6, window_bounds = array<i64: 32, 16>}, {pipeline_mode = #tpu.pipeline_mode<synchronous>, transform_indices = @transform_7, window_bounds = array<i64: 1, 16>}, {pipeline_mode = #tpu.pipeline_mode<synchronous>, transform_indices = @transform_8, window_bounds = array<i64: 16, 96>}, {pipeline_mode = #tpu.pipeline_mode<synchronous>, transform_indices = @transform_9, window_bounds = array<i64: 1, 96>}, {pipeline_mode = #tpu.pipeline_mode<synchronous>, transform_indices = @transform_10, window_bounds = array<i64: 9, 1, 96>}, {pipeline_mode = #tpu.pipeline_mode<synchronous>, transform_indices = @transform_11, window_bounds = array<i64: 1, 96>}, {pipeline_mode = #tpu.pipeline_mode<synchronous>, transform_indices = @transform_12, window_bounds = array<i64: 16, 64>}, {pipeline_mode = #tpu.pipeline_mode<synchronous>, transform_indices = @transform_13, window_bounds = array<i64: 96, 24>}, {pipeline_mode = #tpu.pipeline_mode<synchronous>, transform_indices = @transform_14, window_bounds = array<i64: 1, 24>}, {pipeline_mode = #tpu.pipeline_mode<synchronous>, transform_indices = @transform_15, window_bounds = array<i64: 24, 144>}, {pipeline_mode = #tpu.pipeline_mode<synchronous>, transform_indices = @transform_16, window_bounds = array<i64: 1, 144>}, {pipeline_mode = #tpu.pipeline_mode<synchronous>, transform_indices = @transform_17, window_bounds = array<i64: 9, 16, 1>}, {pipeline_mode = #tpu.pipeline_mode<synchronous>, transform_indices = @transform_18, window_bounds = array<i64: 9, 1, 144>}, {pipeline_mode = #tpu.pipeline_mode<synchronous>, transform_indices = @transform_19, window_bounds = array<i64: 1, 144>}, {pipeline_mode = #tpu.pipeline_mode<synchronous>, transform_indices = @transform_20, window_bounds = array<i64: 144, 24>}, {pipeline_mode = #tpu.pipeline_mode<synchronous>, transform_indices = @transform_21, window_bounds = array<i64: 1, 24>}, {pipeline_mode = #tpu.pipeline_mode<synchronous>, transform_indices = @transform_22, window_bounds = array<i64: 216, 64>}, {pipeline_mode = #tpu.pipeline_mode<synchronous>, transform_indices = @transform_23, window_bounds = array<i64: 1, 64>}, {pipeline_mode = #tpu.pipeline_mode<synchronous>, transform_indices = @transform_24, window_bounds = array<i64: 64, 128>}, {pipeline_mode = #tpu.pipeline_mode<synchronous>, transform_indices = @transform_25, window_bounds = array<i64: 1, 128>}, {transform_indices = @transform_26, window_bounds = array<i64: 1, 16, 128>}]} {
    %c0 = arith.constant 0 : index
    %c0_0 = arith.constant 0 : index
    %c0_1 = arith.constant 0 : index
    %0 = vector.load %arg4[%c0, %c0_0, %c0_1] : memref<9x64x1xf32, #tpu.memory_space<vmem>>, vector<9x64x1xf32>
    %c0_2 = arith.constant 0 : index
    %c0_3 = arith.constant 0 : index
    %c0_4 = arith.constant 0 : index
    %1 = vector.load %arg18[%c0_2, %c0_3, %c0_4] : memref<9x16x1xf32, #tpu.memory_space<vmem>>, vector<9x16x1xf32>
    %c0_5 = arith.constant 0 : index
    %c0_6 = arith.constant 0 : index
    %c0_7 = arith.constant 0 : index
    %2 = vector.load %arg1[%c0_5, %c0_6, %c0_7] : memref<1x64x27xf32, #tpu.memory_space<vmem>>, vector<1x64x27xf32>
    %3 = vector.shape_cast %2 : vector<1x64x27xf32> to vector<64x27xf32>
    %c0_8 = arith.constant 0 : index
    %c0_9 = arith.constant 0 : index
    %4 = vector.load %arg2[%c0_8, %c0_9] : memref<27x32xbf16, #tpu.memory_space<vmem>>, vector<27x32xbf16>
    %5 = arith.truncf %3 : vector<64x27xf32> to vector<64x27xbf16>
    %cst = arith.constant dense<0.000000e+00> : vector<64x32xf32>
    %6 = tpu.matmul %5, %4, %cst {dimension_numbers = #tpu.dot_dimension_numbers<[1], [0], [0], [1], [0, 0, 1, 1], [], []>} : vector<64x27xbf16>, vector<27x32xbf16>, vector<64x32xf32> -> vector<64x32xf32>
    %c0_10 = arith.constant 0 : index
    %c0_11 = arith.constant 0 : index
    %7 = vector.load %arg3[%c0_10, %c0_11] : memref<1x32xf32, #tpu.memory_space<vmem>>, vector<1x32xf32>
    %8 = vector.broadcast %7 : vector<1x32xf32> to vector<64x32xf32>
    %9 = arith.addf %6, %8 : vector<64x32xf32>
    %cst_12 = arith.constant 0.000000e+00 : f32
    %cst_13 = arith.constant 6.000000e+00 : f32
    %10 = vector.broadcast %cst_12 : f32 to vector<64x32xf32>
    %11 = arith.maximumf %10, %9 : vector<64x32xf32>
    %12 = vector.broadcast %cst_13 : f32 to vector<64x32xf32>
    %13 = arith.minimumf %12, %11 : vector<64x32xf32>
    %c0_14 = arith.constant 0 : index
    %c0_15 = arith.constant 0 : index
    %c0_16 = arith.constant 0 : index
    %14 = vector.load %arg5[%c0_14, %c0_15, %c0_16] : memref<9x1x32xf32, #tpu.memory_space<vmem>>, vector<9x1x32xf32>
    %c0_17 = arith.constant 0 : index
    %c0_18 = arith.constant 0 : index
    %15 = vector.load %arg6[%c0_17, %c0_18] : memref<1x32xf32, #tpu.memory_space<vmem>>, vector<1x32xf32>
    %cst_19 = arith.constant 0.000000e+00 : f32
    %16 = vector.broadcast %cst_19 : f32 to vector<9x32xf32>
    %17 = tpu.concatenate %16, %13, %16 in 0 : vector<9x32xf32>, vector<64x32xf32>, vector<9x32xf32> -> vector<82x32xf32>
    %18 = vector.extract_strided_slice %17 {offsets = [0, 0], sizes = [64, 32], strides = [1, 1]} : vector<82x32xf32> to vector<64x32xf32>
    %19 = vector.extract_strided_slice %0 {offsets = [0, 0, 0], sizes = [1, 64, 1], strides = [1, 1, 1]} : vector<9x64x1xf32> to vector<1x64x1xf32>
    %20 = vector.shape_cast %19 : vector<1x64x1xf32> to vector<64x1xf32>
    %21 = vector.broadcast %20 : vector<64x1xf32> to vector<64x32xf32>
    %22 = arith.mulf %18, %21 : vector<64x32xf32>
    %23 = vector.extract_strided_slice %17 {offsets = [1, 0], sizes = [64, 32], strides = [1, 1]} : vector<82x32xf32> to vector<64x32xf32>
    %24 = vector.extract_strided_slice %0 {offsets = [1, 0, 0], sizes = [1, 64, 1], strides = [1, 1, 1]} : vector<9x64x1xf32> to vector<1x64x1xf32>
    %25 = vector.shape_cast %24 : vector<1x64x1xf32> to vector<64x1xf32>
    %26 = vector.broadcast %25 : vector<64x1xf32> to vector<64x32xf32>
    %27 = arith.mulf %23, %26 : vector<64x32xf32>
    %28 = vector.extract_strided_slice %17 {offsets = [2, 0], sizes = [64, 32], strides = [1, 1]} : vector<82x32xf32> to vector<64x32xf32>
    %29 = vector.extract_strided_slice %0 {offsets = [2, 0, 0], sizes = [1, 64, 1], strides = [1, 1, 1]} : vector<9x64x1xf32> to vector<1x64x1xf32>
    %30 = vector.shape_cast %29 : vector<1x64x1xf32> to vector<64x1xf32>
    %31 = vector.broadcast %30 : vector<64x1xf32> to vector<64x32xf32>
    %32 = arith.mulf %28, %31 : vector<64x32xf32>
    %33 = vector.extract_strided_slice %17 {offsets = [8, 0], sizes = [64, 32], strides = [1, 1]} : vector<82x32xf32> to vector<64x32xf32>
    %34 = vector.extract_strided_slice %0 {offsets = [3, 0, 0], sizes = [1, 64, 1], strides = [1, 1, 1]} : vector<9x64x1xf32> to vector<1x64x1xf32>
    %35 = vector.shape_cast %34 : vector<1x64x1xf32> to vector<64x1xf32>
    %36 = vector.broadcast %35 : vector<64x1xf32> to vector<64x32xf32>
    %37 = arith.mulf %33, %36 : vector<64x32xf32>
    %38 = vector.extract_strided_slice %17 {offsets = [9, 0], sizes = [64, 32], strides = [1, 1]} : vector<82x32xf32> to vector<64x32xf32>
    %39 = vector.extract_strided_slice %0 {offsets = [4, 0, 0], sizes = [1, 64, 1], strides = [1, 1, 1]} : vector<9x64x1xf32> to vector<1x64x1xf32>
    %40 = vector.shape_cast %39 : vector<1x64x1xf32> to vector<64x1xf32>
    %41 = vector.broadcast %40 : vector<64x1xf32> to vector<64x32xf32>
    %42 = arith.mulf %38, %41 : vector<64x32xf32>
    %43 = vector.extract_strided_slice %17 {offsets = [10, 0], sizes = [64, 32], strides = [1, 1]} : vector<82x32xf32> to vector<64x32xf32>
    %44 = vector.extract_strided_slice %0 {offsets = [5, 0, 0], sizes = [1, 64, 1], strides = [1, 1, 1]} : vector<9x64x1xf32> to vector<1x64x1xf32>
    %45 = vector.shape_cast %44 : vector<1x64x1xf32> to vector<64x1xf32>
    %46 = vector.broadcast %45 : vector<64x1xf32> to vector<64x32xf32>
    %47 = arith.mulf %43, %46 : vector<64x32xf32>
    %48 = vector.extract_strided_slice %17 {offsets = [16, 0], sizes = [64, 32], strides = [1, 1]} : vector<82x32xf32> to vector<64x32xf32>
    %49 = vector.extract_strided_slice %0 {offsets = [6, 0, 0], sizes = [1, 64, 1], strides = [1, 1, 1]} : vector<9x64x1xf32> to vector<1x64x1xf32>
    %50 = vector.shape_cast %49 : vector<1x64x1xf32> to vector<64x1xf32>
    %51 = vector.broadcast %50 : vector<64x1xf32> to vector<64x32xf32>
    %52 = arith.mulf %48, %51 : vector<64x32xf32>
    %53 = vector.extract_strided_slice %17 {offsets = [17, 0], sizes = [64, 32], strides = [1, 1]} : vector<82x32xf32> to vector<64x32xf32>
    %54 = vector.extract_strided_slice %0 {offsets = [7, 0, 0], sizes = [1, 64, 1], strides = [1, 1, 1]} : vector<9x64x1xf32> to vector<1x64x1xf32>
    %55 = vector.shape_cast %54 : vector<1x64x1xf32> to vector<64x1xf32>
    %56 = vector.broadcast %55 : vector<64x1xf32> to vector<64x32xf32>
    %57 = arith.mulf %53, %56 : vector<64x32xf32>
    %58 = vector.extract_strided_slice %17 {offsets = [18, 0], sizes = [64, 32], strides = [1, 1]} : vector<82x32xf32> to vector<64x32xf32>
    %59 = vector.extract_strided_slice %0 {offsets = [8, 0, 0], sizes = [1, 64, 1], strides = [1, 1, 1]} : vector<9x64x1xf32> to vector<1x64x1xf32>
    %60 = vector.shape_cast %59 : vector<1x64x1xf32> to vector<64x1xf32>
    %61 = vector.broadcast %60 : vector<64x1xf32> to vector<64x32xf32>
    %62 = arith.mulf %58, %61 : vector<64x32xf32>
    %63 = vector.extract_strided_slice %14 {offsets = [0, 0, 0], sizes = [1, 1, 32], strides = [1, 1, 1]} : vector<9x1x32xf32> to vector<1x1x32xf32>
    %64 = vector.shape_cast %63 : vector<1x1x32xf32> to vector<1x32xf32>
    %65 = vector.broadcast %64 : vector<1x32xf32> to vector<64x32xf32>
    %66 = arith.mulf %22, %65 : vector<64x32xf32>
    %67 = vector.extract_strided_slice %14 {offsets = [1, 0, 0], sizes = [1, 1, 32], strides = [1, 1, 1]} : vector<9x1x32xf32> to vector<1x1x32xf32>
    %68 = vector.shape_cast %67 : vector<1x1x32xf32> to vector<1x32xf32>
    %69 = vector.broadcast %68 : vector<1x32xf32> to vector<64x32xf32>
    %70 = arith.mulf %27, %69 : vector<64x32xf32>
    %71 = arith.addf %66, %70 : vector<64x32xf32>
    %72 = vector.extract_strided_slice %14 {offsets = [2, 0, 0], sizes = [1, 1, 32], strides = [1, 1, 1]} : vector<9x1x32xf32> to vector<1x1x32xf32>
    %73 = vector.shape_cast %72 : vector<1x1x32xf32> to vector<1x32xf32>
    %74 = vector.broadcast %73 : vector<1x32xf32> to vector<64x32xf32>
    %75 = arith.mulf %32, %74 : vector<64x32xf32>
    %76 = arith.addf %71, %75 : vector<64x32xf32>
    %77 = vector.extract_strided_slice %14 {offsets = [3, 0, 0], sizes = [1, 1, 32], strides = [1, 1, 1]} : vector<9x1x32xf32> to vector<1x1x32xf32>
    %78 = vector.shape_cast %77 : vector<1x1x32xf32> to vector<1x32xf32>
    %79 = vector.broadcast %78 : vector<1x32xf32> to vector<64x32xf32>
    %80 = arith.mulf %37, %79 : vector<64x32xf32>
    %81 = arith.addf %76, %80 : vector<64x32xf32>
    %82 = vector.extract_strided_slice %14 {offsets = [4, 0, 0], sizes = [1, 1, 32], strides = [1, 1, 1]} : vector<9x1x32xf32> to vector<1x1x32xf32>
    %83 = vector.shape_cast %82 : vector<1x1x32xf32> to vector<1x32xf32>
    %84 = vector.broadcast %83 : vector<1x32xf32> to vector<64x32xf32>
    %85 = arith.mulf %42, %84 : vector<64x32xf32>
    %86 = arith.addf %81, %85 : vector<64x32xf32>
    %87 = vector.extract_strided_slice %14 {offsets = [5, 0, 0], sizes = [1, 1, 32], strides = [1, 1, 1]} : vector<9x1x32xf32> to vector<1x1x32xf32>
    %88 = vector.shape_cast %87 : vector<1x1x32xf32> to vector<1x32xf32>
    %89 = vector.broadcast %88 : vector<1x32xf32> to vector<64x32xf32>
    %90 = arith.mulf %47, %89 : vector<64x32xf32>
    %91 = arith.addf %86, %90 : vector<64x32xf32>
    %92 = vector.extract_strided_slice %14 {offsets = [6, 0, 0], sizes = [1, 1, 32], strides = [1, 1, 1]} : vector<9x1x32xf32> to vector<1x1x32xf32>
    %93 = vector.shape_cast %92 : vector<1x1x32xf32> to vector<1x32xf32>
    %94 = vector.broadcast %93 : vector<1x32xf32> to vector<64x32xf32>
    %95 = arith.mulf %52, %94 : vector<64x32xf32>
    %96 = arith.addf %91, %95 : vector<64x32xf32>
    %97 = vector.extract_strided_slice %14 {offsets = [7, 0, 0], sizes = [1, 1, 32], strides = [1, 1, 1]} : vector<9x1x32xf32> to vector<1x1x32xf32>
    %98 = vector.shape_cast %97 : vector<1x1x32xf32> to vector<1x32xf32>
    %99 = vector.broadcast %98 : vector<1x32xf32> to vector<64x32xf32>
    %100 = arith.mulf %57, %99 : vector<64x32xf32>
    %101 = arith.addf %96, %100 : vector<64x32xf32>
    %102 = vector.extract_strided_slice %14 {offsets = [8, 0, 0], sizes = [1, 1, 32], strides = [1, 1, 1]} : vector<9x1x32xf32> to vector<1x1x32xf32>
    %103 = vector.shape_cast %102 : vector<1x1x32xf32> to vector<1x32xf32>
    %104 = vector.broadcast %103 : vector<1x32xf32> to vector<64x32xf32>
    %105 = arith.mulf %62, %104 : vector<64x32xf32>
    %106 = arith.addf %101, %105 : vector<64x32xf32>
    %107 = vector.broadcast %15 : vector<1x32xf32> to vector<64x32xf32>
    %108 = arith.addf %106, %107 : vector<64x32xf32>
    %cst_20 = arith.constant 0.000000e+00 : f32
    %cst_21 = arith.constant 6.000000e+00 : f32
    %109 = vector.broadcast %cst_20 : f32 to vector<64x32xf32>
    %110 = arith.maximumf %109, %108 : vector<64x32xf32>
    %111 = vector.broadcast %cst_21 : f32 to vector<64x32xf32>
    %112 = arith.minimumf %111, %110 : vector<64x32xf32>
    %c0_22 = arith.constant 0 : index
    %c0_23 = arith.constant 0 : index
    %113 = vector.load %arg7[%c0_22, %c0_23] : memref<32x16xbf16, #tpu.memory_space<vmem>>, vector<32x16xbf16>
    %114 = arith.truncf %112 : vector<64x32xf32> to vector<64x32xbf16>
    %cst_24 = arith.constant dense<0.000000e+00> : vector<64x16xf32>
    %115 = tpu.matmul %114, %113, %cst_24 {dimension_numbers = #tpu.dot_dimension_numbers<[1], [0], [0], [1], [0, 0, 1, 1], [], []>} : vector<64x32xbf16>, vector<32x16xbf16>, vector<64x16xf32> -> vector<64x16xf32>
    %c0_25 = arith.constant 0 : index
    %c0_26 = arith.constant 0 : index
    %116 = vector.load %arg8[%c0_25, %c0_26] : memref<1x16xf32, #tpu.memory_space<vmem>>, vector<1x16xf32>
    %117 = vector.broadcast %116 : vector<1x16xf32> to vector<64x16xf32>
    %118 = arith.addf %115, %117 : vector<64x16xf32>
    %c0_27 = arith.constant 0 : index
    %c0_28 = arith.constant 0 : index
    %119 = vector.load %arg9[%c0_27, %c0_28] : memref<16x96xbf16, #tpu.memory_space<vmem>>, vector<16x96xbf16>
    %120 = arith.truncf %118 : vector<64x16xf32> to vector<64x16xbf16>
    %cst_29 = arith.constant dense<0.000000e+00> : vector<64x96xf32>
    %121 = tpu.matmul %120, %119, %cst_29 {dimension_numbers = #tpu.dot_dimension_numbers<[1], [0], [0], [1], [0, 0, 1, 1], [], []>} : vector<64x16xbf16>, vector<16x96xbf16>, vector<64x96xf32> -> vector<64x96xf32>
    %c0_30 = arith.constant 0 : index
    %c0_31 = arith.constant 0 : index
    %122 = vector.load %arg10[%c0_30, %c0_31] : memref<1x96xf32, #tpu.memory_space<vmem>>, vector<1x96xf32>
    %123 = vector.broadcast %122 : vector<1x96xf32> to vector<64x96xf32>
    %124 = arith.addf %121, %123 : vector<64x96xf32>
    %cst_32 = arith.constant 0.000000e+00 : f32
    %cst_33 = arith.constant 6.000000e+00 : f32
    %125 = vector.broadcast %cst_32 : f32 to vector<64x96xf32>
    %126 = arith.maximumf %125, %124 : vector<64x96xf32>
    %127 = vector.broadcast %cst_33 : f32 to vector<64x96xf32>
    %128 = arith.minimumf %127, %126 : vector<64x96xf32>
    %c0_34 = arith.constant 0 : index
    %c0_35 = arith.constant 0 : index
    %c0_36 = arith.constant 0 : index
    %129 = vector.load %arg11[%c0_34, %c0_35, %c0_36] : memref<9x1x96xf32, #tpu.memory_space<vmem>>, vector<9x1x96xf32>
    %c0_37 = arith.constant 0 : index
    %c0_38 = arith.constant 0 : index
    %130 = vector.load %arg12[%c0_37, %c0_38] : memref<1x96xf32, #tpu.memory_space<vmem>>, vector<1x96xf32>
    %cst_39 = arith.constant 0.000000e+00 : f32
    %131 = vector.broadcast %cst_39 : f32 to vector<9x96xf32>
    %132 = tpu.concatenate %131, %128, %131 in 0 : vector<9x96xf32>, vector<64x96xf32>, vector<9x96xf32> -> vector<82x96xf32>
    %133 = vector.extract_strided_slice %132 {offsets = [0, 0], sizes = [64, 96], strides = [1, 1]} : vector<82x96xf32> to vector<64x96xf32>
    %134 = vector.extract_strided_slice %0 {offsets = [0, 0, 0], sizes = [1, 64, 1], strides = [1, 1, 1]} : vector<9x64x1xf32> to vector<1x64x1xf32>
    %135 = vector.shape_cast %134 : vector<1x64x1xf32> to vector<64x1xf32>
    %136 = vector.broadcast %135 : vector<64x1xf32> to vector<64x96xf32>
    %137 = arith.mulf %133, %136 : vector<64x96xf32>
    %138 = vector.extract_strided_slice %132 {offsets = [1, 0], sizes = [64, 96], strides = [1, 1]} : vector<82x96xf32> to vector<64x96xf32>
    %139 = vector.extract_strided_slice %0 {offsets = [1, 0, 0], sizes = [1, 64, 1], strides = [1, 1, 1]} : vector<9x64x1xf32> to vector<1x64x1xf32>
    %140 = vector.shape_cast %139 : vector<1x64x1xf32> to vector<64x1xf32>
    %141 = vector.broadcast %140 : vector<64x1xf32> to vector<64x96xf32>
    %142 = arith.mulf %138, %141 : vector<64x96xf32>
    %143 = vector.extract_strided_slice %132 {offsets = [2, 0], sizes = [64, 96], strides = [1, 1]} : vector<82x96xf32> to vector<64x96xf32>
    %144 = vector.extract_strided_slice %0 {offsets = [2, 0, 0], sizes = [1, 64, 1], strides = [1, 1, 1]} : vector<9x64x1xf32> to vector<1x64x1xf32>
    %145 = vector.shape_cast %144 : vector<1x64x1xf32> to vector<64x1xf32>
    %146 = vector.broadcast %145 : vector<64x1xf32> to vector<64x96xf32>
    %147 = arith.mulf %143, %146 : vector<64x96xf32>
    %148 = vector.extract_strided_slice %132 {offsets = [8, 0], sizes = [64, 96], strides = [1, 1]} : vector<82x96xf32> to vector<64x96xf32>
    %149 = vector.extract_strided_slice %0 {offsets = [3, 0, 0], sizes = [1, 64, 1], strides = [1, 1, 1]} : vector<9x64x1xf32> to vector<1x64x1xf32>
    %150 = vector.shape_cast %149 : vector<1x64x1xf32> to vector<64x1xf32>
    %151 = vector.broadcast %150 : vector<64x1xf32> to vector<64x96xf32>
    %152 = arith.mulf %148, %151 : vector<64x96xf32>
    %153 = vector.extract_strided_slice %132 {offsets = [9, 0], sizes = [64, 96], strides = [1, 1]} : vector<82x96xf32> to vector<64x96xf32>
    %154 = vector.extract_strided_slice %0 {offsets = [4, 0, 0], sizes = [1, 64, 1], strides = [1, 1, 1]} : vector<9x64x1xf32> to vector<1x64x1xf32>
    %155 = vector.shape_cast %154 : vector<1x64x1xf32> to vector<64x1xf32>
    %156 = vector.broadcast %155 : vector<64x1xf32> to vector<64x96xf32>
    %157 = arith.mulf %153, %156 : vector<64x96xf32>
    %158 = vector.extract_strided_slice %132 {offsets = [10, 0], sizes = [64, 96], strides = [1, 1]} : vector<82x96xf32> to vector<64x96xf32>
    %159 = vector.extract_strided_slice %0 {offsets = [5, 0, 0], sizes = [1, 64, 1], strides = [1, 1, 1]} : vector<9x64x1xf32> to vector<1x64x1xf32>
    %160 = vector.shape_cast %159 : vector<1x64x1xf32> to vector<64x1xf32>
    %161 = vector.broadcast %160 : vector<64x1xf32> to vector<64x96xf32>
    %162 = arith.mulf %158, %161 : vector<64x96xf32>
    %163 = vector.extract_strided_slice %132 {offsets = [16, 0], sizes = [64, 96], strides = [1, 1]} : vector<82x96xf32> to vector<64x96xf32>
    %164 = vector.extract_strided_slice %0 {offsets = [6, 0, 0], sizes = [1, 64, 1], strides = [1, 1, 1]} : vector<9x64x1xf32> to vector<1x64x1xf32>
    %165 = vector.shape_cast %164 : vector<1x64x1xf32> to vector<64x1xf32>
    %166 = vector.broadcast %165 : vector<64x1xf32> to vector<64x96xf32>
    %167 = arith.mulf %163, %166 : vector<64x96xf32>
    %168 = vector.extract_strided_slice %132 {offsets = [17, 0], sizes = [64, 96], strides = [1, 1]} : vector<82x96xf32> to vector<64x96xf32>
    %169 = vector.extract_strided_slice %0 {offsets = [7, 0, 0], sizes = [1, 64, 1], strides = [1, 1, 1]} : vector<9x64x1xf32> to vector<1x64x1xf32>
    %170 = vector.shape_cast %169 : vector<1x64x1xf32> to vector<64x1xf32>
    %171 = vector.broadcast %170 : vector<64x1xf32> to vector<64x96xf32>
    %172 = arith.mulf %168, %171 : vector<64x96xf32>
    %173 = vector.extract_strided_slice %132 {offsets = [18, 0], sizes = [64, 96], strides = [1, 1]} : vector<82x96xf32> to vector<64x96xf32>
    %174 = vector.extract_strided_slice %0 {offsets = [8, 0, 0], sizes = [1, 64, 1], strides = [1, 1, 1]} : vector<9x64x1xf32> to vector<1x64x1xf32>
    %175 = vector.shape_cast %174 : vector<1x64x1xf32> to vector<64x1xf32>
    %176 = vector.broadcast %175 : vector<64x1xf32> to vector<64x96xf32>
    %177 = arith.mulf %173, %176 : vector<64x96xf32>
    %178 = vector.extract_strided_slice %129 {offsets = [0, 0, 0], sizes = [1, 1, 96], strides = [1, 1, 1]} : vector<9x1x96xf32> to vector<1x1x96xf32>
    %179 = vector.shape_cast %178 : vector<1x1x96xf32> to vector<1x96xf32>
    %180 = vector.broadcast %179 : vector<1x96xf32> to vector<64x96xf32>
    %181 = arith.mulf %137, %180 : vector<64x96xf32>
    %182 = vector.extract_strided_slice %129 {offsets = [1, 0, 0], sizes = [1, 1, 96], strides = [1, 1, 1]} : vector<9x1x96xf32> to vector<1x1x96xf32>
    %183 = vector.shape_cast %182 : vector<1x1x96xf32> to vector<1x96xf32>
    %184 = vector.broadcast %183 : vector<1x96xf32> to vector<64x96xf32>
    %185 = arith.mulf %142, %184 : vector<64x96xf32>
    %186 = arith.addf %181, %185 : vector<64x96xf32>
    %187 = vector.extract_strided_slice %129 {offsets = [2, 0, 0], sizes = [1, 1, 96], strides = [1, 1, 1]} : vector<9x1x96xf32> to vector<1x1x96xf32>
    %188 = vector.shape_cast %187 : vector<1x1x96xf32> to vector<1x96xf32>
    %189 = vector.broadcast %188 : vector<1x96xf32> to vector<64x96xf32>
    %190 = arith.mulf %147, %189 : vector<64x96xf32>
    %191 = arith.addf %186, %190 : vector<64x96xf32>
    %192 = vector.extract_strided_slice %129 {offsets = [3, 0, 0], sizes = [1, 1, 96], strides = [1, 1, 1]} : vector<9x1x96xf32> to vector<1x1x96xf32>
    %193 = vector.shape_cast %192 : vector<1x1x96xf32> to vector<1x96xf32>
    %194 = vector.broadcast %193 : vector<1x96xf32> to vector<64x96xf32>
    %195 = arith.mulf %152, %194 : vector<64x96xf32>
    %196 = arith.addf %191, %195 : vector<64x96xf32>
    %197 = vector.extract_strided_slice %129 {offsets = [4, 0, 0], sizes = [1, 1, 96], strides = [1, 1, 1]} : vector<9x1x96xf32> to vector<1x1x96xf32>
    %198 = vector.shape_cast %197 : vector<1x1x96xf32> to vector<1x96xf32>
    %199 = vector.broadcast %198 : vector<1x96xf32> to vector<64x96xf32>
    %200 = arith.mulf %157, %199 : vector<64x96xf32>
    %201 = arith.addf %196, %200 : vector<64x96xf32>
    %202 = vector.extract_strided_slice %129 {offsets = [5, 0, 0], sizes = [1, 1, 96], strides = [1, 1, 1]} : vector<9x1x96xf32> to vector<1x1x96xf32>
    %203 = vector.shape_cast %202 : vector<1x1x96xf32> to vector<1x96xf32>
    %204 = vector.broadcast %203 : vector<1x96xf32> to vector<64x96xf32>
    %205 = arith.mulf %162, %204 : vector<64x96xf32>
    %206 = arith.addf %201, %205 : vector<64x96xf32>
    %207 = vector.extract_strided_slice %129 {offsets = [6, 0, 0], sizes = [1, 1, 96], strides = [1, 1, 1]} : vector<9x1x96xf32> to vector<1x1x96xf32>
    %208 = vector.shape_cast %207 : vector<1x1x96xf32> to vector<1x96xf32>
    %209 = vector.broadcast %208 : vector<1x96xf32> to vector<64x96xf32>
    %210 = arith.mulf %167, %209 : vector<64x96xf32>
    %211 = arith.addf %206, %210 : vector<64x96xf32>
    %212 = vector.extract_strided_slice %129 {offsets = [7, 0, 0], sizes = [1, 1, 96], strides = [1, 1, 1]} : vector<9x1x96xf32> to vector<1x1x96xf32>
    %213 = vector.shape_cast %212 : vector<1x1x96xf32> to vector<1x96xf32>
    %214 = vector.broadcast %213 : vector<1x96xf32> to vector<64x96xf32>
    %215 = arith.mulf %172, %214 : vector<64x96xf32>
    %216 = arith.addf %211, %215 : vector<64x96xf32>
    %217 = vector.extract_strided_slice %129 {offsets = [8, 0, 0], sizes = [1, 1, 96], strides = [1, 1, 1]} : vector<9x1x96xf32> to vector<1x1x96xf32>
    %218 = vector.shape_cast %217 : vector<1x1x96xf32> to vector<1x96xf32>
    %219 = vector.broadcast %218 : vector<1x96xf32> to vector<64x96xf32>
    %220 = arith.mulf %177, %219 : vector<64x96xf32>
    %221 = arith.addf %216, %220 : vector<64x96xf32>
    %222 = vector.broadcast %130 : vector<1x96xf32> to vector<64x96xf32>
    %223 = arith.addf %221, %222 : vector<64x96xf32>
    %cst_40 = arith.constant 0.000000e+00 : f32
    %cst_41 = arith.constant 6.000000e+00 : f32
    %224 = vector.broadcast %cst_40 : f32 to vector<64x96xf32>
    %225 = arith.maximumf %224, %223 : vector<64x96xf32>
    %226 = vector.broadcast %cst_41 : f32 to vector<64x96xf32>
    %227 = arith.minimumf %226, %225 : vector<64x96xf32>
    %c0_42 = arith.constant 0 : index
    %c0_43 = arith.constant 0 : index
    %228 = vector.load %arg13[%c0_42, %c0_43] : memref<16x64xbf16, #tpu.memory_space<vmem>>, vector<16x64xbf16>
    %229 = arith.truncf %227 : vector<64x96xf32> to vector<64x96xbf16>
    %cst_44 = arith.constant dense<0.000000e+00> : vector<16x96xf32>
    %230 = tpu.matmul %228, %229, %cst_44 {dimension_numbers = #tpu.dot_dimension_numbers<[1], [0], [0], [1], [0, 0, 1, 1], [], []>} : vector<16x64xbf16>, vector<64x96xbf16>, vector<16x96xf32> -> vector<16x96xf32>
    %c0_45 = arith.constant 0 : index
    %c0_46 = arith.constant 0 : index
    %231 = vector.load %arg14[%c0_45, %c0_46] : memref<96x24xbf16, #tpu.memory_space<vmem>>, vector<96x24xbf16>
    %232 = arith.truncf %230 : vector<16x96xf32> to vector<16x96xbf16>
    %cst_47 = arith.constant dense<0.000000e+00> : vector<16x24xf32>
    %233 = tpu.matmul %232, %231, %cst_47 {dimension_numbers = #tpu.dot_dimension_numbers<[1], [0], [0], [1], [0, 0, 1, 1], [], []>} : vector<16x96xbf16>, vector<96x24xbf16>, vector<16x24xf32> -> vector<16x24xf32>
    %c0_48 = arith.constant 0 : index
    %c0_49 = arith.constant 0 : index
    %234 = vector.load %arg15[%c0_48, %c0_49] : memref<1x24xf32, #tpu.memory_space<vmem>>, vector<1x24xf32>
    %235 = vector.broadcast %234 : vector<1x24xf32> to vector<16x24xf32>
    %236 = arith.addf %233, %235 : vector<16x24xf32>
    %c0_50 = arith.constant 0 : index
    %c0_51 = arith.constant 0 : index
    %237 = vector.load %arg16[%c0_50, %c0_51] : memref<24x144xbf16, #tpu.memory_space<vmem>>, vector<24x144xbf16>
    %238 = arith.truncf %236 : vector<16x24xf32> to vector<16x24xbf16>
    %cst_52 = arith.constant dense<0.000000e+00> : vector<16x144xf32>
    %239 = tpu.matmul %238, %237, %cst_52 {dimension_numbers = #tpu.dot_dimension_numbers<[1], [0], [0], [1], [0, 0, 1, 1], [], []>} : vector<16x24xbf16>, vector<24x144xbf16>, vector<16x144xf32> -> vector<16x144xf32>
    %c0_53 = arith.constant 0 : index
    %c0_54 = arith.constant 0 : index
    %240 = vector.load %arg17[%c0_53, %c0_54] : memref<1x144xf32, #tpu.memory_space<vmem>>, vector<1x144xf32>
    %241 = vector.broadcast %240 : vector<1x144xf32> to vector<16x144xf32>
    %242 = arith.addf %239, %241 : vector<16x144xf32>
    %cst_55 = arith.constant 0.000000e+00 : f32
    %cst_56 = arith.constant 6.000000e+00 : f32
    %243 = vector.broadcast %cst_55 : f32 to vector<16x144xf32>
    %244 = arith.maximumf %243, %242 : vector<16x144xf32>
    %245 = vector.broadcast %cst_56 : f32 to vector<16x144xf32>
    %246 = arith.minimumf %245, %244 : vector<16x144xf32>
    %c0_57 = arith.constant 0 : index
    %c0_58 = arith.constant 0 : index
    %c0_59 = arith.constant 0 : index
    %247 = vector.load %arg19[%c0_57, %c0_58, %c0_59] : memref<9x1x144xf32, #tpu.memory_space<vmem>>, vector<9x1x144xf32>
    %c0_60 = arith.constant 0 : index
    %c0_61 = arith.constant 0 : index
    %248 = vector.load %arg20[%c0_60, %c0_61] : memref<1x144xf32, #tpu.memory_space<vmem>>, vector<1x144xf32>
    %cst_62 = arith.constant 0.000000e+00 : f32
    %249 = vector.broadcast %cst_62 : f32 to vector<5x144xf32>
    %250 = tpu.concatenate %249, %246, %249 in 0 : vector<5x144xf32>, vector<16x144xf32>, vector<5x144xf32> -> vector<26x144xf32>
    %251 = vector.extract_strided_slice %250 {offsets = [0, 0], sizes = [16, 144], strides = [1, 1]} : vector<26x144xf32> to vector<16x144xf32>
    %252 = vector.extract_strided_slice %1 {offsets = [0, 0, 0], sizes = [1, 16, 1], strides = [1, 1, 1]} : vector<9x16x1xf32> to vector<1x16x1xf32>
    %253 = vector.shape_cast %252 : vector<1x16x1xf32> to vector<16x1xf32>
    %254 = vector.broadcast %253 : vector<16x1xf32> to vector<16x144xf32>
    %255 = arith.mulf %251, %254 : vector<16x144xf32>
    %256 = vector.extract_strided_slice %250 {offsets = [1, 0], sizes = [16, 144], strides = [1, 1]} : vector<26x144xf32> to vector<16x144xf32>
    %257 = vector.extract_strided_slice %1 {offsets = [1, 0, 0], sizes = [1, 16, 1], strides = [1, 1, 1]} : vector<9x16x1xf32> to vector<1x16x1xf32>
    %258 = vector.shape_cast %257 : vector<1x16x1xf32> to vector<16x1xf32>
    %259 = vector.broadcast %258 : vector<16x1xf32> to vector<16x144xf32>
    %260 = arith.mulf %256, %259 : vector<16x144xf32>
    %261 = vector.extract_strided_slice %250 {offsets = [2, 0], sizes = [16, 144], strides = [1, 1]} : vector<26x144xf32> to vector<16x144xf32>
    %262 = vector.extract_strided_slice %1 {offsets = [2, 0, 0], sizes = [1, 16, 1], strides = [1, 1, 1]} : vector<9x16x1xf32> to vector<1x16x1xf32>
    %263 = vector.shape_cast %262 : vector<1x16x1xf32> to vector<16x1xf32>
    %264 = vector.broadcast %263 : vector<16x1xf32> to vector<16x144xf32>
    %265 = arith.mulf %261, %264 : vector<16x144xf32>
    %266 = vector.extract_strided_slice %250 {offsets = [4, 0], sizes = [16, 144], strides = [1, 1]} : vector<26x144xf32> to vector<16x144xf32>
    %267 = vector.extract_strided_slice %1 {offsets = [3, 0, 0], sizes = [1, 16, 1], strides = [1, 1, 1]} : vector<9x16x1xf32> to vector<1x16x1xf32>
    %268 = vector.shape_cast %267 : vector<1x16x1xf32> to vector<16x1xf32>
    %269 = vector.broadcast %268 : vector<16x1xf32> to vector<16x144xf32>
    %270 = arith.mulf %266, %269 : vector<16x144xf32>
    %271 = vector.extract_strided_slice %250 {offsets = [5, 0], sizes = [16, 144], strides = [1, 1]} : vector<26x144xf32> to vector<16x144xf32>
    %272 = vector.extract_strided_slice %1 {offsets = [4, 0, 0], sizes = [1, 16, 1], strides = [1, 1, 1]} : vector<9x16x1xf32> to vector<1x16x1xf32>
    %273 = vector.shape_cast %272 : vector<1x16x1xf32> to vector<16x1xf32>
    %274 = vector.broadcast %273 : vector<16x1xf32> to vector<16x144xf32>
    %275 = arith.mulf %271, %274 : vector<16x144xf32>
    %276 = vector.extract_strided_slice %250 {offsets = [6, 0], sizes = [16, 144], strides = [1, 1]} : vector<26x144xf32> to vector<16x144xf32>
    %277 = vector.extract_strided_slice %1 {offsets = [5, 0, 0], sizes = [1, 16, 1], strides = [1, 1, 1]} : vector<9x16x1xf32> to vector<1x16x1xf32>
    %278 = vector.shape_cast %277 : vector<1x16x1xf32> to vector<16x1xf32>
    %279 = vector.broadcast %278 : vector<16x1xf32> to vector<16x144xf32>
    %280 = arith.mulf %276, %279 : vector<16x144xf32>
    %281 = vector.extract_strided_slice %250 {offsets = [8, 0], sizes = [16, 144], strides = [1, 1]} : vector<26x144xf32> to vector<16x144xf32>
    %282 = vector.extract_strided_slice %1 {offsets = [6, 0, 0], sizes = [1, 16, 1], strides = [1, 1, 1]} : vector<9x16x1xf32> to vector<1x16x1xf32>
    %283 = vector.shape_cast %282 : vector<1x16x1xf32> to vector<16x1xf32>
    %284 = vector.broadcast %283 : vector<16x1xf32> to vector<16x144xf32>
    %285 = arith.mulf %281, %284 : vector<16x144xf32>
    %286 = vector.extract_strided_slice %250 {offsets = [9, 0], sizes = [16, 144], strides = [1, 1]} : vector<26x144xf32> to vector<16x144xf32>
    %287 = vector.extract_strided_slice %1 {offsets = [7, 0, 0], sizes = [1, 16, 1], strides = [1, 1, 1]} : vector<9x16x1xf32> to vector<1x16x1xf32>
    %288 = vector.shape_cast %287 : vector<1x16x1xf32> to vector<16x1xf32>
    %289 = vector.broadcast %288 : vector<16x1xf32> to vector<16x144xf32>
    %290 = arith.mulf %286, %289 : vector<16x144xf32>
    %291 = vector.extract_strided_slice %250 {offsets = [10, 0], sizes = [16, 144], strides = [1, 1]} : vector<26x144xf32> to vector<16x144xf32>
    %292 = vector.extract_strided_slice %1 {offsets = [8, 0, 0], sizes = [1, 16, 1], strides = [1, 1, 1]} : vector<9x16x1xf32> to vector<1x16x1xf32>
    %293 = vector.shape_cast %292 : vector<1x16x1xf32> to vector<16x1xf32>
    %294 = vector.broadcast %293 : vector<16x1xf32> to vector<16x144xf32>
    %295 = arith.mulf %291, %294 : vector<16x144xf32>
    %296 = vector.extract_strided_slice %247 {offsets = [0, 0, 0], sizes = [1, 1, 144], strides = [1, 1, 1]} : vector<9x1x144xf32> to vector<1x1x144xf32>
    %297 = vector.shape_cast %296 : vector<1x1x144xf32> to vector<1x144xf32>
    %298 = vector.broadcast %297 : vector<1x144xf32> to vector<16x144xf32>
    %299 = arith.mulf %255, %298 : vector<16x144xf32>
    %300 = vector.extract_strided_slice %247 {offsets = [1, 0, 0], sizes = [1, 1, 144], strides = [1, 1, 1]} : vector<9x1x144xf32> to vector<1x1x144xf32>
    %301 = vector.shape_cast %300 : vector<1x1x144xf32> to vector<1x144xf32>
    %302 = vector.broadcast %301 : vector<1x144xf32> to vector<16x144xf32>
    %303 = arith.mulf %260, %302 : vector<16x144xf32>
    %304 = arith.addf %299, %303 : vector<16x144xf32>
    %305 = vector.extract_strided_slice %247 {offsets = [2, 0, 0], sizes = [1, 1, 144], strides = [1, 1, 1]} : vector<9x1x144xf32> to vector<1x1x144xf32>
    %306 = vector.shape_cast %305 : vector<1x1x144xf32> to vector<1x144xf32>
    %307 = vector.broadcast %306 : vector<1x144xf32> to vector<16x144xf32>
    %308 = arith.mulf %265, %307 : vector<16x144xf32>
    %309 = arith.addf %304, %308 : vector<16x144xf32>
    %310 = vector.extract_strided_slice %247 {offsets = [3, 0, 0], sizes = [1, 1, 144], strides = [1, 1, 1]} : vector<9x1x144xf32> to vector<1x1x144xf32>
    %311 = vector.shape_cast %310 : vector<1x1x144xf32> to vector<1x144xf32>
    %312 = vector.broadcast %311 : vector<1x144xf32> to vector<16x144xf32>
    %313 = arith.mulf %270, %312 : vector<16x144xf32>
    %314 = arith.addf %309, %313 : vector<16x144xf32>
    %315 = vector.extract_strided_slice %247 {offsets = [4, 0, 0], sizes = [1, 1, 144], strides = [1, 1, 1]} : vector<9x1x144xf32> to vector<1x1x144xf32>
    %316 = vector.shape_cast %315 : vector<1x1x144xf32> to vector<1x144xf32>
    %317 = vector.broadcast %316 : vector<1x144xf32> to vector<16x144xf32>
    %318 = arith.mulf %275, %317 : vector<16x144xf32>
    %319 = arith.addf %314, %318 : vector<16x144xf32>
    %320 = vector.extract_strided_slice %247 {offsets = [5, 0, 0], sizes = [1, 1, 144], strides = [1, 1, 1]} : vector<9x1x144xf32> to vector<1x1x144xf32>
    %321 = vector.shape_cast %320 : vector<1x1x144xf32> to vector<1x144xf32>
    %322 = vector.broadcast %321 : vector<1x144xf32> to vector<16x144xf32>
    %323 = arith.mulf %280, %322 : vector<16x144xf32>
    %324 = arith.addf %319, %323 : vector<16x144xf32>
    %325 = vector.extract_strided_slice %247 {offsets = [6, 0, 0], sizes = [1, 1, 144], strides = [1, 1, 1]} : vector<9x1x144xf32> to vector<1x1x144xf32>
    %326 = vector.shape_cast %325 : vector<1x1x144xf32> to vector<1x144xf32>
    %327 = vector.broadcast %326 : vector<1x144xf32> to vector<16x144xf32>
    %328 = arith.mulf %285, %327 : vector<16x144xf32>
    %329 = arith.addf %324, %328 : vector<16x144xf32>
    %330 = vector.extract_strided_slice %247 {offsets = [7, 0, 0], sizes = [1, 1, 144], strides = [1, 1, 1]} : vector<9x1x144xf32> to vector<1x1x144xf32>
    %331 = vector.shape_cast %330 : vector<1x1x144xf32> to vector<1x144xf32>
    %332 = vector.broadcast %331 : vector<1x144xf32> to vector<16x144xf32>
    %333 = arith.mulf %290, %332 : vector<16x144xf32>
    %334 = arith.addf %329, %333 : vector<16x144xf32>
    %335 = vector.extract_strided_slice %247 {offsets = [8, 0, 0], sizes = [1, 1, 144], strides = [1, 1, 1]} : vector<9x1x144xf32> to vector<1x1x144xf32>
    %336 = vector.shape_cast %335 : vector<1x1x144xf32> to vector<1x144xf32>
    %337 = vector.broadcast %336 : vector<1x144xf32> to vector<16x144xf32>
    %338 = arith.mulf %295, %337 : vector<16x144xf32>
    %339 = arith.addf %334, %338 : vector<16x144xf32>
    %340 = vector.broadcast %248 : vector<1x144xf32> to vector<16x144xf32>
    %341 = arith.addf %339, %340 : vector<16x144xf32>
    %cst_63 = arith.constant 0.000000e+00 : f32
    %cst_64 = arith.constant 6.000000e+00 : f32
    %342 = vector.broadcast %cst_63 : f32 to vector<16x144xf32>
    %343 = arith.maximumf %342, %341 : vector<16x144xf32>
    %344 = vector.broadcast %cst_64 : f32 to vector<16x144xf32>
    %345 = arith.minimumf %344, %343 : vector<16x144xf32>
    %c0_65 = arith.constant 0 : index
    %c0_66 = arith.constant 0 : index
    %346 = vector.load %arg21[%c0_65, %c0_66] : memref<144x24xbf16, #tpu.memory_space<vmem>>, vector<144x24xbf16>
    %347 = arith.truncf %345 : vector<16x144xf32> to vector<16x144xbf16>
    %cst_67 = arith.constant dense<0.000000e+00> : vector<16x24xf32>
    %348 = tpu.matmul %347, %346, %cst_67 {dimension_numbers = #tpu.dot_dimension_numbers<[1], [0], [0], [1], [0, 0, 1, 1], [], []>} : vector<16x144xbf16>, vector<144x24xbf16>, vector<16x24xf32> -> vector<16x24xf32>
    %349 = arith.addf %236, %348 : vector<16x24xf32>
    %c0_68 = arith.constant 0 : index
    %c0_69 = arith.constant 0 : index
    %350 = vector.load %arg22[%c0_68, %c0_69] : memref<1x24xf32, #tpu.memory_space<vmem>>, vector<1x24xf32>
    %351 = vector.broadcast %350 : vector<1x24xf32> to vector<16x24xf32>
    %352 = arith.addf %349, %351 : vector<16x24xf32>
    %cst_70 = arith.constant 0.000000e+00 : f32
    %353 = vector.broadcast %cst_70 : f32 to vector<5x24xf32>
    %354 = tpu.concatenate %353, %352, %353 in 0 : vector<5x24xf32>, vector<16x24xf32>, vector<5x24xf32> -> vector<26x24xf32>
    %355 = vector.extract_strided_slice %354 {offsets = [0, 0], sizes = [16, 24], strides = [1, 1]} : vector<26x24xf32> to vector<16x24xf32>
    %356 = vector.extract_strided_slice %1 {offsets = [0, 0, 0], sizes = [1, 16, 1], strides = [1, 1, 1]} : vector<9x16x1xf32> to vector<1x16x1xf32>
    %357 = vector.shape_cast %356 : vector<1x16x1xf32> to vector<16x1xf32>
    %358 = vector.broadcast %357 : vector<16x1xf32> to vector<16x24xf32>
    %359 = arith.mulf %355, %358 : vector<16x24xf32>
    %360 = vector.extract_strided_slice %354 {offsets = [1, 0], sizes = [16, 24], strides = [1, 1]} : vector<26x24xf32> to vector<16x24xf32>
    %361 = vector.extract_strided_slice %1 {offsets = [1, 0, 0], sizes = [1, 16, 1], strides = [1, 1, 1]} : vector<9x16x1xf32> to vector<1x16x1xf32>
    %362 = vector.shape_cast %361 : vector<1x16x1xf32> to vector<16x1xf32>
    %363 = vector.broadcast %362 : vector<16x1xf32> to vector<16x24xf32>
    %364 = arith.mulf %360, %363 : vector<16x24xf32>
    %365 = vector.extract_strided_slice %354 {offsets = [2, 0], sizes = [16, 24], strides = [1, 1]} : vector<26x24xf32> to vector<16x24xf32>
    %366 = vector.extract_strided_slice %1 {offsets = [2, 0, 0], sizes = [1, 16, 1], strides = [1, 1, 1]} : vector<9x16x1xf32> to vector<1x16x1xf32>
    %367 = vector.shape_cast %366 : vector<1x16x1xf32> to vector<16x1xf32>
    %368 = vector.broadcast %367 : vector<16x1xf32> to vector<16x24xf32>
    %369 = arith.mulf %365, %368 : vector<16x24xf32>
    %370 = vector.extract_strided_slice %354 {offsets = [4, 0], sizes = [16, 24], strides = [1, 1]} : vector<26x24xf32> to vector<16x24xf32>
    %371 = vector.extract_strided_slice %1 {offsets = [3, 0, 0], sizes = [1, 16, 1], strides = [1, 1, 1]} : vector<9x16x1xf32> to vector<1x16x1xf32>
    %372 = vector.shape_cast %371 : vector<1x16x1xf32> to vector<16x1xf32>
    %373 = vector.broadcast %372 : vector<16x1xf32> to vector<16x24xf32>
    %374 = arith.mulf %370, %373 : vector<16x24xf32>
    %375 = vector.extract_strided_slice %354 {offsets = [5, 0], sizes = [16, 24], strides = [1, 1]} : vector<26x24xf32> to vector<16x24xf32>
    %376 = vector.extract_strided_slice %1 {offsets = [4, 0, 0], sizes = [1, 16, 1], strides = [1, 1, 1]} : vector<9x16x1xf32> to vector<1x16x1xf32>
    %377 = vector.shape_cast %376 : vector<1x16x1xf32> to vector<16x1xf32>
    %378 = vector.broadcast %377 : vector<16x1xf32> to vector<16x24xf32>
    %379 = arith.mulf %375, %378 : vector<16x24xf32>
    %380 = vector.extract_strided_slice %354 {offsets = [6, 0], sizes = [16, 24], strides = [1, 1]} : vector<26x24xf32> to vector<16x24xf32>
    %381 = vector.extract_strided_slice %1 {offsets = [5, 0, 0], sizes = [1, 16, 1], strides = [1, 1, 1]} : vector<9x16x1xf32> to vector<1x16x1xf32>
    %382 = vector.shape_cast %381 : vector<1x16x1xf32> to vector<16x1xf32>
    %383 = vector.broadcast %382 : vector<16x1xf32> to vector<16x24xf32>
    %384 = arith.mulf %380, %383 : vector<16x24xf32>
    %385 = vector.extract_strided_slice %354 {offsets = [8, 0], sizes = [16, 24], strides = [1, 1]} : vector<26x24xf32> to vector<16x24xf32>
    %386 = vector.extract_strided_slice %1 {offsets = [6, 0, 0], sizes = [1, 16, 1], strides = [1, 1, 1]} : vector<9x16x1xf32> to vector<1x16x1xf32>
    %387 = vector.shape_cast %386 : vector<1x16x1xf32> to vector<16x1xf32>
    %388 = vector.broadcast %387 : vector<16x1xf32> to vector<16x24xf32>
    %389 = arith.mulf %385, %388 : vector<16x24xf32>
    %390 = vector.extract_strided_slice %354 {offsets = [9, 0], sizes = [16, 24], strides = [1, 1]} : vector<26x24xf32> to vector<16x24xf32>
    %391 = vector.extract_strided_slice %1 {offsets = [7, 0, 0], sizes = [1, 16, 1], strides = [1, 1, 1]} : vector<9x16x1xf32> to vector<1x16x1xf32>
    %392 = vector.shape_cast %391 : vector<1x16x1xf32> to vector<16x1xf32>
    %393 = vector.broadcast %392 : vector<16x1xf32> to vector<16x24xf32>
    %394 = arith.mulf %390, %393 : vector<16x24xf32>
    %395 = vector.extract_strided_slice %354 {offsets = [10, 0], sizes = [16, 24], strides = [1, 1]} : vector<26x24xf32> to vector<16x24xf32>
    %396 = vector.extract_strided_slice %1 {offsets = [8, 0, 0], sizes = [1, 16, 1], strides = [1, 1, 1]} : vector<9x16x1xf32> to vector<1x16x1xf32>
    %397 = vector.shape_cast %396 : vector<1x16x1xf32> to vector<16x1xf32>
    %398 = vector.broadcast %397 : vector<16x1xf32> to vector<16x24xf32>
    %399 = arith.mulf %395, %398 : vector<16x24xf32>
    %400 = tpu.concatenate %359, %364, %369, %374, %379, %384, %389, %394, %399 in 1 : vector<16x24xf32>, vector<16x24xf32>, vector<16x24xf32>, vector<16x24xf32>, vector<16x24xf32>, vector<16x24xf32>, vector<16x24xf32>, vector<16x24xf32>, vector<16x24xf32> -> vector<16x216xf32>
    %c0_71 = arith.constant 0 : index
    %c0_72 = arith.constant 0 : index
    %401 = vector.load %arg23[%c0_71, %c0_72] : memref<216x64xbf16, #tpu.memory_space<vmem>>, vector<216x64xbf16>
    %402 = arith.truncf %400 : vector<16x216xf32> to vector<16x216xbf16>
    %cst_73 = arith.constant dense<0.000000e+00> : vector<16x64xf32>
    %403 = tpu.matmul %402, %401, %cst_73 {dimension_numbers = #tpu.dot_dimension_numbers<[1], [0], [0], [1], [0, 0, 1, 1], [], []>} : vector<16x216xbf16>, vector<216x64xbf16>, vector<16x64xf32> -> vector<16x64xf32>
    %c0_74 = arith.constant 0 : index
    %c0_75 = arith.constant 0 : index
    %404 = vector.load %arg24[%c0_74, %c0_75] : memref<1x64xf32, #tpu.memory_space<vmem>>, vector<1x64xf32>
    %405 = vector.broadcast %404 : vector<1x64xf32> to vector<16x64xf32>
    %406 = arith.addf %403, %405 : vector<16x64xf32>
    %cst_76 = arith.constant 0.000000e+00 : f32
    %407 = vector.broadcast %cst_76 : f32 to vector<16x64xf32>
    %408 = arith.maximumf %406, %407 : vector<16x64xf32>
    %c0_77 = arith.constant 0 : index
    %c0_78 = arith.constant 0 : index
    %409 = vector.load %arg25[%c0_77, %c0_78] : memref<64x128xbf16, #tpu.memory_space<vmem>>, vector<64x128xbf16>
    %410 = arith.truncf %408 : vector<16x64xf32> to vector<16x64xbf16>
    %cst_79 = arith.constant dense<0.000000e+00> : vector<16x128xf32>
    %411 = tpu.matmul %410, %409, %cst_79 {dimension_numbers = #tpu.dot_dimension_numbers<[1], [0], [0], [1], [0, 0, 1, 1], [], []>} : vector<16x64xbf16>, vector<64x128xbf16>, vector<16x128xf32> -> vector<16x128xf32>
    %c0_80 = arith.constant 0 : index
    %c0_81 = arith.constant 0 : index
    %412 = vector.load %arg26[%c0_80, %c0_81] : memref<1x128xf32, #tpu.memory_space<vmem>>, vector<1x128xf32>
    %413 = vector.broadcast %412 : vector<1x128xf32> to vector<16x128xf32>
    %414 = arith.addf %411, %413 : vector<16x128xf32>
    %c0_82 = arith.constant 0 : index
    %c0_83 = arith.constant 0 : index
    %c0_84 = arith.constant 0 : index
    %415 = vector.load %arg27[%c0_82, %c0_83, %c0_84] : memref<1x16x128xf32, #tpu.memory_space<vmem>>, vector<1x16x128xf32>
    %416 = vector.shape_cast %415 : vector<1x16x128xf32> to vector<16x128xf32>
    %417 = vector.shape_cast %414 : vector<16x128xf32> to vector<1x16x128xf32>
    tpu.vector_store %arg27[%c0_82, %c0_83, %c0_84], %417 {strides = array<i32>} : memref<1x16x128xf32, #tpu.memory_space<vmem>>, vector<1x16x128xf32>,
    return
  }
  func.func @transform_0(%arg0: i32) -> (i32, i32, i32) {
    %c0_i32 = arith.constant 0 : i32
    %c0_i32_0 = arith.constant 0 : i32
    %c0_i32_1 = arith.constant 0 : i32
    return %arg0, %c0_i32, %c0_i32_0 : i32, i32, i32
  }
  func.func @transform_1(%arg0: i32) -> (i32, i32) {
    %c0_i32 = arith.constant 0 : i32
    %c0_i32_0 = arith.constant 0 : i32
    %c0_i32_1 = arith.constant 0 : i32
    return %c0_i32, %c0_i32_0 : i32, i32
  }
  func.func @transform_2(%arg0: i32) -> (i32, i32) {
    %c0_i32 = arith.constant 0 : i32
    %c0_i32_0 = arith.constant 0 : i32
    %c0_i32_1 = arith.constant 0 : i32
    return %c0_i32, %c0_i32_0 : i32, i32
  }
  func.func @transform_3(%arg0: i32) -> (i32, i32, i32) {
    %c0_i32 = arith.constant 0 : i32
    %c0_i32_0 = arith.constant 0 : i32
    %c0_i32_1 = arith.constant 0 : i32
    %c0_i32_2 = arith.constant 0 : i32
    return %c0_i32, %c0_i32_0, %c0_i32_1 : i32, i32, i32
  }
  func.func @transform_4(%arg0: i32) -> (i32, i32, i32) {
    %c0_i32 = arith.constant 0 : i32
    %c0_i32_0 = arith.constant 0 : i32
    %c0_i32_1 = arith.constant 0 : i32
    %c0_i32_2 = arith.constant 0 : i32
    return %c0_i32, %c0_i32_0, %c0_i32_1 : i32, i32, i32
  }
  func.func @transform_5(%arg0: i32) -> (i32, i32) {
    %c0_i32 = arith.constant 0 : i32
    %c0_i32_0 = arith.constant 0 : i32
    %c0_i32_1 = arith.constant 0 : i32
    return %c0_i32, %c0_i32_0 : i32, i32
  }
  func.func @transform_6(%arg0: i32) -> (i32, i32) {
    %c0_i32 = arith.constant 0 : i32
    %c0_i32_0 = arith.constant 0 : i32
    %c0_i32_1 = arith.constant 0 : i32
    return %c0_i32, %c0_i32_0 : i32, i32
  }
  func.func @transform_7(%arg0: i32) -> (i32, i32) {
    %c0_i32 = arith.constant 0 : i32
    %c0_i32_0 = arith.constant 0 : i32
    %c0_i32_1 = arith.constant 0 : i32
    return %c0_i32, %c0_i32_0 : i32, i32
  }
  func.func @transform_8(%arg0: i32) -> (i32, i32) {
    %c0_i32 = arith.constant 0 : i32
    %c0_i32_0 = arith.constant 0 : i32
    %c0_i32_1 = arith.constant 0 : i32
    return %c0_i32, %c0_i32_0 : i32, i32
  }
  func.func @transform_9(%arg0: i32) -> (i32, i32) {
    %c0_i32 = arith.constant 0 : i32
    %c0_i32_0 = arith.constant 0 : i32
    %c0_i32_1 = arith.constant 0 : i32
    return %c0_i32, %c0_i32_0 : i32, i32
  }
  func.func @transform_10(%arg0: i32) -> (i32, i32, i32) {
    %c0_i32 = arith.constant 0 : i32
    %c0_i32_0 = arith.constant 0 : i32
    %c0_i32_1 = arith.constant 0 : i32
    %c0_i32_2 = arith.constant 0 : i32
    return %c0_i32, %c0_i32_0, %c0_i32_1 : i32, i32, i32
  }
  func.func @transform_11(%arg0: i32) -> (i32, i32) {
    %c0_i32 = arith.constant 0 : i32
    %c0_i32_0 = arith.constant 0 : i32
    %c0_i32_1 = arith.constant 0 : i32
    return %c0_i32, %c0_i32_0 : i32, i32
  }
  func.func @transform_12(%arg0: i32) -> (i32, i32) {
    %c0_i32 = arith.constant 0 : i32
    %c0_i32_0 = arith.constant 0 : i32
    %c0_i32_1 = arith.constant 0 : i32
    return %c0_i32, %c0_i32_0 : i32, i32
  }
  func.func @transform_13(%arg0: i32) -> (i32, i32) {
    %c0_i32 = arith.constant 0 : i32
    %c0_i32_0 = arith.constant 0 : i32
    %c0_i32_1 = arith.constant 0 : i32
    return %c0_i32, %c0_i32_0 : i32, i32
  }
  func.func @transform_14(%arg0: i32) -> (i32, i32) {
    %c0_i32 = arith.constant 0 : i32
    %c0_i32_0 = arith.constant 0 : i32
    %c0_i32_1 = arith.constant 0 : i32
    return %c0_i32, %c0_i32_0 : i32, i32
  }
  func.func @transform_15(%arg0: i32) -> (i32, i32) {
    %c0_i32 = arith.constant 0 : i32
    %c0_i32_0 = arith.constant 0 : i32
    %c0_i32_1 = arith.constant 0 : i32
    return %c0_i32, %c0_i32_0 : i32, i32
  }
  func.func @transform_16(%arg0: i32) -> (i32, i32) {
    %c0_i32 = arith.constant 0 : i32
    %c0_i32_0 = arith.constant 0 : i32
    %c0_i32_1 = arith.constant 0 : i32
    return %c0_i32, %c0_i32_0 : i32, i32
  }
  func.func @transform_17(%arg0: i32) -> (i32, i32, i32) {
    %c0_i32 = arith.constant 0 : i32
    %c0_i32_0 = arith.constant 0 : i32
    %c0_i32_1 = arith.constant 0 : i32
    %c0_i32_2 = arith.constant 0 : i32
    return %c0_i32, %c0_i32_0, %c0_i32_1 : i32, i32, i32
  }
  func.func @transform_18(%arg0: i32) -> (i32, i32, i32) {
    %c0_i32 = arith.constant 0 : i32
    %c0_i32_0 = arith.constant 0 : i32
    %c0_i32_1 = arith.constant 0 : i32
    %c0_i32_2 = arith.constant 0 : i32
    return %c0_i32, %c0_i32_0, %c0_i32_1 : i32, i32, i32
  }
  func.func @transform_19(%arg0: i32) -> (i32, i32) {
    %c0_i32 = arith.constant 0 : i32
    %c0_i32_0 = arith.constant 0 : i32
    %c0_i32_1 = arith.constant 0 : i32
    return %c0_i32, %c0_i32_0 : i32, i32
  }
  func.func @transform_20(%arg0: i32) -> (i32, i32) {
    %c0_i32 = arith.constant 0 : i32
    %c0_i32_0 = arith.constant 0 : i32
    %c0_i32_1 = arith.constant 0 : i32
    return %c0_i32, %c0_i32_0 : i32, i32
  }
  func.func @transform_21(%arg0: i32) -> (i32, i32) {
    %c0_i32 = arith.constant 0 : i32
    %c0_i32_0 = arith.constant 0 : i32
    %c0_i32_1 = arith.constant 0 : i32
    return %c0_i32, %c0_i32_0 : i32, i32
  }
  func.func @transform_22(%arg0: i32) -> (i32, i32) {
    %c0_i32 = arith.constant 0 : i32
    %c0_i32_0 = arith.constant 0 : i32
    %c0_i32_1 = arith.constant 0 : i32
    return %c0_i32, %c0_i32_0 : i32, i32
  }
  func.func @transform_23(%arg0: i32) -> (i32, i32) {
    %c0_i32 = arith.constant 0 : i32
    %c0_i32_0 = arith.constant 0 : i32
    %c0_i32_1 = arith.constant 0 : i32
    return %c0_i32, %c0_i32_0 : i32, i32
  }
  func.func @transform_24(%arg0: i32) -> (i32, i32) {
    %c0_i32 = arith.constant 0 : i32
    %c0_i32_0 = arith.constant 0 : i32
    %c0_i32_1 = arith.constant 0 : i32
    return %c0_i32, %c0_i32_0 : i32, i32
  }
  func.func @transform_25(%arg0: i32) -> (i32, i32) {
    %c0_i32 = arith.constant 0 : i32
    %c0_i32_0 = arith.constant 0 : i32
    %c0_i32_1 = arith.constant 0 : i32
    return %c0_i32, %c0_i32_0 : i32, i32
  }
  func.func @transform_26(%arg0: i32) -> (i32, i32, i32) {
    %c0_i32 = arith.constant 0 : i32
    %c0_i32_0 = arith.constant 0 : i32
    %c0_i32_1 = arith.constant 0 : i32
    return %arg0, %c0_i32, %c0_i32_0 : i32, i32, i32
  }
}

</mosaic_0001>

<bundles_post_ra>
// kernel: pose_resnet_forward.1
= control target key start
LH: loop header
LB: loop body
LE: loop exit
PB: predicated region body
PF: predicated region fallthrough
CT: control target
= control target key end

     0   :  { %s4279_s27 = smov 0   ;;  %s6664_s0 = inlined_call_operand.vmem [shape: f32[2,64,27], index: 0, kind: input, shape index: {}]   ;;  %s6665_s1 = inlined_call_operand.vmem [shape: bf16[27,32], index: 1, kind: input, shape index: {}]   ;;  %s6666_s2 = inlined_call_operand.vmem [shape: f32[1,32], index: 2, kind: input, shape index: {}]   ;;  %s6667_s3 = inlined_call_operand.vmem [shape: f32[9,64,1], index: 3, kind: input, shape index: {}]   ;;  %s6668_s4 = inlined_call_operand.vmem [shape: f32[9,1,32], index: 4, kind: input, shape index: {}]   ;;  %s6669_s5 = inlined_call_operand.vmem [shape: f32[1,32], index: 5, kind: input, shape index: {}]   ;;  %s6670_s6 = inlined_call_operand.vmem [shape: bf16[32,16], index: 6, kind: input, shape index: {}]   ;;  %s6671_s7 = inlined_call_operand.vmem [shape: f32[1,16], index: 7, kind: input, shape index: {}]   ;;  %s6672_s8 = inlined_call_operand.vmem [shape: bf16[16,96], index: 8, kind: input, shape index: {}]   ;;  %s6673_s9 = inlined_call_operand.vmem [shape: f32[1,96], index: 9, kind: input, shape index: {}]   ;;  %s6674_s10 = inlined_call_operand.vmem [shape: f32[9,1,96], index: 10, kind: input, shape index: {}]   ;;  %s6675_s11 = inlined_call_operand.vmem [shape: f32[1,96], index: 11, kind: input, shape index: {}]   ;;  %s6676_s12 = inlined_call_operand.vmem [shape: bf16[16,64], index: 12, kind: input, shape index: {}]   ;;  %s6677_s13 = inlined_call_operand.vmem [shape: bf16[96,24], index: 13, kind: input, shape index: {}]   ;;  %s6678_s14 = inlined_call_operand.vmem [shape: f32[1,24], index: 14, kind: input, shape index: {}]   ;;  %s6679_s15 = inlined_call_operand.vmem [shape: bf16[24,144], index: 15, kind: input, shape index: {}]   ;;  %s6680_s16 = inlined_call_operand.vmem [shape: f32[1,144], index: 16, kind: input, shape index: {}]   ;;  %s6681_s17 = inlined_call_operand.vmem [shape: f32[9,16,1], index: 17, kind: input, shape index: {}]   ;;  %s6682_s18 = inlined_call_operand.vmem [shape: f32[9,1,144], index: 18, kind: input, shape index: {}]   ;;  %s6683_s19 = inlined_call_operand.vmem [shape: f32[1,144], index: 19, kind: input, shape index: {}]   ;;  %s6684_s20 = inlined_call_operand.vmem [shape: bf16[144,24], index: 20, kind: input, shape index: {}]   ;;  %s6685_s21 = inlined_call_operand.vmem [shape: f32[1,24], index: 21, kind: input, shape index: {}]   ;;  %s6686_s22 = inlined_call_operand.vmem [shape: bf16[216,64], index: 22, kind: input, shape index: {}]   ;;  %s6687_s23 = inlined_call_operand.vmem [shape: f32[1,64], index: 23, kind: input, shape index: {}]   ;;  %s6688_s24 = inlined_call_operand.vmem [shape: bf16[64,128], index: 24, kind: input, shape index: {}]   ;;  %s6689_s25 = inlined_call_operand.vmem [shape: f32[1,128], index: 25, kind: input, shape index: {}]   ;;  %s6690_s26 = inlined_call_operand.vmem [shape: f32[2,16,128], index: 26, kind: output, shape index: {}]  }
   0x1   :  { %6811 = sst [smem:[#allocation53_spill]] %s6664_s0 }
   0x2   :  { %6812 = sst [smem:[#allocation54_spill]] %s6665_s1 }
   0x3   :  { %6813 = sst [smem:[#allocation55_spill]] %s6666_s2 }
   0x4   :  { %6814 = sst [smem:[#allocation56_spill]] %s6667_s3 }
   0x5   :  { %6815 = sst [smem:[#allocation57_spill]] %s6668_s4 }
   0x6   :  { %6816 = sst [smem:[#allocation58_spill]] %s6669_s5 }
   0x7   :  { %6817 = sst [smem:[#allocation59_spill]] %s6670_s6 }
   0x8   :  { %6818 = sst [smem:[#allocation60_spill]] %s6671_s7 }
   0x9   :  { %6819 = sst [smem:[#allocation61_spill]] %s6672_s8 }
   0xa   :  { %6820 = sst [smem:[#allocation62_spill]] %s6673_s9 }
   0xb   :  { %6821 = sst [smem:[#allocation63_spill]] %s6674_s10 }
   0xc   :  { %6822 = sst [smem:[#allocation64_spill]] %s6690_s26 }
   0xd LB: > { %6823 = sst [smem:[#allocation2_spill]] %s4132_s27  ;;  %s3804_s3 = sadd.s32 4294967295, %s4132_s27   ;;  %s4132_s27 = sphi %s4279_s27, %s36_s27  }
   0xe   : > { %p3808_p0 = scmp.ge.s32.totalorder %s4132_s27, 1  ;;  %p712_p1 = scmp.lt.s32.totalorder %s4132_s27, 3 }
  0x10   : > { %p713_p2 = pnand %p3808_p0, %p712_p1 }
  0x12   : > { %716 = sbr.rel (%p713_p2) target bundleno = 1752 (0x6d8), region = 124 }
  0x17   : > { %s6824_s8 = sld [smem:[#allocation56_spill]]  ;;  %vm927_vm0 = vcmask 1044480   ;;  %vm928_vm1 = vcmask 1045504   ;;  %v4134_v3 = vmov 0   ;;  %v4135_v7 = vmov 65535   ;;  %p782_p3 = scmp.lt.s32.totalorder %s3804_s3, 1 }
  0x18   : > { %4056 = vset.pattern.permute.xlu2 %v4134_v3  ;;  %4055 = vset.pattern.permute.xlu1 %v4134_v3  ;;  %s6825_s5 = sld [smem:[#allocation54_spill]]  ;;  %v929_v8 = vsel %vm927_vm0, 4294967295, %v4135_v7  ;;  %vm914_vm2 = vcmask 220160   ;;  %vm997_vm3 = vcmask 1040384   ;;  %vm1169_vm4 = vcmask 1041408   ;;  %s4136_s1 = smov 72  }
  0x19   : > { %4054 = vset.pattern.permute.xlu0 %v4134_v3  ;;  %v930_v9 = vsel %vm928_vm1, %v929_v8, 0  ;;  %s7101_s3 = smov (!%p782_p3, %s3804_s3), 1  ;;  %s6826_s10 = sld [smem:[#allocation53_spill]]  ;;  %vm1591_vm5 = vcmask 1046528   ;;  %vm1984_vm6 = vcmask 261120   ;;  %vm2042_vm7 = vcmask 130048  }
  0x1a   : > { %s3994_s9 = sshll.u32 %s7101_s3, 6  ;;  %s6828_s28 = sld [smem:[#allocation55_spill]]  ;;  %vm2628_vm8 = vcmask 523264   ;;  %vm2746_vm9 = vcmask 1043456   ;;  %vm2699_vm10 = vcmask 785408   ;;  %vm2742_vm11 = vcmask 195584  }
  0x1b   : > { %s6837_s29 = sld [smem:[#allocation59_spill]]  ;;  %vm3116_vm12 = vcmask 1042432   ;;  %s4142_s4 = smov 64   ;;  %vm3524_vm13 = vcmask 392192   ;;  %vm3527_vm14 = vcmask 588800   ;;  %vm3532_vm15 = vcmask 982016  }
  0x1c   : > { %s6859_s26 = sld [smem:[#allocation58_spill]] }
  0x1d   : > { %v810_v0 = vld [vmem:[%s6824_s8 + $0x88] sm:$0xff]  ;;  %v803_v1 = vld [vmem:[%s6824_s8 + $0x50] sm:$0xff]  ;;  %v801_v2 = vld [vmem:[%s6824_s8 + $0x40] sm:$0xff]  ;;  %s6946_s7 = sld [smem:[#allocation61_spill]] }
  0x1e   : > { %v3819_v4 = vld [vmem:[%s6825_s5 + $0x8] sm:$0xf]  ;;  %v3997_v5 = vld [vmem:[%s6825_s5 + $0x8] sm:$0x30]  ;;  %1143 = vperm.xlu2 %4056, %v810_v0   ;;  %1082 = vperm.xlu1 %4055, %v803_v1   ;;  %v3996_v11 = vld [vmem:[%s6825_s5] sm:$0xff]  ;;  %s6949_s27 = sld [smem:[#allocation60_spill]] }
  0x1f   : > { %v3820_v6 = vor.u32 %v3997_v5, %v3819_v4  ;;  %1074 = vperm.xlu0 %4054, %v801_v2   ;;  %v811_v12 = vld [vmem:[%s6824_s8 + $0x90] sm:$0xff]  ;;  %v809_v13 = vld [vmem:[%s6824_s8 + $0x80] sm:$0xff]  ;;  %s4319_s6 = scalar_lea.vmem %s6826_s10, %s3994_s9  ;;  %v802_v14 = vld [vmem:[%s6824_s8 + $0x48] sm:$0xff]  ;;  %s6829_s9 = sld [smem:[#allocation57_spill]] }
  0x20   : > { %v883_v15 = vld [vmem:[%s4319_s6] sm:$0xff]  ;;  %v884_v16 = vld [vmem:[%s4319_s6 + $0x8] sm:$0xff]  ;;  %v885_v21 = vld [vmem:[%s4319_s6 + $0x10] sm:$0xff]  ;;  %s6950_s0 = sld [smem:[#allocation62_spill]] }
  0x21   : > { %v932_v10 = vand.u32 %v3820_v6, %v930_v9  ;;  %v895_v17 = vpack.c.bf16 %v884_v16, %v883_v15  ;;  %v825_v18 = vld [vmem:[%s6824_s8 + $0x100] sm:$0xff]  ;;  %v794_v19 = vld [vmem:[%s6824_s8 + $0x8] sm:$0xff]  ;;  %v886_v22 = vld [vmem:[%s4319_s6 + $0x18] sm:$0xff]  ;;  %s6951_s10 = sld [smem:[#allocation63_spill]] }
  0x22   : > { %v793_v20 = vld [vmem:[%s6824_s8] sm:$0xff]  ;;  %v827_v24 = vld [vmem:[%s6824_s8 + $0x110] sm:$0xff]  ;;  %v826_v25 = vld [vmem:[%s6824_s8 + $0x108] sm:$0xff]  ;;  %v896_v26 = vpack.c.bf16 %v886_v22, %v885_v21 }
  0x23   : > { %940 = vmatpush.bf16.msra.mxu0 %v932_v10  ;;  %v833_v23 = vld [vmem:[%s6824_s8 + $0x140] sm:$0xff]  ;;  %v835_v28 = vld [vmem:[%s6824_s8 + $0x150] sm:$0xff]  ;;  %v834_v29 = vld [vmem:[%s6824_s8 + $0x148] sm:$0xff] }
  0x24   : > { %v817_v27 = vld [vmem:[%s6824_s8 + $0xc0] sm:$0xff]  ;;  %v888_v31 = vld [vmem:[%s4319_s6 + $0x28] sm:$0xff]  ;;  %v851_v38 = vld [vmem:[%s6824_s8 + $0x1d0] sm:$0xff] }
  0x25   : > { %v887_v30 = vld [vmem:[%s4319_s6 + $0x20] sm:$0xff]  ;;  %v850_v32 = vld [vmem:[%s6824_s8 + $0x1c8] sm:$0xff]  ;;  %v804_v40 = vld [vmem:[%s6824_s8 + $0x58] sm:$0xff] }
  0x26   : > { %1147 = vperm.xlu2 %4056, %v811_v12   ;;  %1139 = vperm.xlu1 %4055, %v809_v13   ;;  %v849_v33 = vld [vmem:[%s6824_s8 + $0x1c0] sm:$0xff]  ;;  %v818_v34 = vld [vmem:[%s6824_s8 + $0xc8] sm:$0xff]  ;;  %v897_v35 = vpack.c.bf16 %v888_v31, %v887_v30  ;;  %v859_v41 = vld [vmem:[%s6824_s8 + $0x210] sm:$0xff] }
  0x27   : > { %941 = vmatpush.bf16.msra.mxu0 %v3996_v11  ;;  %1078 = vperm.xlu0 %4054, %v802_v14   ;;  %v858_v36 = vld [vmem:[%s6824_s8 + $0x208] sm:$0xff]  ;;  %v857_v37 = vld [vmem:[%s6824_s8 + $0x200] sm:$0xff]  ;;  %v812_v42 = vld [vmem:[%s6824_s8 + $0x98] sm:$0xff] }
  0x28   : > { %v805_v39 = vld [vmem:[%s6824_s8 + $0x60] sm:$0xff]  ;;  %v842_v43 = vld [vmem:[%s6824_s8 + $0x188] sm:$0xff]  ;;  %v796_v45 = vld [vmem:[%s6824_s8 + $0x18] sm:$0xff] }
  0x29   : > { %v841_v44 = vld [vmem:[%s6824_s8 + $0x180] sm:$0xff]  ;;  %v889_v46 = vld [vmem:[%s4319_s6 + $0x30] sm:$0xff]  ;;  %v890_v47 = vld [vmem:[%s4319_s6 + $0x38] sm:$0xff]  ;;  %s4139_s6 = smov 16  }
  0x2a   : > { %3821 = vmatmul.msk.bf16.vlgmr.msra.gmra.mxu0 %vm914_vm2, %v895_v17  ;;  %v795_v48 = vld [vmem:[%s6824_s8 + $0x10] sm:$0xff]  ;;  %v813_v49 = vld [vmem:[%s6824_s8 + $0xa0] sm:$0xff]  ;;  %v898_v50 = vpack.c.bf16 %v890_v47, %v889_v46  ;;  %v836_v51 = vld [vmem:[%s6824_s8 + $0x158] sm:$0xff] }
  0x2b   : > { %v829_v52 = vld [vmem:[%s6824_s8 + $0x120] sm:$0xff]  ;;  %v828_v53 = vld [vmem:[%s6824_s8 + $0x118] sm:$0xff]  ;;  %v819_v55 = vld [vmem:[%s6824_s8 + $0xd0] sm:$0xff] }
  0x2c   : > { %v820_v54 = vld [vmem:[%s6824_s8 + $0xd8] sm:$0xff]  ;;  %v837_v56 = vld [vmem:[%s6824_s8 + $0x160] sm:$0xff]  ;;  %v807_v62 = vld [vmem:[%s6824_s8 + $0x70] sm:$0xff] }
  0x2d   : > { %v860_v58 = vld [vmem:[%s6824_s8 + $0x218] sm:$0xff]  ;;  %v853_v59 = vld [vmem:[%s6824_s8 + $0x1e0] sm:$0xff]  ;;  %v806_v63 = vld [vmem:[%s6824_s8 + $0x68] sm:$0xff] }
  0x2e   : > { %1253 = vperm.xlu2 %4056, %v825_v18   ;;  %1031 = vperm.xlu1 %4055, %v794_v19   ;;  %v852_v60 = vld [vmem:[%s6824_s8 + $0x1d8] sm:$0xff]  ;;  %v861_v0 = vld [vmem:[%s6824_s8 + $0x220] sm:$0xff]  ;;  %v814_v2 = vld [vmem:[%s6824_s8 + $0xa8] sm:$0xff] }
  0x2f   : > { %1026 = vperm.xlu0 %4054, %v793_v20   ;;  %v844_v3 = vld [vmem:[%s6824_s8 + $0x198] sm:$0xff]  ;;  %v843_v4 = vld [vmem:[%s6824_s8 + $0x190] sm:$0xff]  ;;  %v798_v8 = vld [vmem:[%s6824_s8 + $0x28] sm:$0xff] }
  0x30   : > { %v797_v9 = vld [vmem:[%s6824_s8 + $0x20] sm:$0xff]  ;;  %v815_v10 = vld [vmem:[%s6824_s8 + $0xb0] sm:$0xff]  ;;  %v838_v14 = vld [vmem:[%s6824_s8 + $0x168] sm:$0xff] }
  0x31   : > { %v831_v15 = vld [vmem:[%s6824_s8 + $0x130] sm:$0xff]  ;;  %v830_v16 = vld [vmem:[%s6824_s8 + $0x128] sm:$0xff]  ;;  %v4494_v20 = vld [vmem:[%s6828_s28] ss:$0 sm:$0xff]  ;;  %s4141_s28 = smov 96  }
  0x32   : > { %v822_v21 = vld [vmem:[%s6824_s8 + $0xe8] sm:$0xff]  ;;  %v821_v22 = vld [vmem:[%s6824_s8 + $0xe0] sm:$0xff] }
  0x33   : > { %v862_v31 = vld [vmem:[%s6824_s8 + $0x228] sm:$0xff]  ;;  %v845_v47 = vld [vmem:[%s6824_s8 + $0x1a0] sm:$0xff] }
  0x36   : > { %1318 = vperm.xlu2 %4056, %v833_v23   ;;  %1261 = vperm.xlu1 %4055, %v827_v24   ;;  %v839_v23 = vld [vmem:[%s6824_s8 + $0x170] sm:$0xff] }
  0x37   : > { %1257 = vperm.xlu0 %4054, %v826_v25  }
  0x3a   : > { %3822 = vmatmul.msk.bf16.gmra.mxu0 %vm914_vm2, %v896_v26 }
  0x3e   : > { %1205 = vperm.xlu2 %4056, %v817_v27   ;;  %1326 = vperm.xlu1 %4055, %v835_v28  }
  0x3f   : > { %1322 = vperm.xlu0 %4054, %v834_v29  }
  0x46   : > { %1435 = vperm.xlu2 %4056, %v850_v32   ;;  %1431 = vperm.xlu1 %4055, %v849_v33   ;;  %v855_v32 = vld [vmem:[%s6824_s8 + $0x1f0] sm:$0xff]  ;;  %v854_v33 = vld [vmem:[%s6824_s8 + $0x1e8] sm:$0xff] }
  0x47   : > { %1210 = vperm.xlu0 %4054, %v818_v34  }
  0x4a   : > { %3823 = vmatmul.msk.bf16.gmra.mxu0 %vm914_vm2, %v897_v35 }
  0x4e   : > { %1500 = vperm.xlu2 %4056, %v858_v36   ;;  %1496 = vperm.xlu1 %4055, %v857_v37  }
  0x4f   : > { %1439 = vperm.xlu0 %4054, %v851_v38  }
  0x56   : > { %1090 = vperm.xlu2 %4056, %v805_v39   ;;  %1086 = vperm.xlu1 %4055, %v804_v40  }
  0x57   : > { %1504 = vperm.xlu0 %4054, %v859_v41  }
  0x5a   : > { %3824 = vmatmul.msk.bf16.gmra.mxu0 %vm914_vm2, %v898_v50  ;;  %v808_v50 = vld [vmem:[%s6824_s8 + $0x78] sm:$0xff] }
  0x5e   : > { %1151 = vperm.xlu2 %4056, %v812_v42   ;;  %1388 = vperm.xlu1 %4055, %v842_v43  }
  0x5f   : > { %1383 = vperm.xlu0 %4054, %v841_v44  }
  0x66   : > { %1041 = vperm.xlu2 %4056, %v796_v45   ;;  %1036 = vperm.xlu1 %4055, %v795_v48   ;;  %v4541_v48 = vld [vmem:[%s6829_s9 + $0x1] ss:$0 sm:$0xff] }
  0x67   : > { %1155 = vperm.xlu0 %4054, %v813_v49  }
  0x6e   : > { %1330 = vperm.xlu2 %4056, %v836_v51   ;;  %1269 = vperm.xlu1 %4055, %v829_v52   ;;  %v863_v51 = vld [vmem:[%s6824_s8 + $0x230] sm:$0xff] }
  0x6f   : > { %1265 = vperm.xlu0 %4054, %v828_v53  }
  0x76   : > { %1220 = vperm.xlu2 %4056, %v820_v54   ;;  %1215 = vperm.xlu1 %4055, %v819_v55   ;;  %v4557_v54 = vld [vmem:[%s6829_s9 + $0x2] ss:$0 sm:$0xff] }
  0x77   : > { %1334 = vperm.xlu0 %4054, %v837_v56  }
  0x78   : > { %v4426_v57 = vpop.permute.xlu2 %1143 }
  0x7e   : > { %1508 = vperm.xlu2 %4056, %v860_v58   ;;  %1447 = vperm.xlu1 %4055, %v853_v59   ;;  %v1171_v58 = vrot.slane %v4426_v57, 6 }
  0x7f   : > { %1443 = vperm.xlu0 %4054, %v852_v60  }
  0x80   : > { %v4437_v61 = vpop.permute.xlu2 %1147 }
  0x81   : > { %v6698_v59 = vrot.slane %v4437_v61, 6 }
  0x86   : > { %1098 = vperm.xlu2 %4056, %v807_v62   ;;  %1094 = vperm.xlu1 %4055, %v806_v63  }
  0x87   : > { %1512 = vperm.xlu0 %4054, %v861_v0  }
  0x88   : > { %v4448_v1 = vpop.permute.xlu2 %1253 }
  0x8e   : > { %1159 = vperm.xlu2 %4056, %v814_v2   ;;  %1398 = vperm.xlu1 %4055, %v844_v3  }
  0x8f   : > { %1393 = vperm.xlu0 %4054, %v843_v4  }
  0x90   : > { %v4459_v5 = vpop.permute.xlu2 %1318  ;;  %v4461_v6 = vpop.permute.xlu1 %1082 }
  0x91   : > { %v1075_v7 = vpop.permute.xlu0 %1074  ;;  %v6700_v52 = vrot.slane %v4461_v6, 7 }
  0x92   : > { %v1104_v39 = vrot.slane %v1075_v7, 7 }
  0x94   : > { %v4552_v53 = vmul.f32 0.0, %v1104_v39 }
  0x96   : > { %1051 = vperm.xlu2 %4056, %v798_v8   ;;  %1046 = vperm.xlu1 %4055, %v797_v9   ;;  %v1573_v4 = vmul.f32 %v4541_v48, %v4552_v53 }
  0x97   : > { %1163 = vperm.xlu0 %4054, %v815_v10  }
  0x98   : > { %v4472_v11 = vpop.permute.xlu2 %1205  ;;  %v4474_v12 = vpop.permute.xlu1 %1139 }
  0x99   : > { %v1079_v13 = vpop.permute.xlu0 %1078  ;;  %v1170_v40 = vrot.slane %v4474_v12, 6  ;;  %v4588_v12 = vsel %vm1169_vm4, %v1171_v58, %v6698_v59 }
  0x9a   : > { %v1105_v36 = vrot.slane %v1079_v13, 7  ;;  %6832 = vst [vmem:[#allocation6_spill] sm:$0xff] %v4588_v12  ;;  %v4591_v13 = vrot.slane %v4448_v1, 7 }
  0x9b   : > { %v4559_v55 = vmul.f32 0.0, %v1170_v40 }
  0x9c   : > { %v4533_v45 = vsel %vm997_vm3, %v1104_v39, %v1105_v36  ;;  %v4566_v62 = vsel %vm997_vm3, %v1105_v36, %v6700_v52 }
  0x9d   : > { %6830 = vst [vmem:[#allocation4_spill] sm:$0xff] %v4566_v62  ;;  %v4581_v7 = vmul.f32 %v4557_v54, %v4559_v55 }
  0x9e   : > { %1338 = vperm.xlu2 %4056, %v838_v14   ;;  %1277 = vperm.xlu1 %4055, %v831_v15   ;;  %v4596_v14 = vld [vmem:[%s6829_s9] ss:$0 sm:$0xff] }
  0x9f   : > { %1273 = vperm.xlu0 %4054, %v830_v16  }
  0xa0   : > { %v4485_v17 = vpop.permute.xlu2 %1435  ;;  %v4487_v18 = vpop.permute.xlu1 %1031 }
  0xa1   : > { %6827 = vst [vmem:[#allocation3_spill] sm:$0xff] %v4487_v18  ;;  %v4489_v19 = vpop.permute.xlu0 %1026 }
  0xa2   : > { %v4599_v15 = vmul.f32 0.0, %v4489_v19 }
  0xa6   : > { %1230 = vperm.xlu2 %4056, %v822_v21   ;;  %1225 = vperm.xlu1 %4055, %v821_v22   ;;  %v4603_v21 = vrot.slane %v4459_v5, 6  ;;  %v4606_v22 = vsel %vm1169_vm4, %v1170_v40, %v1171_v58 }
  0xa7   : > { %v943_v24 = vpop.f32.mrf.mxu0  ;;  %1342 = vperm.xlu0 %4054, %v839_v23  }
  0xa8   : > { %v944_v25 = vadd.f32 %v4494_v20, %v943_v24  ;;  %v4506_v26 = vpop.permute.xlu2 %1500  ;;  %v4508_v28 = vpop.permute.xlu1 %1261  ;;  %6833 = vst [vmem:[#allocation7_spill] sm:$0xff] %v4603_v21  ;;  %v799_v24 = vld [vmem:[%s6824_s8 + $0x30] sm:$0xff] }
  0xa9   : > { %v4510_v29 = vpop.permute.xlu0 %1257 }
  0xaa   : > { %v963_v27 = vmax.f32 %v944_v25, 0.0  ;;  %v1284_v16 = vrot.slane %v4510_v29, 7  ;;  %v6697_v25 = vrot.slane %v4508_v28, 7  ;;  %v1592_v29 = vrot.slane %v1573_v4, 1 }
  0xac   : > { %v971_v30 = vmin.f32 %v963_v27, 6.0  ;;  %v816_v27 = vld [vmem:[%s6824_s8 + $0xb8] sm:$0xff] }
  0xae   : > { %v998_v34 = vrot.slane %v971_v30, 7  ;;  %1516 = vperm.xlu2 %4056, %v862_v31   ;;  %1455 = vperm.xlu1 %4055, %v855_v32  }
  0xaf   : > { %v945_v35 = vpop.f32.mrf.mxu0  ;;  %1451 = vperm.xlu0 %4054, %v854_v33   ;;  %v846_v33 = vld [vmem:[%s6824_s8 + $0x1a8] sm:$0xff] }
  0xb0   : > { %v946_v37 = vadd.f32 %v4494_v20, %v945_v35  ;;  %v4522_v38 = vpop.permute.xlu2 %1090  ;;  %v4526_v41 = vsel %vm997_vm3, 0.0, %v998_v34  ;;  %v4528_v43 = vpop.permute.xlu1 %1326  ;;  %v1562_v35 = vmul.f32 %v4596_v14, %v4599_v15 }
  0xb1   : > { %v4530_v44 = vpop.permute.xlu0 %1322  ;;  %v1129_v49 = vmul.f32 %v4533_v45, %v4526_v41  ;;  %v1195_v19 = vmul.f32 %v4606_v22, %v4526_v41  ;;  %v1065_v36 = vmul.f32 %v4487_v18, %v4526_v41  ;;  %v1307_v40 = vmul.f32 %v4591_v13, %v4526_v41 }
  0xb2   : > { %v964_v42 = vmax.f32 %v946_v37, 0.0  ;;  %v4636_v37 = vsel %vm997_vm3, %v4591_v13, %v1284_v16 }
  0xb3   : > { %v1574_v2 = vmul.f32 %v4541_v48, %v1129_v49  ;;  %6834 = vst [vmem:[#allocation8_spill] sm:$0xff] %v4636_v37  ;;  %v1629_v58 = vmul.f32 %v4557_v54, %v1195_v19 }
  0xb4   : > { %v972_v46 = vmin.f32 %v964_v42, 6.0  ;;  %v4643_v42 = vld [vmem:[%s6829_s9 + $0x4] ss:$0 sm:$0xff] }
  0xb5   : > { %v1593_v5 = vrot.slane %v1574_v2, 1 }
  0xb6   : > { %v999_v56 = vrot.slane %v972_v46, 7  ;;  %1403 = vperm.xlu2 %4056, %v845_v47   ;;  %1102 = vperm.xlu1 %4055, %v808_v50   ;;  %v4655_v50 = vsel %vm997_vm3, %v1284_v16, %v6697_v25 }
  0xb7   : > { %v948_v60 = vpop.f32.mrf.mxu0  ;;  %1520 = vperm.xlu0 %4054, %v863_v51   ;;  %6835 = vst [vmem:[#allocation9_spill] sm:$0xff] %v4655_v50  ;;  %v1349_v51 = vrot.slane %v4530_v44, 6  ;;  %v1243_v44 = vmul.f32 %v4472_v11, %v4526_v41 }
  0xb8   : > { %v4569_v63 = vsel %vm997_vm3, %v998_v34, %v999_v56  ;;  %v949_v0 = vadd.f32 %v4494_v20, %v948_v60  ;;  %v4573_v57 = vpop.permute.xlu2 %1151  ;;  %v1432_v9 = vpop.permute.xlu1 %1431  ;;  %v6703_v34 = vrot.slane %v4485_v17, 7 }
  0xb9   : > { %v1130_v3 = vmul.f32 %v4566_v62, %v4569_v63  ;;  %v4583_v10 = vpop.permute.xlu0 %1210  ;;  %v1196_v32 = vmul.f32 %v4588_v12, %v4569_v63  ;;  %v4699_v25 = vsel %vm1169_vm4, %v4603_v21, %v1349_v51  ;;  %v4701_v59 = vrot.slane %v1432_v9, 7  ;;  %v800_v9 = vld [vmem:[%s6824_s8 + $0x38] sm:$0xff] }
  0xba   : > { %v965_v8 = vmax.f32 %v949_v0, 0.0  ;;  %6831 = vst [vmem:[#allocation5_spill] sm:$0xff] %v4583_v10  ;;  %v1308_v0 = vmul.f32 %v4636_v37, %v4569_v63 }
  0xbb   : > { %v4611_v1 = vmul.f32 %v4541_v48, %v1130_v3  ;;  %v4667_v3 = vmul.f32 %v4557_v54, %v1196_v32  ;;  %v4683_v32 = vld [vmem:[%s6829_s9 + $0x3] ss:$0 sm:$0xff]  ;;  %6838 = vst [vmem:[#allocation11_spill] sm:$0xff] %v4699_v25 }
  0xbc   : > { %v4608_v23 = vmin.f32 %v965_v8, 6.0  ;;  %6839 = vst [vmem:[#allocation12_spill] sm:$0xff] %v4701_v59  ;;  %v1702_v52 = vmul.f32 %v4643_v42, %v1308_v0 }
  0xbd   : > { %v6699_v47 = vrot.slane %v4611_v1, 1 }
  0xbe   : > { %v6701_v31 = vrot.slane %v4608_v23, 7  ;;  %1056 = vperm.xlu2 %4056, %v799_v24   ;;  %1167 = vperm.xlu1 %4055, %v816_v27   ;;  %v1372_v24 = vmul.f32 %v4603_v21, %v4526_v41  ;;  %v6702_v27 = vrot.slane %v4528_v43, 6  ;;  %v840_v41 = vld [vmem:[%s6824_s8 + $0x178] sm:$0xff] }
  0xbf   : > { %v950_v39 = vpop.f32.mrf.mxu0  ;;  %1408 = vperm.xlu0 %4054, %v846_v33   ;;  %v1563_v33 = vmul.f32 %v4596_v14, %v1065_v36  ;;  %v1647_v36 = vrot.slane %v1629_v58, 2  ;;  %v3998_v58 = vld [vmem:[%s6837_s29] sm:$0xff] }
  0xc0   : > { %v4648_v46 = vsel %vm997_vm3, %v999_v56, %v6701_v31  ;;  %v951_v49 = vadd.f32 %v4494_v20, %v950_v39  ;;  %v4659_v60 = vpop.permute.xlu2 %1041  ;;  %v1594_v56 = vsel %vm1591_vm5, %v1592_v29, %v1593_v5  ;;  %v1497_v8 = vpop.permute.xlu1 %1496  ;;  %v4678_v29 = vmul.f32 %v4643_v42, %v1307_v40  ;;  %v3999_v40 = vld [vmem:[%s6837_s29 + $0x8] sm:$0xff] }
  0xc1   : > { %6836 = vst [vmem:[#allocation10_spill] sm:$0xff] %v4659_v60  ;;  %v1309_v2 = vmul.f32 %v4655_v50, %v4648_v46  ;;  %v4669_v16 = vpop.permute.xlu0 %1439  ;;  %v1596_v39 = vsel %vm1591_vm5, %v1593_v5, %v6699_v47  ;;  %v832_v5 = vld [vmem:[%s6824_s8 + $0x138] sm:$0xff]  ;;  %2003 = vmatpush.bf16.msra.mxu1 %v3999_v40  ;;  %v4723_v0 = vrot.slane %v1497_v8, 6  ;;  %v1373_v47 = vmul.f32 %v4699_v25, %v4569_v63 }
  0xc2   : > { %v966_v4 = vmax.f32 %v951_v49, 0.0  ;;  %v1682_v31 = vmul.f32 %v4683_v32, %v1243_v44  ;;  %v1719_v30 = vrot.slane %v4678_v29, 1  ;;  %v4741_v8 = vsel %vm997_vm3, %v4701_v59, %v6703_v34 }
  0xc3   : > { %v4709_v19 = vmul.f32 %v4643_v42, %v1309_v2  ;;  %6841 = vst [vmem:[#allocation14_spill] sm:$0xff] %v4723_v0  ;;  %v6844_v44 = vrot.slane %v4608_v23, 7  ;;  %v6846_v34 = vrot.slane %v4667_v3, 2 }
  0xc4   : > { %v4689_v49 = vmin.f32 %v966_v4, 6.0  ;;  %v1617_v4 = vadd.f32 %v1594_v56, %v1562_v35  ;;  %v4721_v35 = vsel %vm1169_vm4, %v1349_v51, %v6702_v27  ;;  %v1618_v56 = vadd.f32 %v1596_v39, %v1563_v33  ;;  %v4735_v51 = vld [vmem:[%s6829_s9 + $0x5] ss:$0 sm:$0xff]  ;;  %6842 = vst [vmem:[#allocation15_spill] sm:$0xff] %v4741_v8 }
  0xc5   : > { %6840 = vst [vmem:[#allocation13_spill] sm:$0xff] %v4721_v35  ;;  %v1374_v40 = vmul.f32 %v4721_v35, %v4648_v46  ;;  %v1244_v33 = vmul.f32 %v4583_v10, %v4569_v63  ;;  %v1650_v2 = vsel %vm928_vm1, %v1647_v36, %v6846_v34  ;;  %v1720_v35 = vrot.slane %v1702_v52, 1  ;;  %2004 = vmatpush.bf16.msra.mxu1 %v3998_v58  ;;  %v856_v58 = vld [vmem:[%s6824_s8 + $0x1f8] sm:$0xff] }
  0xc6   : > { %1346 = vperm.xlu2 %4056, %v840_v41   ;;  %1281 = vperm.xlu1 %4055, %v832_v5   ;;  %v6843_v39 = vrot.slane %v4689_v49, 7  ;;  %v6845_v5 = vrot.slane %v4581_v7, 2  ;;  %v6850_v34 = vrot.slane %v4485_v17, 7  ;;  %v1756_v10 = vmul.f32 %v4735_v51, %v1373_v47 }
  0xc7   : > { %1061 = vperm.xlu0 %4054, %v800_v9   ;;  %v1672_v9 = vadd.f32 %v1650_v2, %v1618_v56  ;;  %v4788_v56 = vmul.f32 %v4735_v51, %v1374_v40  ;;  %v1485_v17 = vmul.f32 %v4701_v59, %v4569_v63  ;;  %v1683_v2 = vmul.f32 %v4683_v32, %v1244_v33  ;;  %v4810_v33 = vld [vmem:[%s6829_s9 + $0x8] ss:$0 sm:$0xff]  ;;  %v823_v59 = vld [vmem:[%s6824_s8 + $0xf0] sm:$0xff] }
  0xc8   : > { %v4750_v29 = vsel %vm997_vm3, %v6844_v44, %v6843_v39  ;;  %v4752_v41 = vpop.permute.xlu2 %1330  ;;  %v1648_v27 = vsel %vm928_vm1, %v6845_v5, %v1647_v36  ;;  %v4761_v50 = vpop.permute.xlu1 %1086  ;;  %v6847_v44 = vrot.slane %v4506_v26, 6  ;;  %v6849_v5 = vrot.slane %v4669_v16, 7 }
  0xc9   : > { %v4763_v23 = vpop.permute.xlu0 %1504  ;;  %v1671_v39 = vadd.f32 %v1648_v27, %v1617_v4  ;;  %v1486_v27 = vmul.f32 %v4741_v8, %v4648_v46  ;;  %v1550_v47 = vmul.f32 %v4723_v0, %v4569_v63  ;;  %v6852_v40 = vrot.slane %v4709_v19, 1 }
  0xca   : > { %v4769_v7 = vsel %vm1169_vm4, %v4723_v0, %v6847_v44  ;;  %v4776_v52 = vsel %vm997_vm3, %v6850_v34, %v6849_v5  ;;  %v824_v44 = vld [vmem:[%s6824_s8 + $0xf8] sm:$0xff]  ;;  %v1755_v5 = vmul.f32 %v4735_v51, %v1372_v24  ;;  %v4802_v34 = vld [vmem:[%s6829_s9 + $0x7] ss:$0 sm:$0xff]  ;;  %v6854_v24 = vrot.slane %v4506_v26, 6 }
  0xcb   : > { %6848 = vst [vmem:[#allocation16_spill] sm:$0xff] %v4769_v7  ;;  %v1487_v4 = vmul.f32 %v4776_v52, %v4750_v29  ;;  %v1723_v36 = vsel %vm1591_vm5, %v1720_v35, %v6852_v40  ;;  %v1551_v0 = vmul.f32 %v4769_v7, %v4648_v46  ;;  %v1721_v40 = vsel %vm1591_vm5, %v1719_v30, %v1720_v35  ;;  %v4837_v30 = vld [vmem:[%s6829_s9 + $0x6] ss:$0 sm:$0xff] }
  0xcc   : > { %6851 = vst [vmem:[#allocation17_spill] sm:$0xff] %v4776_v52  ;;  %v6853_v52 = vrot.slane %v4763_v23, 6  ;;  %v1691_v18 = vadd.f32 %v1683_v2, %v1672_v9  ;;  %v1690_v62 = vadd.f32 %v1682_v31, %v1671_v39  ;;  %v1774_v7 = vrot.slane %v1756_v10, 2 }
  0xcd   : > { %v1829_v25 = vmul.f32 %v4802_v34, %v1486_v27  ;;  %v4829_v26 = vmul.f32 %v4802_v34, %v1487_v4  ;;  %v1773_v31 = vrot.slane %v1755_v5, 2  ;;  %v1828_v10 = vmul.f32 %v4802_v34, %v1485_v17  ;;  %v848_v17 = vld [vmem:[%s6824_s8 + $0x1b8] sm:$0xff] }
  0xce   : > { %v4819_v8 = vsel %vm1169_vm4, %v6854_v24, %v6853_v52  ;;  %1459 = vperm.xlu2 %4056, %v856_v58   ;;  %1240 = vperm.xlu1 %4055, %v824_v44   ;;  %v6718_v52 = vrot.slane %v4788_v56, 2  ;;  %v1745_v24 = vadd.f32 %v1723_v36, %v1691_v18  ;;  %v1744_v35 = vadd.f32 %v1721_v40, %v1690_v62 }
  0xcf   : > { %6855 = vst [vmem:[#allocation18_spill] sm:$0xff] %v4819_v8  ;;  %v1552_v12 = vmul.f32 %v4819_v8, %v4750_v29  ;;  %1235 = vperm.xlu0 %4054, %v823_v59   ;;  %v1882_v39 = vmul.f32 %v4810_v33, %v1550_v47  ;;  %v1883_v9 = vmul.f32 %v4810_v33, %v1551_v0  ;;  %v1847_v4 = vrot.slane %v1829_v25, 1  ;;  %v847_v25 = vld [vmem:[%s6824_s8 + $0x1b0] sm:$0xff] }
  0xd0   : > { %v4832_v37 = vpop.permute.xlu2 %1220  ;;  %v4845_v18 = vpop.permute.xlu1 %1388  ;;  %v1777_v0 = vsel %vm928_vm1, %v1774_v7, %v6718_v52  ;;  %v1846_v40 = vrot.slane %v1828_v10, 1 }
  0xd1   : > { %v4843_v27 = vmul.f32 %v4810_v33, %v1552_v12  ;;  %6856 = vst [vmem:[#allocation19_spill] sm:$0xff] %v4845_v18  ;;  %v4847_v59 = vpop.permute.xlu0 %1383  ;;  %v1422_v36 = vmul.f32 %v4845_v18, %v4648_v46  ;;  %v1775_v12 = vsel %vm928_vm1, %v1773_v31, %v1774_v7  ;;  %v1799_v2 = vadd.f32 %v1777_v0, %v1745_v24  ;;  %v864_v7 = vld [vmem:[%s6824_s8 + $0x238] sm:$0xff] }
  0xd2   : > { %6857 = vst [vmem:[#allocation20_spill] sm:$0xff] %v4847_v59  ;;  %v1421_v62 = vmul.f32 %v4847_v59, %v4569_v63  ;;  %v1798_v44 = vadd.f32 %v1775_v12, %v1744_v35  ;;  %v1900_v58 = vrot.slane %v1882_v39, 2  ;;  %v1901_v18 = vrot.slane %v1883_v9, 2  ;;  %v4879_v9 = vld [vmem:[%s6859_s26] ss:$0 sm:$0xff]  ;;  %s4138_s26 = smov 24  }
  0xd3   : > { %v1810_v47 = vmul.f32 %v4837_v30, %v1422_v36  ;;  %v6720_v52 = vrot.slane %v4843_v27, 2  ;;  %v6858_v35 = vrot.slane %v4829_v26, 1 }
  0xd4   : > { %v1809_v5 = vmul.f32 %v4837_v30, %v1421_v62  ;;  %v1848_v62 = vsel %vm1591_vm5, %v1846_v40, %v1847_v4 }
  0xd5   : > { %v1818_v31 = vadd.f32 %v1810_v47, %v1799_v2  ;;  %v1850_v36 = vsel %vm1591_vm5, %v1847_v4, %v6858_v35  ;;  %v1902_v2 = vsel %vm928_vm1, %v1900_v58, %v1901_v18  ;;  %v1904_v4 = vsel %vm928_vm1, %v1901_v18, %v6720_v52  ;;  %v867_v58 = vld [vmem:[%s6681_s17 + $0x10] sm:$0xff] }
  0xd6   : > { %v1817_v24 = vadd.f32 %v1809_v5, %v1798_v44  ;;  %1418 = vperm.xlu2 %4056, %v848_v17   ;;  %1413 = vperm.xlu1 %4055, %v847_v25   ;;  %v869_v5 = vld [vmem:[%s6681_s17 + $0x20] sm:$0xff]  ;;  %v868_v25 = vld [vmem:[%s6681_s17 + $0x18] sm:$0xff] }
  0xd7   : > { %v1872_v0 = vadd.f32 %v1850_v36, %v1818_v31  ;;  %1524 = vperm.xlu0 %4054, %v864_v7   ;;  %v953_v7 = vpop.f32.mrf.mxu0 }
  0xd8   : > { %v1871_v10 = vadd.f32 %v1848_v62, %v1817_v24  ;;  %v4874_v39 = vpop.permute.xlu2 %1508  ;;  %v4881_v12 = vpop.permute.xlu1 %1036 }
  0xd9   : > { %6860 = vst [vmem:[#allocation21_spill] sm:$0xff] %v4881_v12  ;;  %v4883_v17 = vpop.permute.xlu0 %1155  ;;  %v1926_v44 = vadd.f32 %v1904_v4, %v1872_v0  ;;  %v954_v4 = vadd.f32 %v4494_v20, %v953_v7  ;;  %v6861_v7 = vrot.slane %v4461_v6, 7 }
  0xda   : > { %v1925_v47 = vadd.f32 %v1902_v2, %v1871_v10  ;;  %v1109_v2 = vrot.slane %v4761_v50, 7  ;;  %v6719_v50 = vrot.slane %v4522_v38, 7 }
  0xdb   : > { %v1937_v31 = vadd.f32 %v4879_v9, %v1926_v44  ;;  %v872_v44 = vld [vmem:[%s6681_s17 + $0x38] sm:$0xff] }
  0xdc   : > { %v1936_v40 = vadd.f32 %v4879_v9, %v1925_v47 }
  0xdd   : > { %v1945_v24 = vmax.f32 %v1937_v31, 0.0  ;;  %v967_v31 = vmax.f32 %v954_v4, 0.0 }
  0xde   : > { %2855 = vperm.xlu2 %4056, %v869_v5   ;;  %v1944_v18 = vmax.f32 %v1936_v40, 0.0  ;;  %2839 = vperm.xlu1 %4055, %v868_v25   ;;  %v871_v5 = vld [vmem:[%s6681_s17 + $0x30] sm:$0xff]  ;;  %v870_v25 = vld [vmem:[%s6681_s17 + $0x28] sm:$0xff] }
  0xdf   : > { %2835 = vperm.xlu0 %4054, %v867_v58   ;;  %v1953_v10 = vmin.f32 %v1945_v24, 6.0  ;;  %v955_v40 = vpop.f32.mrf.mxu0  ;;  %v4920_v58 = vsel %vm997_vm3, %v6861_v7, %v1109_v2  ;;  %v1175_v24 = vrot.slane %v4573_v57, 6 }
  0xe0   : > { %v4900_v35 = vpop.permute.xlu2 %1098  ;;  %v1952_v36 = vmin.f32 %v1944_v18, 6.0  ;;  %v4902_v62 = vpop.permute.xlu1 %1269  ;;  %6862 = vst [vmem:[#allocation22_spill] sm:$0xff] %v4920_v58  ;;  %v6722_v18 = vrot.slane %v4883_v17, 6  ;;  %v956_v6 = vadd.f32 %v4494_v20, %v955_v40  ;;  %v873_v40 = vld [vmem:[%s6681_s17 + $0x40] sm:$0xff] }
  0xe1   : > { %v1266_v0 = vpop.permute.xlu0 %1265 }
  0xe2   : > { %v1964_v47 = vpack.c.bf16 %v1953_v10, %v1952_v36  ;;  %v4927_v36 = vsel %vm997_vm3, %v1109_v2, %v6719_v50  ;;  %v4941_v57 = vsel %vm1169_vm4, %v1175_v24, %v6722_v18  ;;  %v6866_v2 = vrot.slane %v4437_v61, 6  ;;  %v866_v61 = vld [vmem:[%s6681_s17 + $0x8] sm:$0xff] }
  0xe3   : > { %6863 = vst [vmem:[#allocation23_spill] sm:$0xff] %v4927_v36  ;;  %v1353_v50 = vrot.slane %v4752_v41, 6  ;;  %v1288_v52 = vrot.slane %v1266_v0, 7  ;;  %v1198_v18 = vmul.f32 %v4941_v57, %v4750_v29  ;;  %v865_v41 = vld [vmem:[%s6681_s17] sm:$0xff]  ;;  %v1066_v0 = vmul.f32 %v4881_v12, %v4569_v63 }
  0xe4   : > { %3833 = vmatmul.msk.bf16.vlgmr.msra.gmra.mxu1 %vm1984_vm6, %v1964_v47  ;;  %v1131_v47 = vmul.f32 %v4920_v58, %v4648_v46  ;;  %6865 = vst [vmem:[#allocation25_spill] sm:$0xff] %v4941_v57  ;;  %v968_v58 = vmax.f32 %v956_v6, 0.0  ;;  %v6870_v57 = vrot.slane %v4508_v28, 7  ;;  %v6874_v6 = vrot.slane %v4689_v49, 7 }
  0xe5   : > { %v6877_v12 = vrot.slane %v4611_v1, 1 }
  0xe6   : > { %2879 = vperm.xlu2 %4056, %v872_v44   ;;  %2875 = vperm.xlu1 %4055, %v871_v5   ;;  %v975_v44 = vmin.f32 %v967_v31, 6.0  ;;  %v4946_v5 = vsel %vm1169_vm4, %v6866_v2, %v1175_v24  ;;  %v1576_v2 = vmul.f32 %v4541_v48, %v1131_v47  ;;  %v6868_v47 = vrot.slane %v4528_v43, 6 }
  0xe7   : > { %2859 = vperm.xlu0 %4054, %v870_v25   ;;  %6867 = vst [vmem:[#allocation26_spill] sm:$0xff] %v4946_v5  ;;  %v1132_v25 = vmul.f32 %v4927_v36, %v4750_v29  ;;  %v1197_v24 = vmul.f32 %v4946_v5, %v4648_v46  ;;  %v4980_v8 = vsel %vm997_vm3, %v6870_v57, %v1288_v52 }
  0xe8   : > { %v4929_v10 = vpop.permute.xlu2 %1159  ;;  %v4934_v4 = vpop.permute.xlu1 %1215  ;;  %v1005_v36 = vrot.slane %v975_v44, 7  ;;  %v4975_v5 = vsel %vm1169_vm4, %v6868_v47, %v1353_v50  ;;  %6871 = vst [vmem:[#allocation28_spill] sm:$0xff] %v4980_v8  ;;  %v6872_v44 = vrot.slane %v4902_v62, 7  ;;  %v4991_v43 = vmul.f32 %v4557_v54, %v1198_v18 }
  0xe9   : > { %6864 = vst [vmem:[#allocation24_spill] sm:$0xff] %v4934_v4  ;;  %v4936_v7 = vpop.permute.xlu0 %1334  ;;  %v4970_v31 = vmul.f32 %v4541_v48, %v1132_v25  ;;  %v1631_v25 = vmul.f32 %v4557_v54, %v1197_v24  ;;  %v1067_v57 = vmul.f32 %v4659_v60, %v4648_v46  ;;  %v1310_v49 = vmul.f32 %v4980_v8, %v4750_v29 }
  0xea   : > { %6869 = vst [vmem:[#allocation27_spill] sm:$0xff] %v4975_v5  ;;  %v4985_v63 = vsel %vm997_vm3, %v1288_v52, %v6872_v44  ;;  %v5000_v52 = vsel %vm997_vm3, %v6874_v6, %v1005_v36  ;;  %v875_v44 = vld [vmem:[%s6681_s17 + $0x50] sm:$0xff]  ;;  %v1531_v60 = vrot.slane %v4874_v39, 6 }
  0xeb   : > { %6873 = vst [vmem:[#allocation29_spill] sm:$0xff] %v4985_v63  ;;  %v1311_v6 = vmul.f32 %v4985_v63, %v5000_v52  ;;  %v1651_v8 = vrot.slane %v1631_v25, 2  ;;  %v6878_v1 = vrot.slane %v4970_v31, 1  ;;  %v1704_v59 = vmul.f32 %v4643_v42, %v1310_v49 }
  0xec   : > { %v6884_v49 = vrot.slane %v4991_v43, 2 }
  0xee   : > { %2895 = vperm.xlu2 %4056, %v873_v40   ;;  %2826 = vperm.xlu1 %4055, %v866_v61   ;;  %v4987_v40 = vmin.f32 %v968_v58, 6.0  ;;  %v1597_v61 = vrot.slane %v1576_v2, 1  ;;  %v1564_v58 = vmul.f32 %v4596_v14, %v1066_v0  ;;  %v1375_v2 = vmul.f32 %v4975_v5, %v4750_v29  ;;  %v876_v0 = vld [vmem:[%s6681_s17 + $0x58] sm:$0xff] }
  0xef   : > { %2821 = vperm.xlu0 %4054, %v865_v41   ;;  %v6875_v41 = vrot.slane %v4936_v7, 6 }
  0xf0   : > { %v4993_v47 = vpop.permute.xlu1 %1447  ;;  %v5008_v18 = vpop.permute.xlu2 %1051  ;;  %v1598_v63 = vsel %vm1591_vm5, %v6877_v12, %v1597_v61  ;;  %v1758_v25 = vmul.f32 %v4735_v51, %v1375_v2  ;;  %v1600_v12 = vsel %vm1591_vm5, %v1597_v61, %v6878_v1 }
  0xf1   : > { %v1444_v28 = vpop.permute.xlu0 %1443  ;;  %v5006_v24 = vsel %vm1169_vm4, %v1353_v50, %v6875_v41  ;;  %v1245_v50 = vmul.f32 %v4934_v4, %v4648_v46  ;;  %v874_v46 = vld [vmem:[%s6681_s17 + $0x48] sm:$0xff]  ;;  %v1619_v41 = vadd.f32 %v1598_v63, %v1564_v58  ;;  %v6880_v63 = vrot.slane %v4669_v16, 7 }
  0xf2   : > { %6876 = vst [vmem:[#allocation30_spill] sm:$0xff] %v5006_v24  ;;  %v1466_v5 = vrot.slane %v1444_v28, 7  ;;  %v1376_v21 = vmul.f32 %v5006_v24, %v5000_v52  ;;  %v1565_v28 = vmul.f32 %v4596_v14, %v1067_v57  ;;  %v5044_v24 = vmul.f32 %v4643_v42, %v1311_v6 }
  0xf3   : > { %v1684_v4 = vmul.f32 %v4683_v32, %v1245_v50  ;;  %v6879_v57 = vrot.slane %v4987_v40, 7  ;;  %v6882_v61 = vrot.slane %v4993_v47, 7  ;;  %v1654_v6 = vsel %vm928_vm1, %v1651_v8, %v6884_v49 }
  0xf4   : > { %v5055_v58 = vsel %vm997_vm3, %v6880_v63, %v1466_v5  ;;  %v1724_v49 = vrot.slane %v1704_v59, 1  ;;  %v880_v59 = vld [vmem:[%s6681_s17 + $0x78] sm:$0xff] }
  0xf5   : > { %v5050_v39 = vsel %vm997_vm3, %v1005_v36, %v6879_v57  ;;  %6881 = vst [vmem:[#allocation31_spill] sm:$0xff] %v5055_v58  ;;  %v5060_v2 = vsel %vm997_vm3, %v1466_v5, %v6882_v61  ;;  %v6885_v36 = vrot.slane %v4667_v3, 2  ;;  %v1620_v5 = vadd.f32 %v1600_v12, %v1565_v28  ;;  %v881_v28 = vld [vmem:[%s6681_s17 + $0x80] sm:$0xff] }
  0xf6   : > { %2919 = vperm.xlu2 %4056, %v876_v0   ;;  %2915 = vperm.xlu1 %4055, %v875_v44   ;;  %6883 = vst [vmem:[#allocation32_spill] sm:$0xff] %v5060_v2  ;;  %v1246_v44 = vmul.f32 %v4832_v37, %v4750_v29  ;;  %v5071_v0 = vmul.f32 %v4735_v51, %v1376_v21  ;;  %v1778_v3 = vrot.slane %v1758_v25, 2 }
  0xf7   : > { %2899 = vperm.xlu0 %4054, %v874_v46   ;;  %v1652_v16 = vsel %vm928_vm1, %v6885_v36, %v1651_v8  ;;  %v6886_v46 = vrot.slane %v4763_v23, 6  ;;  %v1488_v21 = vmul.f32 %v5055_v58, %v5000_v52  ;;  %v1489_v8 = vmul.f32 %v5060_v2, %v5050_v39 }
  0xf8   : > { %v5073_v50 = vpop.permute.xlu1 %1094  ;;  %v1673_v63 = vadd.f32 %v1652_v16, %v1619_v41  ;;  %v5091_v12 = vpop.permute.xlu2 %1338  ;;  %v1674_v36 = vadd.f32 %v1654_v6, %v1620_v5 }
  0xf9   : > { %v5075_v1 = vpop.permute.xlu0 %1512  ;;  %v5080_v57 = vsel %vm1169_vm4, %v6886_v46, %v1531_v60  ;;  %v1831_v5 = vmul.f32 %v4802_v34, %v1488_v21  ;;  %v6890_v46 = vrot.slane %v5044_v24, 1 }
  0xfa   : > { %6887 = vst [vmem:[#allocation33_spill] sm:$0xff] %v5080_v57  ;;  %v6736_v61 = vrot.slane %v5075_v1, 6  ;;  %v1692_v23 = vadd.f32 %v1684_v4, %v1673_v63  ;;  %v1553_v16 = vmul.f32 %v5080_v57, %v5000_v52  ;;  %v879_v63 = vld [vmem:[%s6681_s17 + $0x70] sm:$0xff]  ;;  %v5115_v57 = vmul.f32 %v4802_v34, %v1489_v8 }
  0xfc   : > { %v5096_v41 = vsel %vm1169_vm4, %v1531_v60, %v6736_v61  ;;  %v1685_v60 = vmul.f32 %v4683_v32, %v1246_v44  ;;  %v6889_v61 = vrot.slane %v4709_v19, 1  ;;  %v1885_v44 = vmul.f32 %v4810_v33, %v1553_v16 }
  0xfd   : > { %6888 = vst [vmem:[#allocation34_spill] sm:$0xff] %v5096_v41  ;;  %v1554_v4 = vmul.f32 %v5096_v41, %v5050_v39  ;;  %v1727_v41 = vsel %vm1591_vm5, %v1724_v49, %v6890_v46  ;;  %v6893_v46 = vrot.slane %v4788_v56, 2  ;;  %v882_v56 = vld [vmem:[%s6681_s17 + $0x88] sm:$0xff]  ;;  %v1113_v16 = vrot.slane %v5073_v50, 7 }
  0xfe   : > { %2968 = vperm.xlu2 %4056, %v881_v28   ;;  %v1725_v6 = vsel %vm1591_vm5, %v6889_v61, %v1724_v49  ;;  %2953 = vperm.xlu1 %4055, %v880_v59   ;;  %v1693_v25 = vadd.f32 %v1685_v60, %v1674_v36  ;;  %v6892_v61 = vrot.slane %v5071_v0, 2  ;;  %v1851_v36 = vrot.slane %v1831_v5, 1  ;;  %v877_v5 = vld [vmem:[%s6681_s17 + $0x60] sm:$0xff] }
  0xff   : > { %v1746_v2 = vadd.f32 %v1725_v6, %v1692_v23  ;;  %2949 = vperm.xlu0 %4054, %v879_v63   ;;  %v5122_v28 = vmul.f32 %v4810_v33, %v1554_v4  ;;  %v1779_v4 = vsel %vm928_vm1, %v6893_v46, %v1778_v3  ;;  %v878_v63 = vld [vmem:[%s6681_s17 + $0x68] sm:$0xff]  ;;  %v6899_v50 = vrot.slane %v4522_v38, 7 }
 0x100   : > { %v5124_v19 = vpop.permute.xlu1 %1398  ;;  %v1781_v21 = vsel %vm928_vm1, %v1778_v3, %v6892_v61  ;;  %v1747_v49 = vadd.f32 %v1727_v41, %v1693_v25  ;;  %v1905_v25 = vrot.slane %v1885_v44, 2  ;;  %v5151_v3 = vpop.permute.xlu2 %1230 }
 0x101   : > { %6891 = vst [vmem:[#allocation35_spill] sm:$0xff] %v5124_v19  ;;  %v5129_v8 = vpop.permute.xlu0 %1393  ;;  %v1424_v59 = vmul.f32 %v5124_v19, %v5000_v52  ;;  %v1800_v61 = vadd.f32 %v1779_v4, %v1746_v2  ;;  %v6895_v2 = vrot.slane %v5115_v57, 1 }
 0x102   : > { %v1423_v23 = vmul.f32 %v5129_v8, %v4750_v29  ;;  %v1801_v60 = vadd.f32 %v1781_v21, %v1747_v49  ;;  %6894 = vst [vmem:[#allocation36_spill] sm:$0xff] %v5151_v3  ;;  %v6896_v49 = vrot.slane %v4829_v26, 1 }
 0x103   : > { %v1812_v6 = vmul.f32 %v4837_v30, %v1424_v59  ;;  %v1854_v59 = vsel %vm1591_vm5, %v1851_v36, %v6895_v2 }
 0x104   : > { %v1811_v41 = vmul.f32 %v4837_v30, %v1423_v23  ;;  %v1852_v23 = vsel %vm1591_vm5, %v6896_v49, %v1851_v36 }
 0x105   : > { %v1820_v46 = vadd.f32 %v1812_v6, %v1801_v60  ;;  %v6898_v6 = vrot.slane %v5122_v28, 2 }
 0x106   : > { %v1819_v21 = vadd.f32 %v1811_v41, %v1800_v61  ;;  %2940 = vperm.xlu2 %4056, %v878_v63   ;;  %2935 = vperm.xlu1 %4055, %v877_v5   ;;  %v6897_v63 = vrot.slane %v4843_v27, 2  ;;  %v1179_v41 = vrot.slane %v4929_v10, 6 }
 0x107   : > { %v1874_v44 = vadd.f32 %v1854_v59, %v1820_v46  ;;  %2972 = vperm.xlu0 %4054, %v882_v56   ;;  %v1908_v26 = vsel %vm928_vm1, %v1905_v25, %v6898_v6  ;;  %v5175_v56 = vsel %vm997_vm3, %v6899_v50, %v1113_v16  ;;  %v958_v46 = vpop.f32.mrf.mxu0  ;;  %v6900_v59 = vrot.slane %v4883_v17, 6 }
 0x108   : > { %v1873_v4 = vadd.f32 %v1852_v23, %v1819_v21  ;;  %v5160_v58 = vpop.permute.xlu1 %1046  ;;  %v1906_v60 = vsel %vm928_vm1, %v6897_v63, %v1905_v25  ;;  %v1133_v10 = vmul.f32 %v5175_v56, %v5000_v52  ;;  %v5185_v49 = vpop.permute.xlu2 %1516  ;;  %v959_v38 = vadd.f32 %v4494_v20, %v958_v46 }
 0x109   : > { %v5162_v19 = vpop.permute.xlu0 %1163  ;;  %v1928_v36 = vadd.f32 %v1908_v26, %v1874_v44  ;;  %v5181_v25 = vsel %vm1169_vm4, %v6900_v59, %v1179_v41  ;;  %v1068_v50 = vmul.f32 %v5160_v58, %v4750_v29  ;;  %v6901_v59 = vrot.slane %v4902_v62, 7 }
 0x10a   : > { %v1927_v61 = vadd.f32 %v1906_v60, %v1873_v4  ;;  %v1199_v60 = vmul.f32 %v5181_v25, %v5000_v52  ;;  %v5193_v26 = vmul.f32 %v4541_v48, %v1133_v10 }
 0x10b   : > { %v1939_v27 = vadd.f32 %v4879_v9, %v1928_v36  ;;  %v1357_v36 = vrot.slane %v5091_v12, 6 }
 0x10c   : > { %v1938_v5 = vadd.f32 %v4879_v9, %v1927_v61  ;;  %v6743_v61 = vrot.slane %v4900_v35, 7  ;;  %v1601_v29 = vrot.slane %v5193_v26, 1 }
 0x10d   : > { %v1947_v2 = vmax.f32 %v1939_v27, 0.0  ;;  %v6742_v27 = vrot.slane %v5162_v19, 6 }
 0x10e   : > { %v1946_v21 = vmax.f32 %v1938_v5, 0.0  ;;  %v969_v5 = vmax.f32 %v959_v38, 0.0 }
 0x10f   : > { %v1955_v63 = vmin.f32 %v1947_v2, 6.0  ;;  %v960_v46 = vpop.f32.mrf.mxu0  ;;  %v5207_v2 = vsel %vm997_vm3, %v1113_v16, %v6743_v61 }
 0x110   : > { %v1954_v23 = vmin.f32 %v1946_v21, 6.0  ;;  %v5188_v44 = vpop.permute.xlu1 %1277  ;;  %v5202_v21 = vmul.f32 %v4557_v54, %v1199_v60  ;;  %v961_v10 = vadd.f32 %v4494_v20, %v960_v46  ;;  %v1134_v62 = vmul.f32 %v5207_v2, %v5050_v39  ;;  %v5236_v26 = vpop.permute.xlu2 %1403 }
 0x111   : > { %v1274_v4 = vpop.permute.xlu0 %1273  ;;  %6907 = vst [vmem:[#allocation41_spill] sm:$0xff] %v5236_v26  ;;  %v6908_v46 = vrot.slane %v4970_v31, 1  ;;  %v6909_v31 = vrot.slane %v4991_v43, 2 }
 0x112   : > { %v1292_v6 = vrot.slane %v1274_v4, 7  ;;  %v1965_v17 = vpack.c.bf16 %v1955_v63, %v1954_v23  ;;  %v6903_v23 = vrot.slane %v4936_v7, 6  ;;  %v977_v4 = vmin.f32 %v969_v5, 6.0 }
 0x113   : > { %v1566_v63 = vmul.f32 %v4596_v14, %v1068_v50  ;;  %v1655_v7 = vrot.slane %v5202_v21, 2 }
 0x114   : > { %3834 = vmatmul.msk.bf16.gmra.mxu1 %vm1984_vm6, %v1965_v17  ;;  %v5212_v12 = vsel %vm997_vm3, %v6901_v59, %v1292_v6  ;;  %v5219_v38 = vsel %vm1169_vm4, %v6903_v23, %v1357_v36  ;;  %v5231_v17 = vsel %vm1169_vm4, %v1179_v41, %v6742_v27  ;;  %v1602_v59 = vsel %vm1591_vm5, %v6908_v46, %v1601_v29 }
 0x115   : > { %6902 = vst [vmem:[#allocation37_spill] sm:$0xff] %v5212_v12  ;;  %v1312_v20 = vmul.f32 %v5212_v12, %v5050_v39  ;;  %v1377_v50 = vmul.f32 %v5219_v38, %v5050_v39  ;;  %v970_v23 = vmax.f32 %v961_v10, 0.0  ;;  %v1009_v27 = vrot.slane %v977_v4, 7 }
 0x116   : > { %6904 = vst [vmem:[#allocation38_spill] sm:$0xff] %v5219_v38  ;;  %v1621_v61 = vadd.f32 %v1602_v59, %v1566_v63  ;;  %v1200_v21 = vmul.f32 %v5231_v17, %v5050_v39  ;;  %v5249_v12 = vmul.f32 %v4541_v48, %v1134_v62  ;;  %v1656_v46 = vsel %vm928_vm1, %v6909_v31, %v1655_v7 }
 0x117   : > { %6906 = vst [vmem:[#allocation40_spill] sm:$0xff] %v5231_v17  ;;  %v5260_v10 = vmul.f32 %v4735_v51, %v1377_v50  ;;  %v1535_v4 = vrot.slane %v5185_v49, 6  ;;  %v6910_v63 = vrot.slane %v5188_v44, 7  ;;  %v6912_v59 = vrot.slane %v4987_v40, 7 }
 0x118   : > { %v5222_v60 = vpop.permute.xlu1 %1225  ;;  %v5276_v31 = vmul.f32 %v4557_v54, %v1200_v21  ;;  %v6750_v49 = vrot.slane %v5249_v12, 1 }
 0x119   : > { %6905 = vst [vmem:[#allocation39_spill] sm:$0xff] %v5222_v60  ;;  %v5224_v16 = vpop.permute.xlu0 %1342  ;;  %v1247_v5 = vmul.f32 %v5222_v60, %v5000_v52  ;;  %v5252_v60 = vmul.f32 %v4643_v42, %v1312_v20  ;;  %v5266_v62 = vsel %vm997_vm3, %v1292_v6, %v6910_v63  ;;  %v5268_v20 = vmin.f32 %v970_v23, 6.0 }
 0x11a   : > { %6911 = vst [vmem:[#allocation42_spill] sm:$0xff] %v5266_v62  ;;  %v5273_v43 = vsel %vm997_vm3, %v6912_v59, %v1009_v27  ;;  %v6913_v6 = vrot.slane %v5224_v16, 6  ;;  %v1069_v63 = vmul.f32 %v5008_v18, %v5000_v52  ;;  %v1782_v21 = vrot.slane %v5260_v10, 2 }
 0x11b   : > { %v1686_v41 = vmul.f32 %v4683_v32, %v1247_v5  ;;  %v1675_v5 = vadd.f32 %v1656_v46, %v1621_v61  ;;  %v1728_v17 = vrot.slane %v5252_v60, 1  ;;  %v1313_v54 = vmul.f32 %v5266_v62, %v5273_v43 }
 0x11c   : > { %v5285_v23 = vsel %vm1169_vm4, %v1357_v36, %v6913_v6  ;;  %v6915_v46 = vrot.slane %v5075_v1, 6  ;;  %v6917_v36 = vrot.slane %v4993_v47, 7  ;;  %v5304_v6 = vpop.permute.xlu2 %1056  ;;  %v6919_v47 = vrot.slane %v5044_v24, 1 }
 0x11d   : > { %6914 = vst [vmem:[#allocation43_spill] sm:$0xff] %v5285_v23  ;;  %v1694_v61 = vadd.f32 %v1686_v41, %v1675_v5  ;;  %v1378_v41 = vmul.f32 %v5285_v23, %v5273_v43  ;;  %v1604_v5 = vsel %vm1591_vm5, %v1601_v29, %v6750_v49  ;;  %v5320_v52 = vmul.f32 %v4643_v42, %v1313_v54 }
 0x11e   : > { %v5295_v59 = vsel %vm1169_vm4, %v6915_v46, %v1535_v4  ;;  %v1729_v46 = vsel %vm1591_vm5, %v6919_v47, %v1728_v17  ;;  %v1567_v23 = vmul.f32 %v4596_v14, %v1069_v63  ;;  %v6920_v29 = vrot.slane %v5071_v0, 2 }
 0x11f   : > { %6916 = vst [vmem:[#allocation44_spill] sm:$0xff] %v5295_v59  ;;  %v1748_v60 = vadd.f32 %v1729_v46, %v1694_v61  ;;  %v6921_v47 = vrot.slane %v5268_v20, 7  ;;  %v6922_v54 = vrot.slane %v5276_v31, 2  ;;  %v5340_v63 = vmul.f32 %v4735_v51, %v1378_v41 }
 0x120   : > { %v5278_v50 = vpop.permute.xlu1 %1455  ;;  %v1783_v24 = vsel %vm928_vm1, %v6920_v29, %v1782_v21 }
 0x121   : > { %v1452_v38 = vpop.permute.xlu0 %1451  ;;  %v5332_v49 = vsel %vm997_vm3, %v1009_v27, %v6921_v47  ;;  %v1658_v61 = vsel %vm928_vm1, %v1655_v7, %v6922_v54  ;;  %v6923_v46 = vrot.slane %v5278_v50, 7  ;;  %v1622_v27 = vadd.f32 %v1604_v5, %v1567_v23 }
 0x122   : > { %v1470_v40 = vrot.slane %v1452_v38, 7  ;;  %v1802_v41 = vadd.f32 %v1783_v24, %v1748_v60 }
 0x124   : > { %v5301_v38 = vsel %vm997_vm3, %v6917_v36, %v1470_v40  ;;  %v1555_v36 = vmul.f32 %v5295_v59, %v5273_v43  ;;  %v5345_v0 = vsel %vm997_vm3, %v1470_v40, %v6923_v46  ;;  %v1676_v46 = vadd.f32 %v1658_v61, %v1622_v27 }
 0x125   : > { %6918 = vst [vmem:[#allocation45_spill] sm:$0xff] %v5301_v38  ;;  %v1490_v1 = vmul.f32 %v5301_v38, %v5273_v43  ;;  %v1248_v38 = vmul.f32 %v5151_v3, %v5050_v39  ;;  %v1491_v3 = vmul.f32 %v5345_v0, %v5332_v49 }
 0x126   : > { %6924 = vst [vmem:[#allocation46_spill] sm:$0xff] %v5345_v0  ;;  %v1887_v54 = vmul.f32 %v4810_v33, %v1555_v36  ;;  %v6926_v36 = vrot.slane %v4900_v35, 7 }
 0x127   : > { %v1833_v10 = vmul.f32 %v4802_v34, %v1490_v1  ;;  %v1425_v1 = vmul.f32 %v5236_v26, %v5050_v39  ;;  %v6756_v26 = vrot.slane %v5320_v52, 1  ;;  %v1687_v5 = vmul.f32 %v4683_v32, %v1248_v38 }
 0x128   : > { %v1103_v29 = vpop.permute.xlu1 %1102  ;;  %v1909_v61 = vrot.slane %v1887_v54, 2 }
 0x129   : > { %v5347_v59 = vpop.permute.xlu0 %1520  ;;  %v1855_v47 = vrot.slane %v1833_v10, 1  ;;  %v5349_v62 = vrot.slane %v1103_v29, 7  ;;  %v1813_v23 = vmul.f32 %v4837_v30, %v1425_v1  ;;  %v6927_v29 = vrot.slane %v5115_v57, 1  ;;  %v1347_v1 = vpop.permute.xlu2 %1346 }
 0x12a   : > { %v6755_v7 = vrot.slane %v5347_v59, 6  ;;  %v1731_v38 = vsel %vm1591_vm5, %v1728_v17, %v6756_v26  ;;  %v1695_v35 = vadd.f32 %v1687_v5, %v1676_v46  ;;  %v6930_v26 = vrot.slane %v5122_v28, 2 }
 0x12b   : > { %v5368_v60 = vsel %vm997_vm3, %v6926_v36, %v5349_v62  ;;  %v1821_v27 = vadd.f32 %v1813_v23, %v1802_v41  ;;  %v1136_v10 = vmul.f32 %v5349_v62, %v5332_v49  ;;  %v5400_v0 = vrot.slane %v1347_v1, 6 }
 0x12c   : > { %v5359_v40 = vsel %vm1169_vm4, %v1535_v4, %v6755_v7  ;;  %v1856_v4 = vsel %vm1591_vm5, %v6927_v29, %v1855_v47  ;;  %v5379_v7 = vmul.f32 %v4802_v34, %v1491_v3  ;;  %v1135_v36 = vmul.f32 %v5368_v60, %v5273_v43 }
 0x12d   : > { %6925 = vst [vmem:[#allocation47_spill] sm:$0xff] %v5359_v40  ;;  %v1556_v24 = vmul.f32 %v5359_v40, %v5332_v49  ;;  %v6928_v29 = vrot.slane %v5340_v63, 2  ;;  %v1875_v41 = vadd.f32 %v1856_v4, %v1821_v27  ;;  %v1749_v46 = vadd.f32 %v1731_v38, %v1695_v35 }
 0x12e   : > { %v1910_v40 = vsel %vm928_vm1, %v6930_v26, %v1909_v61  ;;  %6931 = vst [vmem:[#allocation49_spill] sm:$0xff] %v5400_v0  ;;  %v1580_v38 = vmul.f32 %v4541_v48, %v1135_v36  ;;  %v1581_v35 = vmul.f32 %v4541_v48, %v1136_v10  ;;  %v6934_v48 = vrot.slane %v5224_v16, 6 }
 0x12f   : > { %v1785_v54 = vsel %vm928_vm1, %v1782_v21, %v6928_v29  ;;  %v5389_v23 = vmul.f32 %v4810_v33, %v1556_v24  ;;  %v6760_v21 = vrot.slane %v5379_v7, 1  ;;  %v6932_v24 = vrot.slane %v5162_v19, 6 }
 0x130   : > { %v1168_v57 = vpop.permute.xlu1 %1167  ;;  %v1803_v27 = vadd.f32 %v1785_v54, %v1749_v46  ;;  %v1929_v28 = vadd.f32 %v1910_v40, %v1875_v41  ;;  %v5426_v10 = vsel %vm1169_vm4, %v6934_v48, %v5400_v0  ;;  %v1605_v41 = vrot.slane %v1580_v38, 1 }
 0x131   : > { %v5391_v17 = vrot.slane %v1168_v57, 6  ;;  %v5393_v3 = vpop.permute.xlu0 %1408  ;;  %6935 = vst [vmem:[#allocation50_spill] sm:$0xff] %v5426_v10  ;;  %v1858_v40 = vsel %vm1591_vm5, %v1855_v47, %v6760_v21  ;;  %v1460_v36 = vpop.permute.xlu2 %1459  ;;  %v1607_v46 = vrot.slane %v1581_v35, 1  ;;  %v1070_v38 = vmul.f32 %v5304_v6, %v5050_v39 }
 0x132   : > { %v1426_v5 = vmul.f32 %v5393_v3, %v5273_v43 }
 0x133   : > { %6929 = vst [vmem:[#allocation48_spill] sm:$0xff] %v5391_v17  ;;  %v5407_v4 = vsel %vm1169_vm4, %v6932_v24, %v5391_v17  ;;  %v1202_v29 = vmul.f32 %v5391_v17, %v5332_v49  ;;  %v6933_v24 = vrot.slane %v5268_v20, 7  ;;  %v1940_v20 = vadd.f32 %v4879_v9, %v1929_v28 }
 0x134   : > { %v1814_v57 = vmul.f32 %v4837_v30, %v1426_v5  ;;  %v1201_v1 = vmul.f32 %v5407_v4, %v5273_v43  ;;  %v6937_v17 = vrot.slane %v5389_v23, 2 }
 0x135   : > { %v5420_v54 = vsel %vm997_vm3, %v6933_v24, 0.0 }
 0x136   : > { %v1822_v19 = vadd.f32 %v1814_v57, %v1803_v27  ;;  %v4124_v57 = vld [vmem:[%s6829_s9 + $0x2] ss:$0 sm:$0xff]  ;;  %v1912_v47 = vsel %vm928_vm1, %v1909_v61, %v6937_v17  ;;  %v1380_v35 = vmul.f32 %v5400_v0, %v5420_v54 }
 0x137   : > { %v1635_v24 = vmul.f32 %v4124_v57, %v1201_v1  ;;  %v1636_v16 = vmul.f32 %v4124_v57, %v1202_v29  ;;  %v1379_v1 = vmul.f32 %v5426_v10, %v5332_v49  ;;  %v1474_v29 = vrot.slane %v1460_v36, 7 }
 0x138   : > { %v1876_v5 = vadd.f32 %v1858_v40, %v1822_v19  ;;  %v1282_v27 = vpop.permute.xlu1 %1281  ;;  %v6938_v40 = vrot.slane %v5188_v44, 7  ;;  %v1948_v57 = vmax.f32 %v1940_v20, 0.0  ;;  %v1608_v36 = vsel %vm1591_vm5, %v1605_v41, %v1607_v46 }
 0x139   : > { %v5435_v26 = vrot.slane %v1282_v27, 7  ;;  %v5437_v48 = vpop.permute.xlu0 %1061  ;;  %v1661_v21 = vrot.slane %v1636_v16, 2  ;;  %v6939_v10 = vrot.slane %v5249_v12, 1  ;;  %v1763_v20 = vmul.f32 %v4735_v51, %v1380_v35 }
 0x13a   : > { %v1071_v28 = vmul.f32 %v5437_v48, %v5273_v43  ;;  %v1930_v19 = vadd.f32 %v1912_v47, %v1876_v5  ;;  %v1659_v47 = vrot.slane %v1635_v24, 2  ;;  %v1762_v16 = vmul.f32 %v4735_v51, %v1379_v1 }
 0x13b   : > { %6936 = vst [vmem:[#allocation51_spill] sm:$0xff] %v5435_v26  ;;  %v5454_v27 = vsel %vm997_vm3, %v6938_v40, %v5435_v26  ;;  %v1315_v39 = vmul.f32 %v5435_v26, %v5420_v54  ;;  %v1606_v0 = vsel %vm1591_vm5, %v6939_v10, %v1605_v41  ;;  %v6940_v46 = vrot.slane %v5278_v50, 7 }
 0x13c   : > { %v1314_v61 = vmul.f32 %v5454_v27, %v5332_v49  ;;  %v1569_v17 = vmul.f32 %v4596_v14, %v1071_v28  ;;  %v1941_v5 = vadd.f32 %v4879_v9, %v1930_v19  ;;  %v4125_v14 = vld [vmem:[%s6829_s9] ss:$0 sm:$0xff]  ;;  %v1956_v12 = vmin.f32 %v1948_v57, 6.0 }
 0x13d   : > { %v1709_v40 = vmul.f32 %v4643_v42, %v1315_v39  ;;  %v1568_v28 = vmul.f32 %v4125_v14, %v1070_v38  ;;  %v5476_v19 = vsel %vm997_vm3, %v6940_v46, %v1474_v29  ;;  %v1662_v39 = vsel %vm928_vm1, %v1659_v47, %v1661_v21 }
 0x13e   : > { %v1708_v44 = vmul.f32 %v4643_v42, %v1314_v61  ;;  %v1949_v26 = vmax.f32 %v1941_v5, 0.0  ;;  %v1624_v24 = vadd.f32 %v1608_v36, %v1569_v17  ;;  %v6941_v61 = vrot.slane %v5276_v31, 2 }
 0x13f   : > { %v1623_v35 = vadd.f32 %v1606_v0, %v1568_v28  ;;  %v1734_v1 = vrot.slane %v1709_v40, 1  ;;  %v1788_v36 = vrot.slane %v1763_v20, 2  ;;  %v1786_v0 = vrot.slane %v1762_v16, 2 }
 0x140   : > { %v5478_v42 = vpop.permute.xlu1 %1240  ;;  %v1957_v10 = vmin.f32 %v1949_v26, 6.0  ;;  %v1660_v51 = vsel %vm928_vm1, %v6941_v61, %v1659_v47  ;;  %v1732_v50 = vrot.slane %v1708_v44, 1  ;;  %v1678_v57 = vadd.f32 %v1662_v39, %v1624_v24  ;;  %v5497_v44 = vpop.permute.xlu2 %1418 }
 0x141   : > { %v1250_v41 = vmul.f32 %v5478_v42, %v5332_v49  ;;  %v5483_v38 = vpop.permute.xlu0 %1235  ;;  %v1677_v14 = vadd.f32 %v1660_v51, %v1623_v35  ;;  %v1492_v31 = vmul.f32 %v5476_v19, %v5420_v54  ;;  %v5495_v47 = vmul.f32 0.0, %v1474_v29 }
 0x142   : > { %v1249_v17 = vmul.f32 %v5483_v38, %v5273_v43  ;;  %v1966_v5 = vpack.c.bf16 %v1957_v10, %v1956_v12  ;;  %v1735_v43 = vsel %vm1591_vm5, %v1732_v50, %v1734_v1  ;;  %v6942_v20 = vrot.slane %v5320_v52, 1 }
 0x143   : > { %v1689_v26 = vmul.f32 %v4683_v32, %v1250_v41  ;;  %v1835_v29 = vmul.f32 %v4802_v34, %v1492_v31  ;;  %v1836_v10 = vmul.f32 %v4802_v34, %v5495_v47  ;;  %v1789_v41 = vsel %vm928_vm1, %v1786_v0, %v1788_v36 }
 0x144   : > { %v1688_v21 = vmul.f32 %v4683_v32, %v1249_v17  ;;  %3835 = vmatmul.msk.bf16.gmra.mxu1 %vm1984_vm6, %v1966_v5  ;;  %v1733_v46 = vsel %vm1591_vm5, %v6942_v20, %v1732_v50  ;;  %v1428_v32 = vmul.f32 %v5497_v44, %v5420_v54  ;;  %v6944_v51 = vrot.slane %v5340_v63, 2 }
 0x145   : > { %v1697_v40 = vadd.f32 %v1689_v26, %v1678_v57  ;;  %v6945_v57 = vrot.slane %v5347_v59, 6  ;;  %v1859_v36 = vrot.slane %v1835_v29, 1  ;;  %v1861_v63 = vrot.slane %v1836_v10, 1 }
 0x146   : > { %v1696_v28 = vadd.f32 %v1688_v21, %v1677_v14  ;;  %v1787_v50 = vsel %vm928_vm1, %v6944_v51, %v1786_v0  ;;  %v1816_v17 = vmul.f32 %v4837_v30, %v1428_v32  ;;  %v6948_v32 = vrot.slane %v5389_v23, 2  ;;  %v4113_v23 = vld [vmem:[%s6949_s27] ss:$0 sm:$0xff]  ;;  %s4140_s27 = smov 120  }
 0x147   : > { %v1751_v24 = vadd.f32 %v1735_v43, %v1697_v40  ;;  %v1862_v40 = vsel %vm1591_vm5, %v1859_v36, %v1861_v63  ;;  %v6947_v43 = vrot.slane %v5379_v7, 1 }
 0x148   : > { %v1750_v16 = vadd.f32 %v1733_v46, %v1696_v28  ;;  %v5505_v12 = vpop.permute.xlu1 %1413 }
 0x149   : > { %6943 = vst [vmem:[#allocation52_spill] sm:$0xff] %v5505_v12  ;;  %v1427_v39 = vmul.f32 %v5505_v12, %v5332_v49  ;;  %v1525_v35 = vpop.permute.xlu0 %1524  ;;  %v1805_v52 = vadd.f32 %v1789_v41, %v1751_v24  ;;  %v4000_v49 = vld [vmem:[%s6946_s7] sm:$0xff]  ;;  %v1860_v28 = vsel %vm1591_vm5, %v6947_v43, %v1859_v36  ;;  %s4137_s7 = smov 48  }
 0x14a   : > { %v1539_v61 = vrot.slane %v1525_v35, 6  ;;  %v1804_v5 = vadd.f32 %v1787_v50, %v1750_v16  ;;  %2062 = vmatpush.bf16.msra.mxu2 %v4000_v49 }
 0x14b   : > { %v1815_v1 = vmul.f32 %v4837_v30, %v1427_v39  ;;  %v1824_v21 = vadd.f32 %v1816_v17, %v1805_v52 }
 0x14c   : > { %v5521_v34 = vsel %vm1169_vm4, %v6945_v57, %v1539_v61  ;;  %v5523_v26 = vmul.f32 0.0, %v1539_v61 }
 0x14d   : > { %v1557_v14 = vmul.f32 %v5521_v34, %v5420_v54  ;;  %v1823_v0 = vadd.f32 %v1815_v1, %v1804_v5  ;;  %v1878_v46 = vadd.f32 %v1862_v40, %v1824_v21 }
 0x14e   : > { %v1890_v30 = vmul.f32 %v4810_v33, %v5523_v26 }
 0x14f   : > { %v1889_v59 = vmul.f32 %v4810_v33, %v1557_v14  ;;  %v1877_v20 = vadd.f32 %v1860_v28, %v1823_v0 }
 0x150   : > { %v1915_v31 = vrot.slane %v1890_v30, 2 }
 0x151   : > { %v1913_v24 = vrot.slane %v1889_v59, 2 }
 0x153   : > { %v1916_v54 = vsel %vm928_vm1, %v1913_v24, %v1915_v31  ;;  %v1914_v16 = vsel %vm928_vm1, %v6948_v32, %v1913_v24 }
 0x154   : > { %v1931_v29 = vadd.f32 %v1914_v16, %v1877_v20  ;;  %v1932_v10 = vadd.f32 %v1916_v54, %v1878_v46  ;;  %v5554_v20 = vld [vmem:[%s6950_s0] ss:$0 sm:$0xff]  ;;  %s4143_s0 = smov 40  }
 0x156   : > { %v1942_v33 = vadd.f32 %v4879_v9, %v1931_v29  ;;  %v1943_v41 = vadd.f32 %v4879_v9, %v1932_v10  ;;  %v5560_v29 = vld [vmem:[%s6951_s10 + $0x1] ss:$0 sm:$0xff] }
 0x158   : > { %v1950_v39 = vmax.f32 %v1942_v33, 0.0  ;;  %v1951_v35 = vmax.f32 %v1943_v41, 0.0  ;;  %v5565_v33 = vld [vmem:[%s6951_s10 + $0x2] ss:$0 sm:$0xff] }
 0x15a   : > { %v1958_v7 = vmin.f32 %v1950_v39, 6.0  ;;  %v1959_v52 = vmin.f32 %v1951_v35, 6.0 }
 0x15c   : > { %v1967_v61 = vpack.c.bf16 %v1959_v52, %v1958_v7  ;;  %v2231_v7 = vmul.f32 %v5560_v29, %v4552_v53 }
 0x15e   : > { %3836 = vmatmul.msk.bf16.gmra.mxu1 %vm1984_vm6, %v1967_v61  ;;  %v2249_v53 = vrot.slane %v2231_v7, 1 }
 0x161   : > { %v2006_v51 = vpop.f32.mrf.mxu1 }
 0x162   : > { %v2007_v1 = vadd.f32 %v4113_v23, %v2006_v51 }
 0x169   : > { %v2008_v50 = vpop.f32.mrf.mxu1 }
 0x16a   : > { %v2009_v17 = vadd.f32 %v4113_v23, %v2008_v50 }
 0x16c   : > { %v2028_v5 = vpack.c.bf16 %v2009_v17, %v2007_v1  ;;  %v5582_v17 = vld [vmem:[%s6951_s10] ss:$0 sm:$0xff] }
 0x16e   : > { %3841 = vmatmul.msk.bf16.vlgmr.msra.gmra.mxu2 %vm2042_vm7, %v2028_v5 }
 0x191   : > { %v2011_v9 = vpop.f32.mrf.mxu1 }
 0x192   : > { %v2012_v49 = vadd.f32 %v4113_v23, %v2011_v9 }
 0x199   : > { %v2013_v57 = vpop.f32.mrf.mxu1 }
 0x19a   : > { %v2014_v36 = vadd.f32 %v4113_v23, %v2013_v57 }
 0x19c   : > { %v2029_v63 = vpack.c.bf16 %v2014_v36, %v2012_v49 }
 0x19e   : > { %3842 = vmatmul.msk.bf16.gmra.mxu2 %vm2042_vm7, %v2029_v63  ;;  %v5592_v63 = vld [vmem:[%s6951_s10 + $0x4] ss:$0 sm:$0xff] }
 0x1c1   : > { %v2016_v14 = vpop.f32.mrf.mxu1 }
 0x1c2   : > { %v2017_v0 = vadd.f32 %v4113_v23, %v2016_v14 }
 0x1c9   : > { %v2018_v21 = vpop.f32.mrf.mxu1 }
 0x1ca   : > { %v2019_v30 = vadd.f32 %v4113_v23, %v2018_v21  ;;  %v5598_v21 = vld [vmem:[%s6951_s10 + $0x3] ss:$0 sm:$0xff] }
 0x1cc   : > { %v2030_v59 = vpack.c.bf16 %v2019_v30, %v2017_v0 }
 0x1ce   : > { %3843 = vmatmul.msk.bf16.gmra.mxu2 %vm2042_vm7, %v2030_v59  ;;  %v5610_v59 = vld [vmem:[%s6951_s10 + $0x5] ss:$0 sm:$0xff] }
 0x1db   : > { %v2021_v31 = vpop.f32.mrf.mxu1 }
 0x1dc   : > { %v2022_v43 = vadd.f32 %v4113_v23, %v2021_v31 }
 0x1e3   : > { %v2023_v40 = vpop.f32.mrf.mxu1 }
 0x1e4   : > { %v2024_v28 = vadd.f32 %v4113_v23, %v2023_v40  ;;  %v2285_v23 = vmul.f32 %v5565_v33, %v4559_v55  ;;  %v2220_v55 = vmul.f32 %v5582_v17, %v4599_v15  ;;  %v6953_v40 = vld [vmem:[#allocation8_spill] sm:$0xff] }
 0x1e6   : > { %v2031_v24 = vpack.c.bf16 %v2024_v28, %v2022_v43  ;;  %v2303_v57 = vrot.slane %v2285_v23, 2  ;;  %v6954_v28 = vld [vmem:[#allocation11_spill] sm:$0xff] }
 0x1e8   : > { %3844 = vmatmul.msk.bf16.gmra.mxu2 %vm2042_vm7, %v2031_v24 }
 0x1f1   : > { %v2064_v46 = vpop.f32.mrf.mxu2 }
 0x1f2   : > { %v2065_v54 = vadd.f32 %v5554_v20, %v2064_v46 }
 0x1f4   : > { %v2084_v32 = vmax.f32 %v2065_v54, 0.0 }
 0x1f6   : > { %v2092_v16 = vmin.f32 %v2084_v32, 6.0 }
 0x1f8   : > { %v2118_v10 = vrot.slane %v2092_v16, 7 }
 0x1f9   : > { %v2066_v41 = vpop.f32.mrf.mxu2 }
 0x1fa   : > { %v2142_v39 = vsel %vm997_vm3, 0.0, %v2118_v10  ;;  %v2067_v35 = vadd.f32 %v5554_v20, %v2066_v41 }
 0x1fb   : > { %v2151_v52 = vmul.f32 %v2142_v39, %v4533_v45  ;;  %v2159_v61 = vmul.f32 %v2142_v39, %v4606_v22  ;;  %v2175_v36 = vmul.f32 %v2142_v39, %v4591_v13  ;;  %v2167_v14 = vmul.f32 %v2142_v39, %v4472_v11  ;;  %v6952_v13 = vld [vmem:[#allocation7_spill] sm:$0xff] }
 0x1fc   : > { %v2085_v51 = vmax.f32 %v2067_v35, 0.0  ;;  %v2184_v30 = vmul.f32 %v2142_v39, %v6952_v13 }
 0x1fd   : > { %v2232_v50 = vmul.f32 %v5560_v29, %v2151_v52  ;;  %v5577_v1 = vmul.f32 %v5565_v33, %v2159_v61  ;;  %v2358_v31 = vmul.f32 %v5592_v63, %v2175_v36  ;;  %v2339_v46 = vmul.f32 %v5598_v21, %v2167_v14  ;;  %v5630_v61 = vld [vmem:[%s6951_s10 + $0x6] ss:$0 sm:$0xff] }
 0x1fe   : > { %v2093_v5 = vmin.f32 %v2085_v51, 6.0  ;;  %v2412_v32 = vmul.f32 %v5610_v59, %v2184_v30  ;;  %v6955_v51 = vld [vmem:[#allocation20_spill] sm:$0xff] }
 0x1ff   : > { %v2250_v9 = vrot.slane %v2232_v50, 1  ;;  %v2304_v45 = vrot.slane %v5577_v1, 2  ;;  %v2376_v35 = vrot.slane %v2358_v31, 1 }
 0x200   : > { %v2119_v22 = vrot.slane %v2093_v5, 7  ;;  %v2430_v50 = vrot.slane %v2412_v32, 2 }
 0x201   : > { %v2251_v49 = vsel %vm1591_vm5, %v2249_v53, %v2250_v9  ;;  %v2305_v15 = vsel %vm928_vm1, %v2303_v57, %v2304_v45 }
 0x202   : > { %v5601_v0 = vsel %vm997_vm3, %v2118_v10, %v2119_v22  ;;  %v2274_v11 = vadd.f32 %v2251_v49, %v2220_v55 }
 0x203   : > { %v2176_v43 = vmul.f32 %v5601_v0, %v6953_v40  ;;  %v2185_v24 = vmul.f32 %v5601_v0, %v6954_v28  ;;  %v2193_v23 = vmul.f32 %v5601_v0, %v6955_v51  ;;  %v6957_v28 = vld [vmem:[#allocation6_spill] sm:$0xff] }
 0x204   : > { %v2328_v54 = vadd.f32 %v2305_v15, %v2274_v11  ;;  %v6956_v15 = vld [vmem:[#allocation4_spill] sm:$0xff] }
 0x205   : > { %v5620_v16 = vmul.f32 %v5592_v63, %v2176_v43  ;;  %v5623_v10 = vmul.f32 %v5610_v59, %v2185_v24  ;;  %v2466_v55 = vmul.f32 %v5630_v61, %v2193_v23  ;;  %v2152_v13 = vmul.f32 %v5601_v0, %v6956_v15 }
 0x206   : > { %v2347_v41 = vadd.f32 %v2339_v46, %v2328_v54  ;;  %v2160_v24 = vmul.f32 %v5601_v0, %v6957_v28 }
 0x207   : > { %v2377_v7 = vrot.slane %v5620_v16, 1  ;;  %v6767_v52 = vrot.slane %v5623_v10, 2  ;;  %v5645_v40 = vmul.f32 %v5560_v29, %v2152_v13 }
 0x208   : > { %v5656_v23 = vmul.f32 %v5565_v33, %v2160_v24  ;;  %v6963_v24 = vld [vmem:[#allocation15_spill] sm:$0xff] }
 0x209   : > { %v2378_v5 = vsel %vm1591_vm5, %v2376_v35, %v2377_v7  ;;  %v2432_v57 = vsel %vm928_vm1, %v2430_v50, %v6767_v52  ;;  %v6766_v16 = vrot.slane %v5645_v40, 1  ;;  %v6959_v50 = vld [vmem:[#allocation9_spill] sm:$0xff] }
 0x20a   : > { %v2401_v53 = vadd.f32 %v2378_v5, %v2347_v41  ;;  %v6958_v41 = vld [vmem:[#allocation3_spill] sm:$0xff] }
 0x20b   : > { %v2144_v35 = vmul.f32 %v2142_v39, %v6958_v41 }
 0x20c   : > { %v2455_v49 = vadd.f32 %v2432_v57, %v2401_v53 }
 0x20d   : > { %v2221_v57 = vmul.f32 %v5582_v17, %v2144_v35 }
 0x20e   : > { %v5639_v36 = vadd.f32 %v2466_v55, %v2455_v49  ;;  %v6960_v55 = vld [vmem:[#allocation13_spill] sm:$0xff] }
 0x221   : > { %v2069_v14 = vpop.f32.mrf.mxu2 }
 0x222   : > { %v2070_v30 = vadd.f32 %v5554_v20, %v2069_v14  ;;  %v6764_v14 = vrot.slane %v5656_v23, 2 }
 0x224   : > { %v2086_v11 = vmax.f32 %v2070_v30, 0.0 }
 0x226   : > { %v2094_v31 = vmin.f32 %v2086_v11, 6.0  ;;  %v6961_v11 = vld [vmem:[#allocation5_spill] sm:$0xff] }
 0x228   : > { %v2121_v43 = vrot.slane %v2094_v31, 7  ;;  %v6962_v31 = vld [vmem:[#allocation12_spill] sm:$0xff] }
 0x229   : > { %v2071_v46 = vpop.f32.mrf.mxu2  ;;  %v2201_v28 = vmul.f32 %v5601_v0, %v6962_v31  ;;  %v6967_v31 = vld [vmem:[#allocation18_spill] sm:$0xff] }
 0x22a   : > { %v5650_v54 = vsel %vm997_vm3, %v2119_v22, %v2121_v43  ;;  %v2072_v32 = vadd.f32 %v5554_v20, %v2071_v46  ;;  %v2253_v22 = vsel %vm1591_vm5, %v2250_v9, %v6766_v16  ;;  %v2168_v9 = vmul.f32 %v5601_v0, %v6961_v11  ;;  %v5707_v11 = vld [vmem:[%s6951_s10 + $0x8] ss:$0 sm:$0xff] }
 0x22b   : > { %v2177_v5 = vmul.f32 %v5650_v54, %v6959_v50  ;;  %v2186_v39 = vmul.f32 %v5650_v54, %v6960_v55  ;;  %v2275_v13 = vadd.f32 %v2253_v22, %v2221_v57  ;;  %v2202_v46 = vmul.f32 %v5650_v54, %v6963_v24  ;;  %v6966_v57 = vld [vmem:[#allocation14_spill] sm:$0xff] }
 0x22c   : > { %v2087_v51 = vmax.f32 %v2072_v32, 0.0  ;;  %v6964_v32 = vld [vmem:[#allocation17_spill] sm:$0xff]  ;;  %v2209_v55 = vmul.f32 %v5601_v0, %v6966_v57  ;;  %v2340_v24 = vmul.f32 %v5598_v21, %v2168_v9 }
 0x22d   : > { %v5671_v15 = vmul.f32 %v5592_v63, %v2177_v5  ;;  %v5687_v35 = vmul.f32 %v5610_v59, %v2186_v39  ;;  %v5699_v5 = vld [vmem:[%s6951_s10 + $0x7] ss:$0 sm:$0xff] }
 0x22e   : > { %v5660_v53 = vmin.f32 %v2087_v51, 6.0  ;;  %v6965_v51 = vld [vmem:[#allocation16_spill] sm:$0xff] }
 0x22f   : > { %v2210_v50 = vmul.f32 %v5650_v54, %v6965_v51  ;;  %v6768_v22 = vrot.slane %v5671_v15, 1  ;;  %v2486_v51 = vmul.f32 %v5699_v5, %v2202_v46  ;;  %v6769_v57 = vrot.slane %v5687_v35, 2 }
 0x230   : > { %v6765_v49 = vrot.slane %v5660_v53, 7 }
 0x231   : > { %v2504_v52 = vrot.slane %v2486_v51, 1 }
 0x232   : > { %v5676_v30 = vsel %vm997_vm3, %v2121_v43, %v6765_v49  ;;  %v2307_v43 = vsel %vm928_vm1, %v2304_v45, %v6764_v14 }
 0x233   : > { %v2203_v41 = vmul.f32 %v5676_v30, %v6964_v32  ;;  %v2329_v39 = vadd.f32 %v2307_v43, %v2275_v13  ;;  %v2211_v1 = vmul.f32 %v5676_v30, %v6967_v31  ;;  %v2485_v32 = vmul.f32 %v5699_v5, %v2201_v28  ;;  %v6968_v43 = vld [vmem:[#allocation19_spill] sm:$0xff] }
 0x234   : > { %v2540_v13 = vmul.f32 %v5707_v11, %v2210_v50  ;;  %v2194_v14 = vmul.f32 %v5650_v54, %v6968_v43  ;;  %v2380_v31 = vsel %vm1591_vm5, %v2377_v7, %v6768_v22  ;;  %v6970_v50 = vrot.slane %v5623_v10, 2 }
 0x235   : > { %v5712_v45 = vmul.f32 %v5699_v5, %v2203_v41  ;;  %v2348_v49 = vadd.f32 %v2340_v24, %v2329_v39  ;;  %v2539_v41 = vmul.f32 %v5707_v11, %v2209_v55  ;;  %v5727_v28 = vmul.f32 %v5707_v11, %v2211_v1  ;;  %v5739_v1 = vld [vmem:[%s6675_s11] ss:$0 sm:$0xff] }
 0x236   : > { %v2503_v16 = vrot.slane %v2485_v32, 1  ;;  %v2434_v39 = vsel %vm928_vm1, %v6970_v50, %v6769_v57  ;;  %v2558_v24 = vrot.slane %v2540_v13, 2  ;;  %v2467_v7 = vmul.f32 %v5630_v61, %v2194_v14 }
 0x237   : > { %v6772_v9 = vrot.slane %v5712_v45, 1  ;;  %6969 = vst [vmem:[#allocation7_spill] sm:$0xff] %v5727_v28  ;;  %v2402_v46 = vadd.f32 %v2380_v31, %v2348_v49  ;;  %v2557_v22 = vrot.slane %v2539_v41, 2  ;;  %v6771_v49 = vrot.slane %v5727_v28, 2 }
 0x238   : > { %v2505_v55 = vsel %vm1591_vm5, %v2503_v16, %v2504_v52 }
 0x239   : > { %v2456_v43 = vadd.f32 %v2434_v39, %v2402_v46  ;;  %v2507_v10 = vsel %vm1591_vm5, %v2504_v52, %v6772_v9  ;;  %v2528_v32 = vadd.f32 %v2505_v55, %v5639_v36  ;;  %v2559_v13 = vsel %vm928_vm1, %v2557_v22, %v2558_v24  ;;  %v6973_v36 = vld [vmem:[#allocation22_spill] sm:$0xff] }
 0x23a   : > { %v2561_v16 = vsel %vm928_vm1, %v2558_v24, %v6771_v49  ;;  %v2153_v22 = vmul.f32 %v5650_v54, %v6973_v36  ;;  %v6974_v24 = vld [vmem:[#allocation26_spill] sm:$0xff] }
 0x23b   : > { %v2475_v51 = vadd.f32 %v2467_v7, %v2456_v43  ;;  %v2582_v14 = vadd.f32 %v2559_v13, %v2528_v32  ;;  %v2161_v55 = vmul.f32 %v5650_v54, %v6974_v24  ;;  %v6975_v32 = vld [vmem:[#allocation23_spill] sm:$0xff] }
 0x23c   : > { %v2234_v7 = vmul.f32 %v5560_v29, %v2153_v22  ;;  %v6978_v22 = vrot.slane %v5645_v40, 1  ;;  %v6980_v40 = vrot.slane %v5660_v53, 7  ;;  %v5800_v53 = vmul.f32 %v5707_v11, %v5523_v26 }
 0x23d   : > { %v2529_v31 = vadd.f32 %v2507_v10, %v2475_v51  ;;  %v2593_v41 = vadd.f32 %v5739_v1, %v2582_v14  ;;  %v2154_v51 = vmul.f32 %v5676_v30, %v6975_v32  ;;  %v6979_v32 = vld [vmem:[#allocation25_spill] sm:$0xff] }
 0x23e   : > { %v2254_v14 = vrot.slane %v2234_v7, 1  ;;  %6983 = vst [vmem:[#allocation20_spill] sm:$0xff] %v5800_v53 }
 0x23f   : > { %v2583_v46 = vadd.f32 %v2561_v16, %v2529_v31  ;;  %v2601_v39 = vmax.f32 %v2593_v41, 0.0  ;;  %v2288_v41 = vmul.f32 %v5565_v33, %v2161_v55  ;;  %v2235_v36 = vmul.f32 %v5560_v29, %v2154_v51 }
 0x240   : > { %v2255_v24 = vsel %vm1591_vm5, %v6978_v22, %v2254_v14 }
 0x241   : > { %v2594_v50 = vadd.f32 %v5739_v1, %v2583_v46  ;;  %v5752_v12 = vmin.f32 %v2601_v39, 6.0  ;;  %v6977_v46 = vld [vmem:[#allocation28_spill] sm:$0xff]  ;;  %v2256_v22 = vrot.slane %v2235_v36, 1  ;;  %v6985_v36 = vrot.slane %v5656_v23, 2  ;;  %v6989_v23 = vld [vmem:[#allocation30_spill] sm:$0xff] }
 0x243   : > { %v2602_v57 = vmax.f32 %v2594_v50, 0.0  ;;  %6971 = vst [vmem:[#allocation8_spill] sm:$0xff] %v5752_v12  ;;  %v2178_v50 = vmul.f32 %v5676_v30, %v6977_v46 }
 0x245   : > { %v5754_v52 = vmin.f32 %v2602_v57, 6.0  ;;  %v6976_v57 = vld [vmem:[#allocation21_spill] sm:$0xff]  ;;  %v5779_v55 = vmul.f32 %v5592_v63, %v2178_v50 }
 0x246   : > { %v2145_v31 = vmul.f32 %v5601_v0, %v6976_v57  ;;  %v2308_v0 = vrot.slane %v2288_v41, 2 }
 0x247   : > { %6972 = vst [vmem:[#allocation11_spill] sm:$0xff] %v5754_v52 }
 0x248   : > { %v2222_v7 = vmul.f32 %v5582_v17, %v2145_v31 }
 0x24a   : > { %v2276_v57 = vadd.f32 %v2255_v24, %v2222_v7  ;;  %v6982_v24 = vld [vmem:[#allocation27_spill] sm:$0xff]  ;;  %v6984_v7 = vld [vmem:[#allocation24_spill] sm:$0xff] }
 0x251   : > { %v2074_v10 = vpop.f32.mrf.mxu2 }
 0x252   : > { %v2075_v13 = vadd.f32 %v5554_v20, %v2074_v10  ;;  %v2162_v10 = vmul.f32 %v5676_v30, %v6979_v32 }
 0x254   : > { %v2088_v16 = vmax.f32 %v2075_v13, 0.0  ;;  %v2289_v41 = vmul.f32 %v5565_v33, %v2162_v10 }
 0x256   : > { %v2096_v39 = vmin.f32 %v2088_v16, 6.0  ;;  %v5783_v16 = vmul.f32 %v5699_v5, %v5495_v47  ;;  %v2187_v47 = vmul.f32 %v5676_v30, %v6982_v24  ;;  %v6986_v24 = vld [vmem:[#allocation29_spill] sm:$0xff] }
 0x258   : > { %v2125_v43 = vrot.slane %v2096_v39, 7  ;;  %v6981_v39 = vld [vmem:[#allocation10_spill] sm:$0xff] }
 0x259   : > { %v2076_v13 = vpop.f32.mrf.mxu2  ;;  %v2146_v50 = vmul.f32 %v5650_v54, %v6981_v39  ;;  %v2381_v39 = vrot.slane %v5779_v55, 1 }
 0x25a   : > { %v5788_v51 = vsel %vm997_vm3, %v6980_v40, %v2125_v43  ;;  %v2077_v46 = vadd.f32 %v5554_v20, %v2076_v13  ;;  %v2169_v13 = vmul.f32 %v5650_v54, %v6984_v7  ;;  %v2257_v54 = vsel %vm1591_vm5, %v2254_v14, %v2256_v22 }
 0x25b   : > { %v2155_v31 = vmul.f32 %v5788_v51, %v5175_v56  ;;  %v2309_v56 = vsel %vm928_vm1, %v6985_v36, %v2308_v0  ;;  %v2163_v26 = vmul.f32 %v5788_v51, %v5181_v25  ;;  %v2310_v7 = vrot.slane %v2289_v41, 2 }
 0x25c   : > { %v2089_v32 = vmax.f32 %v2077_v46, 0.0  ;;  %v2330_v40 = vadd.f32 %v2309_v56, %v2276_v57  ;;  %v2179_v46 = vmul.f32 %v5788_v51, %v6986_v24  ;;  %v2223_v36 = vmul.f32 %v5582_v17, %v2146_v50 }
 0x25d   : > { %v5808_v10 = vmul.f32 %v5560_v29, %v2155_v31  ;;  %v5821_v31 = vmul.f32 %v5610_v59, %v2187_v47  ;;  %v2341_v25 = vmul.f32 %v5598_v21, %v2169_v13  ;;  %v2147_v56 = vmul.f32 %v5676_v30, %v5160_v58 }
 0x25e   : > { %v5811_v49 = vmin.f32 %v2089_v32, 6.0  ;;  %v2170_v14 = vmul.f32 %v5676_v30, %v4832_v37  ;;  %v2277_v41 = vadd.f32 %v2257_v54, %v2223_v36  ;;  %v6987_v50 = vrot.slane %v5671_v15, 1  ;;  %v6988_v36 = vld [vmem:[#allocation37_spill] sm:$0xff] }
 0x25f   : > { %v2258_v32 = vrot.slane %v5808_v10, 1  ;;  %v5838_v57 = vmul.f32 %v5565_v33, %v2163_v26  ;;  %v2362_v13 = vmul.f32 %v5592_v63, %v2179_v46  ;;  %v2349_v10 = vadd.f32 %v2341_v25, %v2330_v40  ;;  %v6990_v25 = vld [vmem:[#allocation40_spill] sm:$0xff] }
 0x260   : > { %v6773_v55 = vrot.slane %v5811_v49, 7  ;;  %v2382_v47 = vsel %vm1591_vm5, %v6987_v50, %v2381_v39  ;;  %v2195_v37 = vmul.f32 %v5676_v30, %v5129_v8  ;;  %v2311_v54 = vsel %vm928_vm1, %v2308_v0, %v2310_v7 }
 0x261   : > { %v2435_v15 = vrot.slane %v5821_v31, 2  ;;  %v2259_v26 = vsel %vm1591_vm5, %v2256_v22, %v2258_v32  ;;  %v2403_v9 = vadd.f32 %v2382_v47, %v2349_v10  ;;  %v2331_v40 = vadd.f32 %v2311_v54, %v2277_v41  ;;  %v6991_v47 = vld [vmem:[#allocation39_spill] sm:$0xff] }
 0x262   : > { %v2128_v24 = vsel %vm997_vm3, %v2125_v43, %v6773_v55  ;;  %v2188_v43 = vmul.f32 %v5788_v51, %v6989_v23  ;;  %v2342_v8 = vmul.f32 %v5598_v21, %v2170_v14  ;;  %v2148_v30 = vmul.f32 %v5788_v51, %v5008_v18  ;;  %v6993_v14 = vld [vmem:[#allocation38_spill] sm:$0xff] }
 0x263   : > { %v2156_v58 = vmul.f32 %v2128_v24, %v5207_v2  ;;  %v2180_v50 = vmul.f32 %v2128_v24, %v6988_v36  ;;  %v2224_v2 = vmul.f32 %v5582_v17, %v2147_v56  ;;  %v2312_v0 = vrot.slane %v5838_v57, 2 }
 0x264   : > { %v2383_v23 = vrot.slane %v2362_v13, 1  ;;  %v2164_v22 = vmul.f32 %v2128_v24, %v6990_v25  ;;  %v2171_v10 = vmul.f32 %v5788_v51, %v6991_v47  ;;  %v6992_v56 = vrot.slane %v5687_v35, 2  ;;  %v6995_v47 = vld [vmem:[#allocation31_spill] sm:$0xff] }
 0x265   : > { %v5851_v46 = vmul.f32 %v5560_v29, %v2156_v58  ;;  %v5859_v31 = vmul.f32 %v5592_v63, %v2180_v50  ;;  %v2278_v58 = vadd.f32 %v2259_v26, %v2224_v2  ;;  %v2189_v54 = vmul.f32 %v2128_v24, %v6993_v14  ;;  %v6994_v50 = vld [vmem:[#allocation35_spill] sm:$0xff]  ;;  %v6996_v14 = vld [vmem:[#allocation32_spill] sm:$0xff] }
 0x266   : > { %v2436_v41 = vsel %vm928_vm1, %v6992_v56, %v2435_v15  ;;  %v2416_v18 = vmul.f32 %v5610_v59, %v2188_v43  ;;  %v5872_v57 = vmul.f32 %v5630_v61, %v2195_v37  ;;  %v2196_v25 = vmul.f32 %v5788_v51, %v6994_v50 }
 0x267   : > { %v5869_v36 = vadd.f32 %v2436_v41, %v2403_v9  ;;  %v2204_v26 = vmul.f32 %v5788_v51, %v6995_v47  ;;  %v2350_v35 = vadd.f32 %v2342_v8, %v2331_v40  ;;  %v2225_v2 = vmul.f32 %v5582_v17, %v2148_v30 }
 0x268   : > { %v2313_v56 = vsel %vm928_vm1, %v2310_v7, %v2312_v0  ;;  %v2384_v9 = vsel %vm1591_vm5, %v2381_v39, %v2383_v23  ;;  %v5884_v37 = vmul.f32 %v5565_v33, %v2164_v22  ;;  %v2205_v55 = vmul.f32 %v2128_v24, %v6996_v14  ;;  %v6997_v7 = vld [vmem:[#allocation33_spill] sm:$0xff] }
 0x269   : > { %v2332_v13 = vadd.f32 %v2313_v56, %v2278_v58  ;;  %v2343_v50 = vmul.f32 %v5598_v21, %v2171_v10  ;;  %v5890_v40 = vmul.f32 %v5610_v59, %v2189_v54  ;;  %v2437_v8 = vrot.slane %v2416_v18, 2  ;;  %v6999_v10 = vld [vmem:[#allocation36_spill] sm:$0xff] }
 0x26a   : > { %v2212_v30 = vmul.f32 %v5788_v51, %v6997_v7  ;;  %v2149_v39 = vmul.f32 %v2128_v24, %v5304_v6  ;;  %v6998_v43 = vrot.slane %v5851_v46, 1  ;;  %v2404_v12 = vadd.f32 %v2384_v9, %v2350_v35  ;;  %v7002_v7 = vld [vmem:[#allocation34_spill] sm:$0xff] }
 0x26b   : > { %v2079_v41 = vpop.f32.mrf.mxu2  ;;  %v2488_v58 = vmul.f32 %v5699_v5, %v2204_v26  ;;  %v2172_v14 = vmul.f32 %v2128_v24, %v6999_v10  ;;  %v7001_v54 = vrot.slane %v5859_v31, 1  ;;  %v2314_v51 = vrot.slane %v5884_v37, 2 }
 0x26c   : > { %v2080_v47 = vadd.f32 %v5554_v20, %v2079_v41  ;;  %v2261_v22 = vsel %vm1591_vm5, %v2258_v32, %v6998_v43  ;;  %v7000_v41 = vld [vmem:[#allocation41_spill] sm:$0xff]  ;;  %v2213_v6 = vmul.f32 %v2128_v24, %v7002_v7  ;;  %v2351_v28 = vadd.f32 %v2343_v50, %v2332_v13 }
 0x26d   : > { %v2197_v52 = vmul.f32 %v2128_v24, %v7000_v41  ;;  %v2386_v18 = vsel %vm1591_vm5, %v2383_v23, %v7001_v54  ;;  %v5907_v53 = vmul.f32 %v5699_v5, %v2205_v55  ;;  %v2279_v35 = vadd.f32 %v2261_v22, %v2225_v2 }
 0x26e   : > { %v2090_v56 = vmax.f32 %v2080_v47, 0.0  ;;  %v2439_v26 = vrot.slane %v5890_v40, 2  ;;  %v2438_v43 = vsel %vm928_vm1, %v2435_v15, %v2437_v8  ;;  %v2405_v9 = vadd.f32 %v2386_v18, %v2351_v28  ;;  %v7004_v18 = vld [vmem:[#allocation42_spill] sm:$0xff] }
 0x26f   : > { %v2458_v47 = vadd.f32 %v2438_v43, %v2404_v12  ;;  %v2469_v10 = vmul.f32 %v5630_v61, %v2196_v25  ;;  %v5913_v23 = vmul.f32 %v5707_v11, %v2212_v30  ;;  %v2226_v24 = vmul.f32 %v5582_v17, %v2149_v39 }
 0x270   : > { %v2098_v32 = vmin.f32 %v2090_v56, 6.0  ;;  %v2344_v13 = vmul.f32 %v5598_v21, %v2172_v14  ;;  %v2508_v55 = vrot.slane %v2488_v58, 1  ;;  %v2315_v2 = vsel %vm928_vm1, %v2312_v0, %v2314_v51 }
 0x271   : > { %v2470_v15 = vmul.f32 %v5630_v61, %v2197_v52  ;;  %v2510_v12 = vrot.slane %v5907_v53, 1  ;;  %v5923_v28 = vmul.f32 %v5707_v11, %v2213_v6  ;;  %v7003_v25 = vrot.slane %v5811_v49, 7  ;;  %v7005_v49 = vld [vmem:[#allocation43_spill] sm:$0xff] }
 0x272   : > { %v2129_v41 = vrot.slane %v2098_v32, 7  ;;  %v2333_v22 = vadd.f32 %v2315_v2, %v2279_v35  ;;  %v2440_v58 = vsel %vm928_vm1, %v2437_v8, %v2439_v26  ;;  %v5934_v14 = vadd.f32 %v2469_v10, %v2458_v47 }
 0x273   : > { %v2081_v50 = vpop.f32.mrf.mxu2  ;;  %v2459_v56 = vadd.f32 %v2440_v58, %v2405_v9  ;;  %v7006_v32 = vrot.slane %v5712_v45, 1  ;;  %v7008_v58 = vld [vmem:[#allocation44_spill] sm:$0xff]  ;;  %v2562_v53 = vrot.slane %v5913_v23, 2 }
 0x274   : > { %v2130_v30 = vsel %vm997_vm3, %v7003_v25, %v2129_v41  ;;  %v2082_v39 = vadd.f32 %v5554_v20, %v2081_v50  ;;  %v7007_v50 = vld [vmem:[#allocation45_spill] sm:$0xff]  ;;  %v5953_v25 = vadd.f32 %v2344_v13, %v2333_v22 }
 0x275   : > { %v2157_v0 = vmul.f32 %v2130_v30, %v5368_v60  ;;  %v2165_v52 = vmul.f32 %v2130_v30, %v5407_v4  ;;  %v2181_v7 = vmul.f32 %v2130_v30, %v7004_v18  ;;  %v2190_v6 = vmul.f32 %v2130_v30, %v7005_v49 }
 0x276   : > { %v2091_v54 = vmax.f32 %v2082_v39, 0.0  ;;  %v5941_v20 = vsel %vm1591_vm5, %v7006_v32, %v2508_v55  ;;  %v2150_v35 = vmul.f32 %v2130_v30, %v5437_v48  ;;  %v2173_v8 = vmul.f32 %v2130_v30, %v5483_v38 }
 0x277   : > { %v2238_v60 = vmul.f32 %v5560_v29, %v2157_v0  ;;  %v2292_v4 = vmul.f32 %v5565_v33, %v2165_v52  ;;  %v2364_v9 = vmul.f32 %v5592_v63, %v2181_v7  ;;  %v5949_v47 = vmul.f32 %v5610_v59, %v2190_v6 }
 0x278   : > { %v2099_v43 = vmin.f32 %v2091_v54, 6.0  ;;  %v2198_v10 = vmul.f32 %v2130_v30, %v5393_v3  ;;  %v2206_v2 = vmul.f32 %v2130_v30, %v7007_v50  ;;  %v5958_v48 = vsel %vm1591_vm5, %v2508_v55, %v2510_v12 }
 0x279   : > { %v2262_v45 = vrot.slane %v2238_v60, 1  ;;  %v2316_v39 = vrot.slane %v2292_v4, 2  ;;  %v2214_v0 = vmul.f32 %v2130_v30, %v7008_v58  ;;  %v5961_v52 = vadd.f32 %v2470_v15, %v2459_v56  ;;  %v7010_v30 = vld [vmem:[#allocation51_spill] sm:$0xff]  ;;  %v7011_v56 = vld [vmem:[#allocation49_spill] sm:$0xff]  ;;  %v7015_v58 = vld [vmem:[#allocation46_spill] sm:$0xff] }
 0x27a   : > { %v2131_v38 = vrot.slane %v2099_v43, 7  ;;  %v2227_v54 = vmul.f32 %v5582_v17, %v2150_v35  ;;  %v7009_v3 = vrot.slane %v5851_v46, 1  ;;  %v2345_v13 = vmul.f32 %v5598_v21, %v2173_v8  ;;  %v7012_v35 = vld [vmem:[#allocation48_spill] sm:$0xff] }
 0x27b   : > { %v2387_v22 = vrot.slane %v2364_v9, 1  ;;  %v2441_v49 = vrot.slane %v5949_v47, 2  ;;  %v5972_v6 = vmul.f32 %v5630_v61, %v2198_v10  ;;  %v2490_v32 = vmul.f32 %v5699_v5, %v2206_v2 }
 0x27c   : > { %v2263_v18 = vsel %vm1591_vm5, %v7009_v3, %v2262_v45  ;;  %v2132_v7 = vsel %vm997_vm3, %v2129_v41, %v2131_v38  ;;  %v2143_v55 = vsel %vm997_vm3, %v2131_v38, 0.0  ;;  %v2317_v41 = vsel %vm928_vm1, %v2314_v51, %v2316_v39  ;;  %v7014_v51 = vld [vmem:[#allocation50_spill] sm:$0xff] }
 0x27d   : > { %v2158_v15 = vmul.f32 %v2132_v7, %v5349_v62  ;;  %v2183_v17 = vmul.f32 %v2143_v55, %v7010_v30  ;;  %v2192_v46 = vmul.f32 %v2143_v55, %v7011_v56  ;;  %v2166_v8 = vmul.f32 %v2132_v7, %v7012_v35 }
 0x27e   : > { %v2280_v60 = vadd.f32 %v2263_v18, %v2226_v24  ;;  %v5983_v4 = vmul.f32 %v5707_v11, %v2214_v0  ;;  %v2208_v43 = vmul.f32 %v2143_v55, %v5476_v19  ;;  %v2182_v9 = vmul.f32 %v2132_v7, %v5454_v27  ;;  %v7016_v27 = vld [vmem:[#allocation47_spill] sm:$0xff] }
 0x27f   : > { %v2239_v62 = vmul.f32 %v5560_v29, %v2158_v15  ;;  %v7013_v47 = vrot.slane %v5859_v31, 1  ;;  %v2200_v50 = vmul.f32 %v2143_v55, %v5497_v44  ;;  %v2216_v24 = vmul.f32 %v2143_v55, %v5521_v34  ;;  %v7017_v55 = vld [vmem:[#allocation52_spill] sm:$0xff] }
 0x280   : > { %v2366_v37 = vmul.f32 %v5592_v63, %v2183_v17  ;;  %v2191_v2 = vmul.f32 %v2132_v7, %v7014_v51  ;;  %v2420_v38 = vmul.f32 %v5610_v59, %v2192_v46  ;;  %v2174_v19 = vmul.f32 %v2132_v7, %v5478_v42 }
 0x281   : > { %v2388_v10 = vsel %vm1591_vm5, %v7013_v47, %v2387_v22  ;;  %v2207_v29 = vmul.f32 %v2132_v7, %v7015_v58  ;;  %v2264_v0 = vrot.slane %v2239_v62, 1  ;;  %v2215_v3 = vmul.f32 %v2132_v7, %v7016_v27 }
 0x282   : > { %v2293_v31 = vmul.f32 %v5565_v33, %v2166_v8  ;;  %v2334_v18 = vadd.f32 %v2317_v41, %v2280_v60  ;;  %v2365_v44 = vmul.f32 %v5592_v63, %v2182_v9  ;;  %v2492_v34 = vmul.f32 %v5699_v5, %v2208_v43 }
 0x283   : > { %v2199_v15 = vmul.f32 %v2132_v7, %v7017_v55  ;;  %v2265_v30 = vsel %vm1591_vm5, %v2262_v45, %v2264_v0  ;;  %v2419_v17 = vmul.f32 %v5610_v59, %v2191_v2  ;;  %v2391_v56 = vrot.slane %v2366_v37, 1 }
 0x284   : > { %v2281_v42 = vadd.f32 %v2265_v30, %v2227_v54  ;;  %v2318_v46 = vrot.slane %v2293_v31, 2  ;;  %v2389_v35 = vrot.slane %v2365_v44, 1  ;;  %v2445_v62 = vrot.slane %v2420_v38, 2  ;;  %v7019_v30 = vld [vmem:[#allocation20_spill] sm:$0xff] }
 0x285   : > { %v2353_v47 = vadd.f32 %v2345_v13, %v2334_v18  ;;  %v2443_v51 = vrot.slane %v2419_v17, 2  ;;  %v2491_v33 = vmul.f32 %v5699_v5, %v2207_v29  ;;  %v2545_v60 = vmul.f32 %v5707_v11, %v2215_v3 }
 0x286   : > { %v2319_v8 = vsel %vm928_vm1, %v2316_v39, %v2318_v46  ;;  %v2390_v63 = vsel %vm1591_vm5, %v2387_v22, %v2389_v35  ;;  %v2546_v7 = vmul.f32 %v5707_v11, %v2216_v24  ;;  %v2346_v59 = vmul.f32 %v5598_v21, %v2174_v19  ;;  %v7021_v46 = vld [vmem:[#allocation7_spill] sm:$0xff] }
 0x287   : > { %v2335_v45 = vadd.f32 %v2319_v8, %v2281_v42  ;;  %v2407_v41 = vadd.f32 %v2390_v63, %v2353_v47  ;;  %v2472_v54 = vmul.f32 %v5630_v61, %v2199_v15  ;;  %v2444_v43 = vsel %vm928_vm1, %v2441_v49, %v2443_v51 }
 0x288   : > { %v2473_v13 = vmul.f32 %v5630_v61, %v2200_v50  ;;  %v2514_v9 = vrot.slane %v2491_v33, 1  ;;  %v2516_v5 = vrot.slane %v2492_v34, 1  ;;  %v2392_v39 = vsel %vm1591_vm5, %v2389_v35, %v2391_v56 }
 0x289   : > { %v2354_v37 = vadd.f32 %v2346_v59, %v2335_v45  ;;  %v2461_v22 = vadd.f32 %v2444_v43, %v2407_v41  ;;  %v2406_v2 = vadd.f32 %v2388_v10, %v5953_v25  ;;  %v2568_v38 = vrot.slane %v2545_v60, 2 }
 0x28a   : > { %v2570_v11 = vrot.slane %v2546_v7, 2  ;;  %v2442_v21 = vsel %vm928_vm1, %v2439_v26, %v2441_v49  ;;  %v2512_v24 = vrot.slane %v2490_v32, 1  ;;  %v2446_v58 = vsel %vm928_vm1, %v2443_v51, %v2445_v62 }
 0x28b   : > { %v2408_v19 = vadd.f32 %v2392_v39, %v2354_v37  ;;  %v2480_v29 = vadd.f32 %v2472_v54, %v2461_v22  ;;  %v2460_v61 = vadd.f32 %v2442_v21, %v2406_v2  ;;  %v2517_v50 = vsel %vm1591_vm5, %v2514_v9, %v2516_v5  ;;  %v7024_v21 = vld [vmem:[#allocation8_spill] sm:$0xff] }
 0x28c   : > { %v2513_v0 = vsel %vm1591_vm5, %v2510_v12, %v2512_v24  ;;  %v2515_v25 = vsel %vm1591_vm5, %v2512_v24, %v2514_v9  ;;  %v2566_v10 = vrot.slane %v5983_v4, 2  ;;  %v2571_v32 = vsel %vm928_vm1, %v2568_v38, %v2570_v11 }
 0x28d   : > { %v2462_v27 = vadd.f32 %v2446_v58, %v2408_v19  ;;  %v2534_v40 = vadd.f32 %v2517_v50, %v2480_v29  ;;  %v2479_v26 = vadd.f32 %v5972_v6, %v2460_v61  ;;  %v2532_v49 = vadd.f32 %v2513_v0, %v5961_v52  ;;  %v4006_v19 = vld [vmem:[%s6677_s13 + $0x20] sm:$0xff]  ;;  %v4005_v58 = vld [vmem:[%s6677_s13 + $0x18] sm:$0xff]  ;;  %v4004_v29 = vld [vmem:[%s6677_s13 + $0x10] sm:$0xff] }
 0x28e   : > { %v2564_v3 = vrot.slane %v5923_v28, 2  ;;  %v2476_v31 = vadd.f32 %v5872_v57, %v5869_v36  ;;  %v2531_v4 = vadd.f32 %v5958_v48, %v5934_v14  ;;  %v7018_v34 = vrot.slane %v5783_v16, 1  ;;  %v4003_v61 = vld [vmem:[%s6677_s13 + $0x8] sm:$0xff]  ;;  %v4002_v50 = vld [vmem:[%s6677_s13] sm:$0xff]  ;;  %v2719_v0 = vld [vmem:[%s6679_s15 + $0x10] sm:$0xff] }
 0x28f   : > { %v2481_v12 = vadd.f32 %v2473_v13, %v2462_v27  ;;  %v2588_v18 = vadd.f32 %v2571_v32, %v2534_v40  ;;  %v2533_v44 = vadd.f32 %v2515_v25, %v2479_v26  ;;  %v2569_v55 = vsel %vm928_vm1, %v2566_v10, %v2568_v38  ;;  %v4007_v38 = vld [vmem:[%s6677_s13 + $0x28] sm:$0xff]  ;;  %v4008_v40 = vld [vmem:[%s6679_s15 + $0x4] sm:$0xf] }
 0x290   : > { %v2519_v6 = vsel %vm1591_vm5, %v2516_v5, %v7018_v34  ;;  %v2567_v52 = vsel %vm928_vm1, %v2564_v3, %v2566_v10  ;;  %v2530_v28 = vadd.f32 %v5941_v20, %v2476_v31  ;;  %v7020_v17 = vrot.slane %v7019_v30, 2  ;;  %v3879_v26 = vld [vmem:[%s6679_s15 + $0x8] sm:$0xf0]  ;;  %v2836_v30 = vpop.permute.xlu0 %2835 }
 0x291   : > { %v2535_v15 = vadd.f32 %v2519_v6, %v2481_v12  ;;  %v2599_v36 = vadd.f32 %v5739_v1, %v2588_v18  ;;  %v2586_v57 = vadd.f32 %v2567_v52, %v2532_v49  ;;  %v2587_v23 = vadd.f32 %v2569_v55, %v2533_v44  ;;  %v3877_v44 = vld [vmem:[%s6679_s15] sm:$0xf]  ;;  %v4017_v6 = vld [vmem:[%s6684_s20 + $0x38] sm:$0xff]  ;;  %v4016_v52 = vld [vmem:[%s6684_s20 + $0x30] sm:$0xff] }
 0x292   : > { %v2573_v56 = vsel %vm928_vm1, %v2570_v11, %v7020_v17  ;;  %v2565_v14 = vsel %vm928_vm1, %v2562_v53, %v2564_v3  ;;  %v7022_v35 = vrot.slane %v7021_v46, 2  ;;  %v7023_v11 = vld [vmem:[#allocation11_spill] sm:$0xff]  ;;  %v2734_v25 = vunpack.c.l.b16 %v2719_v0  ;;  %3347 = vmatpush.bf16.msrb.mxu0 %v4017_v6  ;;  %v2840_v17 = vpop.permute.xlu1 %2839 }
 0x293   : > { %v2589_v16 = vadd.f32 %v2573_v56, %v2535_v15  ;;  %v2598_v48 = vadd.f32 %v5739_v1, %v2587_v23  ;;  %v2585_v42 = vadd.f32 %v2565_v14, %v2531_v4  ;;  %v2607_v47 = vmax.f32 %v2599_v36, 0.0  ;;  %v4009_v4 = vld [vmem:[%s6679_s15 + $0x4] sm:$0xf0]  ;;  %v2856_v14 = vpop.permute.xlu2 %2855 }
 0x294   : > { %v2563_v62 = vsel %vm928_vm1, %v7022_v35, %v2562_v53  ;;  %v2597_v51 = vadd.f32 %v5739_v1, %v2586_v57  ;;  %v7025_v24 = vpack.c.bf16 %v7023_v11, %v7024_v21  ;;  %v2735_v10 = vunpack.c.h.b16 %v2719_v0 }
 0x295   : > { %v2600_v20 = vadd.f32 %v5739_v1, %v2589_v16  ;;  %v2584_v33 = vadd.f32 %v2563_v62, %v2530_v28  ;;  %v2606_v63 = vmax.f32 %v2598_v48, 0.0  ;;  %v2596_v60 = vadd.f32 %v5739_v1, %v2585_v42  ;;  %v4120_v28 = vld [vmem:[%s6678_s14] ss:$0 sm:$0xff] }
 0x296   : > { %v2615_v7 = vmin.f32 %v2607_v47, 6.0  ;;  %v2605_v59 = vmax.f32 %v2597_v51, 0.0  ;;  %v2739_v27 = vpack.c.b16 %v2735_v10, %v2735_v10  ;;  %v2738_v49 = vpack.c.b16 %v2734_v25, %v2734_v25  ;;  %3348 = vmatpush.bf16.msrb.mxu0 %v4016_v52 }
 0x297   : > { %v2608_v8 = vmax.f32 %v2600_v20, 0.0  ;;  %v2595_v41 = vadd.f32 %v5739_v1, %v2584_v33  ;;  %v2614_v43 = vmin.f32 %v2606_v63, 6.0  ;;  %v2604_v13 = vmax.f32 %v2596_v60, 0.0  ;;  %v4001_v1 = vld [vmem:[%s6676_s12] sm:$0xff] }
 0x298   : > { %v2613_v9 = vmin.f32 %v2605_v59, 6.0  ;;  %v2751_v32 = vsel %vm2746_vm9, %v2739_v27, 0  ;;  %v2748_v3 = vsel %vm2746_vm9, %v2738_v49, 0  ;;  %v3882_v31 = vor.u32 %v4008_v40, %v3879_v26  ;;  %v2860_v56 = vpop.permute.xlu0 %2859  ;;  %v2797_v59 = vld [vmem:[%s6682_s18 + $0x10] sm:$0x3] }
 0x299   : > { %v2616_v45 = vmin.f32 %v2608_v8, 6.0  ;;  %v2603_v5 = vmax.f32 %v2595_v41, 0.0  ;;  %v2612_v39 = vmin.f32 %v2604_v13, 6.0  ;;  %2773 = vmatpush.bf16.msrb.mxu1 %v2751_v32  ;;  %v3878_v34 = vor.u32 %v4009_v4, %v3877_v44  ;;  %v4015_v8 = vld [vmem:[%s6684_s20 + $0x28] sm:$0xff]  ;;  %v6130_v41 = vld [vmem:[%s6680_s16] sm:$0x3] }
 0x29a   : > { %v2621_v37 = vpack.c.bf16 %v2614_v43, %v2613_v9  ;;  %v2876_v16 = vpop.permute.xlu1 %2875  ;;  %3349 = vmatpush.bf16.msrb.mxu0 %v4015_v8  ;;  %v6136_v13 = vperm.slane %v2797_v59, 1  ;;  %v6151_v11 = vrot.slane %v2860_v56, 6  ;;  %v6167_v0 = vperm.slane %v2797_v59, 0  ;;  %v6190_v32 = vld [vmem:[%s6682_s18] sm:$0x3] }
 0x29b   : > { %v2622_v54 = vpack.c.bf16 %v2616_v45, %v2615_v7  ;;  %v2611_v22 = vmin.f32 %v2603_v5, 6.0  ;;  %v2880_v42 = vpop.permute.xlu2 %2879  ;;  %v2796_v7 = vld [vmem:[%s6682_s18 + $0xe] sm:$0x3]  ;;  %v2724_v5 = vperm.slane %v6130_v41, 1  ;;  %v2792_v44 = vld [vmem:[%s6682_s18 + $0x6] sm:$0x3] }
 0x29c   : > { %7037 = vst [vmem:[#allocation18_spill] sm:$0xff] %v6167_v0  ;;  %v6778_v4 = vperm.slane %v6130_v41, 0 }
 0x29d   : > { %2636 = vmatpush.bf16.msra.mxu3 %v2622_v54  ;;  %v2620_v2 = vpack.c.bf16 %v2612_v39, %v2611_v22  ;;  %2774 = vmatpush.bf16.msrb.mxu1 %v3882_v31  ;;  %v6132_v54 = vperm.slane %v2796_v7, 1  ;;  %v6143_v39 = vrot.slane %v2836_v30, 7  ;;  %v6145_v22 = vrot.slane %v2876_v16, 4 }
 0x29f   : > { %7031 = vst [vmem:[#allocation5_spill] sm:$0xff] %v6143_v39 }
 0x2a0   : > { %v6114_v48 = vpop.permute.xlu0 %2821  ;;  %7032 = vst [vmem:[#allocation12_spill] sm:$0xff] %v6145_v22 }
 0x2a1   : > { %2637 = vmatpush.bf16.msra.mxu3 %v2621_v37  ;;  %7028 = vst [vmem:[#allocation3_spill] sm:$0xff] %v6114_v48  ;;  %v6141_v37 = vrot.slane %v2840_v17, 7 }
 0x2a2   : > { %v6116_v46 = vpop.permute.xlu1 %2826 }
 0x2a3   : > { %v2896_v62 = vpop.permute.xlu2 %2895  ;;  %v6178_v40 = vsel %vm997_vm3, %v6143_v39, %v6141_v37 }
 0x2a4   : > { %v6173_v27 = vrot.slane %v2896_v62, 3 }
 0x2a5   : > { %2638 = vmatpush.bf16.msra.mxu3 %v2620_v2  ;;  %v6147_v2 = vrot.slane %v2856_v14, 6  ;;  %v6781_v14 = vperm.slane %v6190_v32, 1 }
 0x2a6   : > { %7038 = vst [vmem:[#allocation19_spill] sm:$0xff] %v6173_v27 }
 0x2a7   : > { %7033 = vst [vmem:[#allocation15_spill] sm:$0xff] %v6147_v2  ;;  %v6198_v31 = vsel %vm1169_vm4, %v6147_v2, %v6151_v11 }
 0x2a8   : > { %v2900_v35 = vpop.permute.xlu0 %2899 }
 0x2a9   : > { %2639 = vmatpush.bf16.msra.mxu3 %v7025_v24  ;;  %v6155_v24 = vrot.slane %v2900_v35, 3  ;;  %v6246_v35 = vperm.slane %v2792_v44, 1 }
 0x2aa   : > { %v2916_v20 = vpop.permute.xlu1 %2915 }
 0x2ab   : > { %v2920_v51 = vpop.permute.xlu2 %2919  ;;  %v6153_v21 = vrot.slane %v2916_v20, 2 }
 0x2ac   : > { %3849 = vmatmul.msk.bf16.vlgmr.msra.gmra.mxu3 %vm2628_vm8, %v4001_v1 }
 0x2ad   : > { %2705 = vmatpush.bf16.msrb.mxu3 %v4007_v38  ;;  %v6149_v38 = vrot.slane %v2880_v42, 4  ;;  %7034 = vst [vmem:[#allocation17_spill] sm:$0xff] %v6153_v21 }
 0x2af   : > { %v6185_v49 = vsel %vm2746_vm9, %v6145_v22, %v6149_v38 }
 0x2b0   : > { %v2950_v47 = vpop.permute.xlu0 %2949 }
 0x2b1   : > { %2706 = vmatpush.bf16.msrb.mxu3 %v4006_v19  ;;  %v6157_v19 = vperm.slane %v2796_v7, 0  ;;  %v6259_v7 = vperm.slane %v2792_v44, 0 }
 0x2b2   : > { %v2954_v33 = vpop.permute.xlu1 %2953 }
 0x2b3   : > { %v2956_v60 = vrot.slane %v2954_v33, 7  ;;  %v2969_v1 = vpop.permute.xlu2 %2968  ;;  %7035 = vst [vmem:[#allocation16_spill] sm:$0xff] %v6157_v19 }
 0x2b4   : > { %v6180_v26 = vrot.slane %v2969_v1, 6 }
 0x2b5   : > { %2707 = vmatpush.bf16.msrb.mxu3 %v4005_v58  ;;  %v6134_v43 = vmul.f32 0.0, %v2956_v60 }
 0x2b7   : > { %7029 = vst [vmem:[#allocation9_spill] sm:$0xff] %v6134_v43  ;;  %v6161_v58 = vmul.f32 %v6132_v54, %v6134_v43  ;;  %v6219_v6 = vmul.f32 %v6157_v19, %v6134_v43 }
 0x2b8   : > { %v2973_v63 = vpop.permute.xlu0 %2972 }
 0x2b9   : > { %2708 = vmatpush.bf16.msrb.mxu3 %v4004_v29  ;;  %v2975_v45 = vrot.slane %v2973_v63, 6  ;;  %v6163_v29 = vrot.slane %v2950_v47, 7  ;;  %7040 = vst [vmem:[#allocation26_spill] sm:$0xff] %v6219_v6 }
 0x2bb   : > { %v6138_v9 = vmul.f32 0.0, %v2975_v45  ;;  %7036 = vst [vmem:[#allocation14_spill] sm:$0xff] %v6163_v29 }
 0x2bd   : > { %2709 = vmatpush.bf16.msrb.mxu3 %v4003_v61  ;;  %7030 = vst [vmem:[#allocation13_spill] sm:$0xff] %v6138_v9  ;;  %v6171_v25 = vmul.f32 %v6136_v13, %v6138_v9  ;;  %v6238_v30 = vmul.f32 %v6167_v0, %v6138_v9  ;;  %v4011_v0 = vld [vmem:[%s6684_s20 + $0x8] sm:$0xff] }
 0x2bf   : > { %7043 = vst [vmem:[#allocation28_spill] sm:$0xff] %v6238_v30 }
 0x2c1   : > { %2710 = vmatpush.bf16.msrb.mxu3 %v4002_v50  ;;  %v6165_v50 = vrot.slane %v2920_v51, 2 }
 0x2c5   : > { %2759 = vmatpush.bf16.msra.mxu3 %v2748_v3  ;;  %v2790_v3 = vld [vmem:[%s6682_s18 + $0x2] sm:$0x3] }
 0x2c6   : > { %v6242_v16 = vperm.slane %v2790_v3, 1  ;;  %v6255_v63 = vperm.slane %v2790_v3, 0 }
 0x2c9   : > { %2760 = vmatpush.bf16.msra.mxu3 %v3878_v34  ;;  %v6215_v34 = vsel %vm927_vm0, %v6173_v27, %v6155_v24 }
 0x32f   : > { %v2641_v53 = vpop.f32.mrf.mxu3 }
 0x337   : > { %v2643_v12 = vpop.f32.mrf.mxu3 }
 0x338   : > { %v2658_v18 = vpack.c.bf16 %v2643_v12, %v2641_v53  ;;  %v6203_v53 = vsel %vm928_vm1, %v6153_v21, %v6165_v50 }
 0x339   : > { %7039 = vst [vmem:[#allocation22_spill] sm:$0xff] %v6203_v53 }
 0x33a   : > { %3874 = vmatmul.msk.bf16.vlgmr.msrb.gmra.mxu3 %vm2699_vm10, %v2658_v18  ;;  %v2791_v18 = vld [vmem:[%s6682_s18 + $0x4] sm:$0x3] }
 0x33b   : > { %v6244_v42 = vperm.slane %v2791_v18, 1 }
 0x3bd   : > { %v2712_v55 = vpop.f32.mrf.mxu3 }
 0x3be   : > { %v6106_v36 = vadd.f32 %v4120_v28, %v2712_v55  ;;  %v6224_v55 = vsel %vm997_vm3, %v6163_v29, %v2956_v60  ;;  %v6257_v60 = vperm.slane %v2791_v18, 0 }
 0x3bf   : > { %7041 = vst [vmem:[#allocation23_spill] sm:$0xff] %v6224_v55 }
 0x3c0   : > { %7026 = vst [vmem:[#allocation4_spill] sm:$0xff] %v6106_v36 }
 0x3c5   : > { %v2714_v15 = vpop.f32.mrf.mxu3 }
 0x3c6   : > { %v6108_v57 = vadd.f32 %v4120_v28, %v2714_v15  ;;  %v2793_v28 = vld [vmem:[%s6682_s18 + $0x8] sm:$0x3]  ;;  %v2794_v15 = vld [vmem:[%s6682_s18 + $0xa] sm:$0x3] }
 0x3c7   : > { %v6248_v47 = vperm.slane %v2793_v28, 1  ;;  %v6250_v51 = vperm.slane %v2794_v15, 1 }
 0x3c8   : > { %7027 = vst [vmem:[#allocation6_spill] sm:$0xff] %v6108_v57  ;;  %v2720_v23 = vpack.c.bf16 %v6108_v57, %v6106_v36 }
 0x3ca   : > { %3883 = vmatmul.msk.bf16.vlgmr.msra.gmra.mxu3 %vm2742_vm11, %v2720_v23  ;;  %3884 = vmatmul.msk.bf16.vlgmr.msrb.gmra.mxu1 %vm2742_vm11, %v2720_v23  ;;  %v6234_v23 = vsel %vm1169_vm4, %v6180_v26, %v2975_v45 }
 0x3cb   : > { %7042 = vst [vmem:[#allocation21_spill] sm:$0xff] %v6234_v23 }
 0x447   : > { %v2776_v61 = vpop.f32.mrf.mxu1 }
 0x448   : > { %v2777_v10 = vadd.f32 %v2776_v61, %v2724_v5  ;;  %v6262_v61 = vperm.slane %v2793_v28, 0  ;;  %v6275_v28 = vld [vmem:[%s6682_s18 + $0xc] sm:$0x3] }
 0x44a   : > { %v2782_v12 = vmax.f32 %v2777_v10, 0.0 }
 0x44c   : > { %v2786_v56 = vmin.f32 %v2782_v12, 6.0 }
 0x44d   : > { %v2762_v62 = vpop.f32.mrf.mxu3 }
 0x44e   : > { %v2804_v20 = vrot.slane %v2786_v56, 3  ;;  %v2763_v33 = vadd.f32 %v2762_v62, %v6778_v4  ;;  %v6286_v4 = vperm.slane %v2794_v15, 0 }
 0x44f   : > { %v2778_v45 = vpop.f32.mrf.mxu1 }
 0x450   : > { %v2816_v59 = vsel %vm927_vm0, 0.0, %v2804_v20  ;;  %v2781_v1 = vmax.f32 %v2763_v33, 0.0  ;;  %v2779_v10 = vadd.f32 %v2778_v45, %v2724_v5  ;;  %7044 = vst [vmem:[#allocation25_spill] sm:$0xff] %v6286_v4 }
 0x451   : > { %v2830_v12 = vmul.f32 %v6114_v48, %v2816_v59  ;;  %v2848_v56 = vmul.f32 %v6143_v39, %v2816_v59  ;;  %v2868_v62 = vmul.f32 %v6147_v2, %v2816_v59  ;;  %v2888_v3 = vmul.f32 %v6145_v22, %v2816_v59 }
 0x452   : > { %v2908_v18 = vmul.f32 %v6173_v27, %v2816_v59  ;;  %v2928_v44 = vmul.f32 %v6153_v21, %v2816_v59  ;;  %v6270_v17 = vmin.f32 %v2781_v1, 6.0  ;;  %v2784_v52 = vmax.f32 %v2779_v10, 0.0 }
 0x453   : > { %v6278_v5 = vmul.f32 %v6242_v16, %v2848_v56  ;;  %v6281_v33 = vmul.f32 %v6244_v42, %v2868_v62  ;;  %v6284_v45 = vmul.f32 %v6246_v35, %v2888_v3  ;;  %v4014_v56 = vld [vmem:[%s6684_s20 + $0x20] sm:$0xff]  ;;  %v6300_v62 = vmul.f32 %v6781_v14, %v2830_v12  ;;  %v4013_v3 = vld [vmem:[%s6684_s20 + $0x18] sm:$0xff] }
 0x454   : > { %v6289_v59 = vmul.f32 %v6248_v47, %v2908_v18  ;;  %v6292_v1 = vmul.f32 %v6250_v51, %v2928_v44  ;;  %v2788_v8 = vmin.f32 %v2784_v52, 6.0  ;;  %v4018_v44 = vld [vmem:[%s6684_s20 + $0x40] sm:$0xff]  ;;  %v7045_v43 = vrot.slane %v6270_v17, 3  ;;  %3350 = vmatpush.bf16.msrb.mxu0 %v4014_v56 }
 0x455   : > { %3368 = vmatpush.bf16.msra.mxu1 %v4018_v44  ;;  %v7049_v10 = vperm.slane %v6190_v32, 0 }
 0x456   : > { %v2815_v9 = vsel %vm927_vm0, 0.0, %v7045_v43  ;;  %v2807_v12 = vrot.slane %v2788_v8, 3 }
 0x457   : > { %v2829_v15 = vmul.f32 %v6114_v48, %v2815_v9  ;;  %v2847_v18 = vmul.f32 %v6143_v39, %v2815_v9  ;;  %v2867_v14 = vmul.f32 %v6147_v2, %v2815_v9  ;;  %v2887_v52 = vmul.f32 %v6145_v22, %v2815_v9 }
 0x458   : > { %v2907_v57 = vmul.f32 %v6173_v27, %v2815_v9  ;;  %v2927_v43 = vmul.f32 %v6153_v21, %v2815_v9  ;;  %v6324_v8 = vsel %vm927_vm0, %v2804_v20, %v2807_v12  ;;  %v2818_v44 = vsel %vm927_vm0, %v2807_v12, 0.0  ;;  %3351 = vmatpush.bf16.msrb.mxu0 %v4013_v3  ;;  %v6361_v21 = vpop.permute.xlu2 %2940 }
 0x459   : > { %v6327_v56 = vmul.f32 %v6255_v63, %v2847_v18  ;;  %v6330_v48 = vmul.f32 %v6257_v60, %v2867_v14  ;;  %v6333_v39 = vmul.f32 %v6259_v7, %v2887_v52  ;;  %v6338_v2 = vmul.f32 %v7049_v10, %v2829_v15  ;;  %v4012_v14 = vld [vmem:[%s6684_s20 + $0x10] sm:$0xff]  ;;  %7053 = vst [vmem:[#allocation40_spill] sm:$0xff] %v6361_v21 }
 0x45a   : > { %v6341_v9 = vmul.f32 %v6262_v61, %v2907_v57  ;;  %v6344_v20 = vmul.f32 %v6286_v4, %v2927_v43  ;;  %v2832_v18 = vmul.f32 %v6116_v46, %v6324_v8  ;;  %v2850_v57 = vmul.f32 %v6178_v40, %v6324_v8 }
 0x45b   : > { %7046 = vst [vmem:[#allocation10_spill] sm:$0xff] %v6327_v56  ;;  %v2852_v43 = vmul.f32 %v6141_v37, %v2818_v44  ;;  %v2870_v3 = vmul.f32 %v6198_v31, %v6324_v8  ;;  %v2872_v27 = vmul.f32 %v6151_v11, %v2818_v44  ;;  %v2890_v52 = vmul.f32 %v6185_v49, %v6324_v8 }
 0x45c   : > { %7047 = vst [vmem:[#allocation27_spill] sm:$0xff] %v6330_v48  ;;  %v2892_v12 = vmul.f32 %v6149_v38, %v2818_v44  ;;  %v2910_v10 = vmul.f32 %v6215_v34, %v6324_v8  ;;  %v2912_v22 = vmul.f32 %v6155_v24, %v2818_v44  ;;  %v2930_v36 = vmul.f32 %v6203_v53, %v6324_v8 }
 0x45d   : > { %7048 = vst [vmem:[#allocation24_spill] sm:$0xff] %v6333_v39  ;;  %v2932_v30 = vmul.f32 %v6165_v50, %v2818_v44  ;;  %v2946_v6 = vmul.f32 %v6361_v21, %v2818_v44  ;;  %3352 = vmatpush.bf16.msrb.mxu0 %v4012_v14  ;;  %v2962_v19 = vmul.f32 %v6163_v29, %v6324_v8 }
 0x45e   : > { %7050 = vst [vmem:[#allocation29_spill] sm:$0xff] %v6338_v2  ;;  %v2983_v39 = vmul.f32 %v6234_v23, %v2818_v44  ;;  %v3002_v15 = vmul.f32 %v6242_v16, %v2850_v57  ;;  %v3037_v48 = vmul.f32 %v6244_v42, %v2870_v3  ;;  %v3039_v2 = vmul.f32 %v6244_v42, %v2872_v27 }
 0x45f   : > { %7051 = vst [vmem:[#allocation37_spill] sm:$0xff] %v6341_v9  ;;  %v2964_v9 = vmul.f32 %v6224_v55, %v2818_v44  ;;  %v3072_v14 = vmul.f32 %v6246_v35, %v2890_v52  ;;  %v3074_v4 = vmul.f32 %v6246_v35, %v2892_v12  ;;  %v3107_v21 = vmul.f32 %v6248_v47, %v2910_v10  ;;  %v2764_v35 = vpop.f32.mrf.mxu3 }
 0x460   : > { %7052 = vst [vmem:[#allocation30_spill] sm:$0xff] %v6344_v20  ;;  %v3004_v20 = vmul.f32 %v6242_v16, %v2852_v43  ;;  %v3015_v56 = vrot.slane %v3002_v15, 1  ;;  %v3109_v29 = vmul.f32 %v6248_v47, %v2912_v22  ;;  %v3050_v53 = vrot.slane %v3037_v48, 2  ;;  %v4010_v16 = vld [vmem:[%s6684_s20] sm:$0xff] }
 0x461   : > { %v3054_v44 = vrot.slane %v3039_v2, 2  ;;  %v3085_v23 = vrot.slane %v3072_v14, 4  ;;  %3353 = vmatpush.bf16.msrb.mxu0 %v4011_v0  ;;  %v7054_v27 = vperm.slane %v6190_v32, 1  ;;  %v3089_v52 = vrot.slane %v3074_v4, 4  ;;  %v6398_v0 = vpop.permute.xlu1 %2935 }
 0x462   : > { %v3019_v55 = vrot.slane %v3004_v20, 1  ;;  %v3121_v57 = vrot.slane %v3107_v21, 5  ;;  %v3125_v15 = vrot.slane %v3109_v29, 5  ;;  %v3143_v48 = vmul.f32 %v6250_v51, %v2930_v36 }
 0x463   : > { %v2993_v42 = vmul.f32 %v7054_v27, %v2832_v18  ;;  %v3055_v22 = vsel %vm928_vm1, %v3050_v53, %v3054_v44  ;;  %v3145_v2 = vmul.f32 %v6250_v51, %v2932_v30  ;;  %v3090_v20 = vsel %vm2746_vm9, %v3085_v23, %v3089_v52 }
 0x464   : > { %v3020_v12 = vsel %vm1591_vm5, %v3015_v56, %v3019_v55  ;;  %v7055_v10 = vperm.slane %v6275_v28, 1  ;;  %v3191_v21 = vmul.f32 %v6132_v54, %v2964_v9  ;;  %v6405_v4 = vmul.f32 %v6136_v13, %v2983_v39 }
 0x465   : > { %v3028_v47 = vadd.f32 %v3020_v12, %v2993_v42  ;;  %v3160_v29 = vrot.slane %v3145_v2, 6  ;;  %v7056_v55 = vperm.slane %v6130_v41, 0  ;;  %3354 = vmatpush.bf16.msrb.mxu0 %v4010_v16  ;;  %v2944_v36 = vmul.f32 %v6398_v0, %v6324_v8 }
 0x466   : > { %v3178_v18 = vmul.f32 %v7055_v10, %v2946_v6  ;;  %v3204_v51 = vrot.slane %v3191_v21, 1  ;;  %v2981_v3 = vmul.f32 %v6180_v26, %v6324_v8  ;;  %v7057_v6 = vrot.slane %v6278_v5, 1 }
 0x467   : > { %v2765_v43 = vadd.f32 %v2764_v35, %v7056_v55  ;;  %v3063_v30 = vadd.f32 %v3055_v22, %v3028_v47  ;;  %v7058_v44 = vrot.slane %v6281_v33, 2  ;;  %v7059_v16 = vrot.slane %v6284_v45, 4 }
 0x468   : > { %v3016_v9 = vsel %vm1591_vm5, %v7057_v6, %v3015_v56  ;;  %v7060_v52 = vrot.slane %v6289_v59, 5  ;;  %v3156_v5 = vrot.slane %v3143_v48, 6  ;;  %v3189_v56 = vmul.f32 %v6132_v54, %v2962_v19 }
 0x469   : > { %v2783_v14 = vmax.f32 %v2765_v43, 0.0  ;;  %v3026_v39 = vadd.f32 %v3016_v9, %v6300_v62  ;;  %v3051_v41 = vsel %vm928_vm1, %v7058_v44, %v3050_v53  ;;  %v3086_v27 = vsel %vm2746_vm9, %v7059_v16, %v3085_v23  ;;  %v6429_v62 = vld [vmem:[%s6683_s19] sm:$0x3] }
 0x46a   : > { %v3098_v42 = vadd.f32 %v3090_v20, %v3063_v30  ;;  %v3122_v8 = vsel %vm3116_vm12, %v7060_v52, %v3121_v57  ;;  %v3126_v53 = vsel %vm3116_vm12, %v3121_v57, %v3125_v15  ;;  %v7061_v23 = vrot.slane %v6292_v1, 6 }
 0x46b   : > { %v2787_v35 = vmin.f32 %v2783_v14, 6.0  ;;  %v3061_v33 = vadd.f32 %v3051_v41, %v3026_v39  ;;  %v3161_v59 = vsel %vm1169_vm4, %v3156_v5, %v3160_v29  ;;  %v7062_v22 = vmov %v7055_v10 }
 0x46c   : > { %v3134_v45 = vadd.f32 %v3126_v53, %v3098_v42  ;;  %v3157_v12 = vsel %vm1169_vm4, %v7061_v23, %v3156_v5  ;;  %v3176_v48 = vmul.f32 %v7062_v22, %v2944_v36  ;;  %v3203_v20 = vrot.slane %v3189_v56, 1  ;;  %v7066_v22 = vld [vmem:[#allocation22_spill] sm:$0xff] }
 0x46d   : > { %v2805_v2 = vrot.slane %v2787_v35, 3  ;;  %v3096_v47 = vadd.f32 %v3086_v27, %v3061_v33  ;;  %v7063_v10 = vrot.slane %v6161_v58, 1  ;;  %v3224_v54 = vmul.f32 %v6136_v13, %v2981_v3 }
 0x46e   : > { %v3169_v57 = vadd.f32 %v3161_v59, %v3134_v45  ;;  %v3239_v19 = vrot.slane %v6405_v4, 2  ;;  %v3255_v1 = vperm.slane %v6429_v62, 1  ;;  %v7064_v15 = vrot.slane %v6270_v17, 3 }
 0x46f   : > { %v3209_v21 = vsel %vm1591_vm5, %v3204_v51, %v7063_v10  ;;  %v2817_v55 = vsel %vm927_vm0, %v2805_v2, 0.0  ;;  %v3132_v43 = vadd.f32 %v3122_v8, %v3096_v47  ;;  %v3171_v36 = vperm.slane %v6275_v28, 0  ;;  %v7068_v10 = vld [vmem:[#allocation14_spill] sm:$0xff] }
 0x470   : > { %v2806_v29 = vsel %vm927_vm0, %v7064_v15, %v2805_v2  ;;  %v2851_v6 = vmul.f32 %v6141_v37, %v2817_v55  ;;  %v3205_v13 = vsel %vm1591_vm5, %v3203_v20, %v3204_v51  ;;  %v2871_v3 = vmul.f32 %v6151_v11, %v2817_v55  ;;  %v7067_v20 = vld [vmem:[#allocation40_spill] sm:$0xff] }
 0x471   : > { %v2831_v58 = vmul.f32 %v6116_v46, %v2806_v29  ;;  %v2849_v30 = vmul.f32 %v6178_v40, %v2806_v29  ;;  %v2869_v4 = vmul.f32 %v6198_v31, %v2806_v29  ;;  %v2891_v17 = vmul.f32 %v6149_v38, %v2817_v55 }
 0x472   : > { %v2911_v9 = vmul.f32 %v6155_v24, %v2817_v55  ;;  %v2889_v14 = vmul.f32 %v6185_v49, %v2806_v29  ;;  %v2931_v39 = vmul.f32 %v6165_v50, %v2817_v55  ;;  %v3003_v44 = vmul.f32 %v6255_v63, %v2851_v6 }
 0x473   : > { %v3167_v41 = vadd.f32 %v3157_v12, %v3132_v43  ;;  %v3001_v16 = vmul.f32 %v6255_v63, %v2849_v30  ;;  %v3038_v27 = vmul.f32 %v6257_v60, %v2871_v3  ;;  %v3073_v51 = vmul.f32 %v6259_v7, %v2891_v17 }
 0x474   : > { %v3182_v42 = vadd.f32 %v3178_v18, %v3169_v57  ;;  %v3017_v52 = vrot.slane %v3003_v44, 1  ;;  %v3108_v8 = vmul.f32 %v6262_v61, %v2911_v9  ;;  %v3238_v35 = vrot.slane %v3224_v54, 2 }
 0x475   : > { %v3180_v5 = vadd.f32 %v3176_v48, %v3167_v41  ;;  %v3052_v33 = vrot.slane %v3038_v27, 2  ;;  %v3087_v53 = vrot.slane %v3073_v51, 4  ;;  %v7065_v45 = vrot.slane %v6171_v25, 2  ;;  %v7071_v41 = vld [vmem:[#allocation25_spill] sm:$0xff] }
 0x476   : > { %v3217_v56 = vadd.f32 %v3209_v21, %v3182_v42  ;;  %v3240_v63 = vsel %vm928_vm1, %v3238_v35, %v3239_v19  ;;  %v2909_v59 = vmul.f32 %v6215_v34, %v2806_v29  ;;  %v2929_v2 = vmul.f32 %v7066_v22, %v2806_v29  ;;  %v7069_v21 = vld [vmem:[#allocation23_spill] sm:$0xff]  ;;  %v7072_v42 = vld [vmem:[#allocation10_spill] sm:$0xff] }
 0x477   : > { %v3244_v23 = vsel %vm928_vm1, %v3239_v19, %v7065_v45  ;;  %v3215_v12 = vadd.f32 %v3205_v13, %v3180_v5  ;;  %v2943_v47 = vmul.f32 %v6398_v0, %v2806_v29  ;;  %v2945_v48 = vmul.f32 %v7067_v20, %v2817_v55 }
 0x478   : > { %v3252_v18 = vadd.f32 %v3244_v23, %v3217_v56  ;;  %v2961_v57 = vmul.f32 %v7068_v10, %v2806_v29  ;;  %v2963_v15 = vmul.f32 %v7069_v21, %v2817_v55  ;;  %v2980_v25 = vmul.f32 %v6180_v26, %v2806_v29 }
 0x479   : > { %v3250_v54 = vadd.f32 %v3240_v63, %v3215_v12  ;;  %v7070_v43 = vperm.slane %v6190_v32, 0  ;;  %v3012_v6 = vrot.slane %v3001_v16, 1  ;;  %v3036_v13 = vmul.f32 %v6257_v60, %v2869_v4  ;;  %v7074_v16 = vld [vmem:[#allocation29_spill] sm:$0xff] }
 0x47a   : > { %v3261_v19 = vadd.f32 %v3255_v1, %v3252_v18  ;;  %v3071_v3 = vmul.f32 %v6259_v7, %v2889_v14  ;;  %v3106_v9 = vmul.f32 %v6262_v61, %v2909_v59  ;;  %v3123_v44 = vrot.slane %v3108_v8, 5  ;;  %v7077_v12 = vld [vmem:[#allocation21_spill] sm:$0xff] }
 0x47b   : > { %v2992_v30 = vmul.f32 %v7070_v43, %v2831_v58  ;;  %v3259_v17 = vadd.f32 %v3255_v1, %v3250_v54  ;;  %v3142_v27 = vmul.f32 %v7071_v41, %v2929_v2  ;;  %v7073_v5 = vrot.slane %v7072_v42, 1  ;;  %v7075_v1 = vld [vmem:[#allocation27_spill] sm:$0xff] }
 0x47c   : > { %v3265_v51 = vmax.f32 %v3261_v19, 0.0  ;;  %v3018_v32 = vsel %vm1591_vm5, %v3012_v6, %v3017_v52  ;;  %v3047_v58 = vrot.slane %v3036_v13, 2  ;;  %v3082_v4 = vrot.slane %v3071_v3, 4  ;;  %v7078_v52 = vld [vmem:[#allocation24_spill] sm:$0xff] }
 0x47d   : > { %v3013_v29 = vsel %vm1591_vm5, %v7073_v5, %v3012_v6  ;;  %v3263_v35 = vmax.f32 %v3259_v17, 0.0  ;;  %v3027_v60 = vadd.f32 %v3018_v32, %v2992_v30  ;;  %v7076_v14 = vrot.slane %v7075_v1, 2  ;;  %v7080_v30 = vld [vmem:[#allocation37_spill] sm:$0xff]  ;;  %v7082_v5 = vld [vmem:[#allocation16_spill] sm:$0xff]  ;;  %v7086_v1 = vld [vmem:[#allocation26_spill] sm:$0xff] }
 0x47e   : > { %v3025_v56 = vadd.f32 %v3013_v29, %v7074_v16  ;;  %v3269_v7 = vmin.f32 %v3265_v51, 6.0  ;;  %v3053_v8 = vsel %vm928_vm1, %v3047_v58, %v3052_v33  ;;  %v3118_v45 = vrot.slane %v3106_v9, 5 }
 0x47f   : > { %v3048_v61 = vsel %vm928_vm1, %v7076_v14, %v3047_v58  ;;  %v3267_v23 = vmin.f32 %v3263_v35, 6.0  ;;  %v2982_v63 = vmul.f32 %v7077_v12, %v2817_v55  ;;  %v3062_v2 = vadd.f32 %v3053_v8, %v3027_v60  ;;  %v7083_v58 = vld [vmem:[#allocation30_spill] sm:$0xff] }
 0x480   : > { %v3060_v59 = vadd.f32 %v3048_v61, %v3025_v56  ;;  %v7079_v18 = vrot.slane %v7078_v52, 4  ;;  %v3088_v43 = vsel %vm2746_vm9, %v3082_v4, %v3087_v53  ;;  %v7081_v19 = vrot.slane %v7080_v30, 5 }
 0x481   : > { %v3144_v13 = vmul.f32 %v7071_v41, %v2931_v39  ;;  %v3289_v3 = vpack.c.bf16 %v3269_v7, %v3267_v23  ;;  %v3097_v17 = vadd.f32 %v3088_v43, %v3062_v2  ;;  %v3153_v9 = vrot.slane %v3142_v27, 6 }
 0x482   : > { %v3083_v54 = vsel %vm2746_vm9, %v7079_v18, %v3082_v4  ;;  %v3119_v6 = vsel %vm3116_vm12, %v7081_v19, %v3118_v45  ;;  %v3124_v55 = vsel %vm3116_vm12, %v3118_v45, %v3123_v44  ;;  %v3175_v42 = vmul.f32 %v3171_v36, %v2943_v47  ;;  %v7085_v44 = vld [vmem:[#allocation18_spill] sm:$0xff] }
 0x483   : > { %v3095_v33 = vadd.f32 %v3083_v54, %v3060_v59  ;;  %v3158_v51 = vrot.slane %v3144_v13, 6  ;;  %v3188_v29 = vmul.f32 %v7082_v5, %v2961_v57  ;;  %3921 = vmatmul.msk.bf16.vlgmr.msra.gmra.mxu1 %vm2042_vm7, %v3289_v3  ;;  %v3133_v32 = vadd.f32 %v3124_v55, %v3097_v17 }
 0x484   : > { %v7084_v35 = vrot.slane %v7083_v58, 6  ;;  %v3190_v41 = vmul.f32 %v7082_v5, %v2963_v15  ;;  %v3223_v56 = vmul.f32 %v7085_v44, %v2980_v25  ;;  %v3225_v60 = vmul.f32 %v7085_v44, %v2982_v63  ;;  %v7087_v15 = vld [vmem:[#allocation28_spill] sm:$0xff] }
 0x485   : > { %v3131_v53 = vadd.f32 %v3119_v6, %v3095_v33  ;;  %v3159_v27 = vsel %vm1169_vm4, %v3153_v9, %v3158_v51  ;;  %v3200_v16 = vrot.slane %v3188_v29, 1  ;;  %v3177_v57 = vmul.f32 %v3171_v36, %v2945_v48  ;;  %v7088_v51 = vld [vmem:[#allocation4_spill] sm:$0xff] }
 0x486   : > { %v3154_v39 = vsel %vm1169_vm4, %v7084_v35, %v3153_v9  ;;  %v3168_v4 = vadd.f32 %v3159_v27, %v3133_v32  ;;  %v3201_v7 = vrot.slane %v3190_v41, 1  ;;  %v3206_v14 = vrot.slane %v7086_v1, 1  ;;  %v3568_v35 = vld [vmem:[%s6686_s22 + $0x68] sm:$0xf] }
 0x487   : > { %v3166_v47 = vadd.f32 %v3154_v39, %v3131_v53  ;;  %v3235_v61 = vrot.slane %v3223_v56, 2  ;;  %v3236_v8 = vrot.slane %v3225_v60, 2  ;;  %v3241_v59 = vrot.slane %v7087_v15, 2  ;;  %v7089_v39 = vld [vmem:[#allocation6_spill] sm:$0xff]  ;;  %v7093_v15 = vld [vmem:[#allocation17_spill] sm:$0xff] }
 0x488   : > { %v3181_v23 = vadd.f32 %v3177_v57, %v3168_v4  ;;  %v3202_v2 = vsel %vm1591_vm5, %v3200_v16, %v3201_v7  ;;  %v3207_v25 = vsel %vm1591_vm5, %v3201_v7, %v3206_v14  ;;  %v3254_v18 = vperm.slane %v6429_v62, 0  ;;  %v4121_v62 = vld [vmem:[%s6685_s21] ss:$0 sm:$0xff]  ;;  %v7092_v14 = vld [vmem:[#allocation5_spill] sm:$0xff] }
 0x489   : > { %v3179_v45 = vadd.f32 %v3175_v42, %v3166_v47  ;;  %v3237_v28 = vsel %vm928_vm1, %v3235_v61, %v3236_v8  ;;  %v3242_v36 = vsel %vm928_vm1, %v3236_v8, %v3241_v59  ;;  %v3628_v27 = vunpack.c.l.b16 %v3568_v35  ;;  %v7090_v47 = vld [vmem:[#allocation12_spill] sm:$0xff]  ;;  %v7091_v57 = vld [vmem:[#allocation15_spill] sm:$0xff] }
 0x48a   : > { %v3216_v63 = vadd.f32 %v3207_v25, %v3181_v23  ;;  %v4031_v8 = vld [vmem:[%s6686_s22 + $0x60] sm:$0xff] }
 0x48b   : > { %v3214_v52 = vadd.f32 %v3202_v2, %v3179_v45  ;;  %v3642_v56 = vpack.c.b16 %v3628_v27, %v3628_v27  ;;  %v7094_v2 = vld [vmem:[#allocation19_spill] sm:$0xff] }
 0x48c   : > { %v3251_v54 = vadd.f32 %v3242_v36, %v3216_v63 }
 0x48d   : > { %v3249_v48 = vadd.f32 %v3237_v28, %v3214_v52  ;;  %v3661_v1 = vsel %vm2746_vm9, %v3642_v56, 0 }
 0x48e   : > { %v3260_v30 = vadd.f32 %v3254_v18, %v3251_v54  ;;  %3679 = vmatpush.bf16.msrb.mxu2 %v3661_v1 }
 0x48f   : > { %v3258_v43 = vadd.f32 %v3254_v18, %v3249_v48 }
 0x490   : > { %v3264_v6 = vmax.f32 %v3260_v30, 0.0 }
 0x491   : > { %v3262_v19 = vmax.f32 %v3258_v43, 0.0 }
 0x492   : > { %v3268_v3 = vmin.f32 %v3264_v6, 6.0  ;;  %3680 = vmatpush.bf16.msrb.mxu2 %v4031_v8  ;;  %v7096_v8 = vld [vmem:[#allocation9_spill] sm:$0xff] }
 0x493   : > { %v3266_v13 = vmin.f32 %v3262_v19, 6.0 }
 0x495   : > { %v3288_v33 = vpack.c.bf16 %v3268_v3, %v3266_v13 }
 0x497   : > { %3355 = vmatmul.bf16.vlgmr.msrb.gmra.mxu0 %v3288_v33 }
 0x500   : > { %v3370_v17 = vpop.f32.mrf.mxu1 }
 0x508   : > { %v3372_v53 = vpop.f32.mrf.mxu1 }
 0x514   : > { %v3356_v9 = vpop.f32.mrf.mxu0 }
 0x515   : > { %v3371_v55 = vadd.f32 %v3370_v17, %v3356_v9 }
 0x517   : > { %v3375_v42 = vadd.f32 %v3371_v55, %v7088_v51 }
 0x519   : > { %v3381_v5 = vadd.f32 %v4121_v62, %v3375_v42 }
 0x51b   : > { %v3385_v29 = vrot.slane %v3381_v5, 3 }
 0x51c   : > { %v3358_v32 = vpop.f32.mrf.mxu0 }
 0x51d   : > { %v3373_v58 = vadd.f32 %v3372_v53, %v3358_v32  ;;  %v6530_v16 = vsel %vm927_vm0, 0.0, %v3385_v29 }
 0x51e   : > { %v3401_v4 = vmul.f32 %v6530_v16, %v7090_v47  ;;  %v3398_v7 = vmul.f32 %v6530_v16, %v7091_v57  ;;  %v3395_v61 = vmul.f32 %v6530_v16, %v7092_v14  ;;  %v3407_v59 = vmul.f32 %v6530_v16, %v7093_v15  ;;  %v7095_v14 = vld [vmem:[#allocation13_spill] sm:$0xff] }
 0x51f   : > { %v3376_v41 = vadd.f32 %v3373_v58, %v7089_v39  ;;  %v3404_v25 = vmul.f32 %v6530_v16, %v7094_v2  ;;  %v3500_v15 = vrot.slane %v7096_v8, 1 }
 0x520   : > { %v3447_v36 = vrot.slane %v3401_v4, 4  ;;  %v3433_v48 = vrot.slane %v3398_v7, 2  ;;  %v3475_v53 = vrot.slane %v3407_v59, 6 }
 0x521   : > { %v3382_v44 = vadd.f32 %v4121_v62, %v3376_v41  ;;  %v3461_v39 = vrot.slane %v3404_v25, 5 }
 0x523   : > { %v3386_v60 = vrot.slane %v3382_v44, 3 }
 0x525   : > { %v6543_v45 = vsel %vm927_vm0, %v3385_v29, %v3386_v60  ;;  %v3392_v23 = vsel %vm927_vm0, %v3386_v60, 0.0  ;;  %vm3537_vm0 = vcmask 326656  }
 0x526   : > { %v3402_v52 = vmul.f32 %v6543_v45, %v6185_v49  ;;  %v3403_v63 = vmul.f32 %v3392_v23, %v6149_v38  ;;  %v3399_v18 = vmul.f32 %v6543_v45, %v6198_v31  ;;  %v3400_v28 = vmul.f32 %v3392_v23, %v6151_v11 }
 0x527   : > { %v3396_v54 = vmul.f32 %v6543_v45, %v6178_v40  ;;  %v3397_v43 = vmul.f32 %v3392_v23, %v6141_v37  ;;  %v3419_v49 = vrot.slane %v3395_v61, 1  ;;  %v3408_v31 = vmul.f32 %v6543_v45, %v7066_v22 }
 0x528   : > { %v3448_v30 = vrot.slane %v3402_v52, 4  ;;  %v3450_v19 = vrot.slane %v3403_v63, 4  ;;  %v3434_v6 = vrot.slane %v3399_v18, 2  ;;  %v3436_v13 = vrot.slane %v3400_v28, 2  ;;  %v4030_v52 = vld [vmem:[%s6686_s22 + $0x58] sm:$0xff]  ;;  %v4025_v18 = vld [vmem:[%s6686_s22 + $0x30] sm:$0xff] }
 0x529   : > { %v3420_v3 = vrot.slane %v3396_v54, 1  ;;  %v3422_v38 = vrot.slane %v3397_v43, 1  ;;  %v3409_v42 = vmul.f32 %v3392_v23, %v6165_v50  ;;  %v3476_v5 = vrot.slane %v3408_v31, 6  ;;  %v4026_v63 = vld [vmem:[%s6686_s22 + $0x38] sm:$0xff]  ;;  %3681 = vmatpush.bf16.msrb.mxu2 %v4030_v52  ;;  %v4029_v28 = vld [vmem:[%s6686_s22 + $0x50] sm:$0xff]  ;;  %v4028_v43 = vld [vmem:[%s6686_s22 + $0x48] sm:$0xff] }
 0x52a   : > { %v3449_v11 = vsel %vm2746_vm9, %v3447_v36, %v3448_v30  ;;  %v3451_v33 = vsel %vm2746_vm9, %v3448_v30, %v3450_v19  ;;  %v3435_v17 = vsel %vm928_vm1, %v3433_v48, %v3434_v6  ;;  %v3437_v40 = vsel %vm928_vm1, %v3434_v6, %v3436_v13  ;;  %3663 = vmatpush.bf16.msrb.mxu3 %v4026_v63  ;;  %v4024_v36 = vld [vmem:[%s6686_s22 + $0x28] sm:$0xff]  ;;  %v4023_v48 = vld [vmem:[%s6686_s22 + $0x20] sm:$0xff]  ;;  %v4022_v54 = vld [vmem:[%s6686_s22 + $0x18] sm:$0xff] }
 0x52b   : > { %v4067_v37 = vpack.i.bf16 %v3451_v33, %v3449_v11  ;;  %v4062_v9 = vpack.i.bf16 %v3437_v40, %v3435_v17  ;;  %v3421_v55 = vsel %vm1591_vm5, %v3419_v49, %v3420_v3  ;;  %v3423_v62 = vsel %vm1591_vm5, %v3420_v3, %v3422_v38  ;;  %v4021_v30 = vld [vmem:[%s6686_s22 + $0x10] sm:$0xff]  ;;  %v4020_v19 = vld [vmem:[%s6686_s22 + $0x8] sm:$0xff]  ;;  %v4019_v6 = vld [vmem:[%s6686_s22] sm:$0xff] }
 0x52c   : > { %v4057_v51 = vpack.i.bf16 %v3423_v62, %v3421_v55  ;;  %v3405_v22 = vmul.f32 %v6543_v45, %v6215_v34  ;;  %v3406_v29 = vmul.f32 %v3392_v23, %v6155_v24  ;;  %v3478_v32 = vrot.slane %v3409_v42, 6  ;;  %v4027_v13 = vld [vmem:[%s6686_s22 + $0x40] sm:$0xff] }
 0x52d   : > { %4068 = vrot.lane.b32.xlu2 %v4067_v37, %s4136_s1  ;;  %4063 = vrot.lane.b32.xlu1 %v4062_v9, %s4137_s7  ;;  %v3410_v35 = vmul.f32 %v6543_v45, %v6398_v0  ;;  %v3411_v50 = vmul.f32 %v3392_v23, %v7067_v20  ;;  %v3477_v34 = vsel %vm1169_vm4, %v3475_v53, %v3476_v5  ;;  %v3514_v61 = vrot.slane %v7095_v14, 2  ;;  %v7097_v33 = vld [vmem:[#allocation3_spill] sm:$0xff] }
 0x52e   : > { %4058 = vrot.lane.b32.xlu0 %v4057_v51, %s4138_s26  ;;  %v3462_v58 = vrot.slane %v3405_v22, 5  ;;  %v3464_v41 = vrot.slane %v3406_v29, 5  ;;  %v3479_v27 = vsel %vm1169_vm4, %v3476_v5, %v3478_v32  ;;  %v3414_v44 = vmul.f32 %v6543_v45, %v6180_v26  ;;  %3664 = vmatpush.bf16.msrb.mxu3 %v4025_v18  ;;  %s3995_s26 = sshll.u32 %s7101_s3, 4 }
 0x52f   : > { %v3415_v24 = vmul.f32 %v3392_v23, %v7077_v12  ;;  %v3412_v0 = vmul.f32 %v6543_v45, %v7068_v10  ;;  %v3413_v20 = vmul.f32 %v3392_v23, %v7069_v21  ;;  %v4082_v47 = vpack.i.bf16 %v3411_v50, %v3410_v35  ;;  %3682 = vmatpush.bf16.msrb.mxu2 %v4029_v28 }
 0x530   : > { %v3463_v56 = vsel %vm3116_vm12, %v3461_v39, %v3462_v58  ;;  %v3465_v60 = vsel %vm3116_vm12, %v3462_v58, %v3464_v41  ;;  %v4077_v4 = vpack.i.bf16 %v3479_v27, %v3477_v34  ;;  %v3511_v7 = vrot.slane %v3414_v44, 2 }
 0x531   : > { %v4072_v57 = vpack.i.bf16 %v3465_v60, %v3463_v56  ;;  %v3512_v1 = vrot.slane %v3415_v24, 2  ;;  %v3497_v26 = vrot.slane %v3412_v0, 1  ;;  %v3498_v12 = vrot.slane %v3413_v20, 1 }
 0x532   : > { %3665 = vmatpush.bf16.msrb.mxu3 %v4024_v36  ;;  %v3393_v17 = vmul.f32 %v6530_v16, %v7097_v33  ;;  %v3394_v40 = vmul.f32 %v6543_v45, %v6116_v46 }
 0x533   : > { %v3513_v10 = vsel %vm928_vm1, %v3511_v7, %v3512_v1  ;;  %v3515_v21 = vsel %vm928_vm1, %v3512_v1, %v3514_v61  ;;  %v3499_v23 = vsel %vm1591_vm5, %v3497_v26, %v3498_v12  ;;  %v3501_v59 = vsel %vm1591_vm5, %v3498_v12, %v3500_v15  ;;  %3683 = vmatpush.bf16.msrb.mxu2 %v4028_v43  ;;  %v4035_v15 = vld [vmem:[%s6688_s24 + $0x18] sm:$0xff] }
 0x534   : > { %v4092_v2 = vpack.i.bf16 %v3515_v21, %v3513_v10  ;;  %v4087_v25 = vpack.i.bf16 %v3501_v59, %v3499_v23  ;;  %vm3656_vm1 = vcmask 719872   ;;  %v4034_v10 = vld [vmem:[%s6688_s24 + $0x10] sm:$0xff]  ;;  %v4033_v21 = vld [vmem:[%s6688_s24 + $0x8] sm:$0xff]  ;;  %v4032_v23 = vld [vmem:[%s6688_s24] sm:$0xff] }
 0x535   : > { %4083 = vrot.lane.b32.xlu2 %v4082_v47, %s4139_s6  ;;  %4078 = vrot.lane.b32.xlu1 %v4077_v4, %s4140_s27 }
 0x536   : > { %4073 = vrot.lane.b32.xlu0 %v4072_v57, %s4141_s28  ;;  %3666 = vmatpush.bf16.msrb.mxu3 %v4023_v48 }
 0x537   : > { %3684 = vmatpush.bf16.msrb.mxu2 %v4027_v13 }
 0x53a   : > { %3667 = vmatpush.bf16.msrb.mxu3 %v4022_v54 }
 0x53b   : > { %3737 = vmatpush.bf16.msra.mxu2 %v4035_v15 }
 0x53d   : > { %4093 = vrot.lane.b32.xlu1 %v4092_v2, %s4142_s4 }
 0x53e   : > { %4088 = vrot.lane.b32.xlu0 %v4087_v25, %s4143_s0  ;;  %3668 = vmatpush.bf16.msrb.mxu3 %v4021_v30  ;;  %v4122_v25 = vld [vmem:[%s6687_s23] ss:$0 sm:$0xff]  ;;  %s7098_s0 = sld [smem:[#allocation64_spill]] }
 0x53f   : > { %3738 = vmatpush.bf16.msra.mxu2 %v4034_v10 }
 0x542   : > { %3669 = vmatpush.bf16.msrb.mxu3 %v4020_v19  ;;  %v4123_v19 = vld [vmem:[%s6689_s25] ss:$0 sm:$0xff] }
 0x543   : > { %3739 = vmatpush.bf16.msra.mxu2 %v4033_v21 }
 0x544   : > { %s791_s30 = scalar_lea.vmem %s7098_s0, %s3995_s26 }
 0x546   : > { %3670 = vmatpush.bf16.msrb.mxu3 %v4019_v6 }
 0x547   : > { %3740 = vmatpush.bf16.msra.mxu2 %v4032_v23 }
 0x587   : > { %v4069_v11 = vpop.permute.xlu2 %4068 }
 0x588   : > { %v4071_v22 = vunpack.i.h.bf16 %v4069_v11  ;;  %v4070_v29 = vunpack.i.l.bf16 %v4069_v11 }
 0x58f   : > { %v4084_v41 = vpop.permute.xlu2 %4083 }
 0x590   : > { %v4086_v24 = vunpack.i.h.bf16 %v4084_v41  ;;  %v4085_v60 = vunpack.i.l.bf16 %v4084_v41 }
 0x59f   : > { %v4064_v49 = vpop.permute.xlu1 %4063 }
 0x5a0   : > { %v4059_v3 = vpop.permute.xlu0 %4058  ;;  %v4066_v37 = vunpack.i.h.bf16 %v4064_v49  ;;  %v4065_v9 = vunpack.i.l.bf16 %v4064_v49 }
 0x5a1   : > { %v4061_v38 = vunpack.i.h.bf16 %v4059_v3  ;;  %v4060_v31 = vunpack.i.l.bf16 %v4059_v3 }
 0x5a3   : > { %v3522_v55 = vsel %vm2742_vm11, %v3393_v17, %v4060_v31  ;;  %v3523_v62 = vsel %vm2742_vm11, %v3394_v40, %v4061_v38 }
 0x5a4   : > { %v3525_v51 = vsel %vm3524_vm13, %v3522_v55, %v4065_v9  ;;  %v3526_v42 = vsel %vm3524_vm13, %v3523_v62, %v4066_v37 }
 0x5a5   : > { %v3528_v46 = vsel %vm3527_vm14, %v3525_v51, %v4070_v29  ;;  %v3529_v45 = vsel %vm3527_vm14, %v3526_v42, %v4071_v22 }
 0x5a7   : > { %v4079_v5 = vpop.permute.xlu1 %4078 }
 0x5a8   : > { %v4081_v53 = vunpack.i.h.bf16 %v4079_v5  ;;  %v4080_v32 = vunpack.i.l.bf16 %v4079_v5  ;;  %v4074_v58 = vpop.permute.xlu0 %4073 }
 0x5a9   : > { %v4076_v16 = vunpack.i.h.bf16 %v4074_v58  ;;  %v4075_v35 = vunpack.i.l.bf16 %v4074_v58 }
 0x5aa   : > { %v3536_v7 = vsel %vm2042_vm7, %v4081_v53, %v4086_v24  ;;  %v3535_v1 = vsel %vm2042_vm7, %v4080_v32, %v4085_v60 }
 0x5ab   : > { %v3530_v50 = vsel %vm2699_vm10, %v3528_v46, %v4075_v35  ;;  %v3531_v39 = vsel %vm2699_vm10, %v3529_v45, %v4076_v16 }
 0x5ac   : > { %v3533_v34 = vsel %vm3532_vm15, %v3530_v50, %v4080_v32  ;;  %v3534_v27 = vsel %vm3532_vm15, %v3531_v39, %v4081_v53 }
 0x5ad   : > { %v3569_v44 = vpack.c.bf16 %v3534_v27, %v3533_v34 }
 0x5af   : > { %3671 = vmatmul.bf16.vlgmr.msrb.gmra.mxu3 %v3569_v44  ;;  %v4094_v56 = vpop.permute.xlu1 %4093 }
 0x5b0   : > { %v4096_v0 = vunpack.i.h.bf16 %v4094_v56  ;;  %v4095_v20 = vunpack.i.l.bf16 %v4094_v56  ;;  %v4089_v47 = vpop.permute.xlu0 %4088 }
 0x5b1   : > { %v4091_v4 = vunpack.i.h.bf16 %v4089_v47  ;;  %v4090_v57 = vunpack.i.l.bf16 %v4089_v47 }
 0x5b3   : > { %v3539_v26 = vsel %vm3537_vm0, %v3536_v7, %v4091_v4  ;;  %v3538_v12 = vsel %vm3537_vm0, %v3535_v1, %v4090_v57 }
 0x5b4   : > { %v3541_v14 = vsel %vm2628_vm8, %v3539_v26, %v4096_v0  ;;  %v3540_v61 = vsel %vm2628_vm8, %v3538_v12, %v4095_v20 }
 0x5b5   : > { %v3570_v8 = vpack.c.bf16 %v3541_v14, %v3540_v61 }
 0x5b7   : > { %3974 = vmatmul.msk.bf16.vlgmr.msrb.gmra.mxu2 %vm3656_vm1, %v3570_v8 }
 0x632   : > { %v3672_v59 = vpop.f32.mrf.mxu3 }
 0x633   : > { %v3673_v63 = vadd.f32 %v4122_v25, %v3672_v59 }
 0x63a   : > { %v3686_v2 = vpop.f32.mrf.mxu2  ;;  %v3674_v52 = vpop.f32.mrf.mxu3 }
 0x63b   : > { %v3675_v18 = vadd.f32 %v4122_v25, %v3674_v52  ;;  %v3687_v28 = vadd.f32 %v3686_v2, %v3673_v63 }
 0x63d   : > { %v3691_v54 = vmax.f32 %v3687_v28, 0.0 }
 0x642   : > { %v3688_v36 = vpop.f32.mrf.mxu2 }
 0x643   : > { %v3689_v48 = vadd.f32 %v3688_v36, %v3675_v18 }
 0x645   : > { %v3692_v43 = vmax.f32 %v3689_v48, 0.0 }
 0x647   : > { %v3701_v30 = vpack.c.bf16 %v3692_v43, %v3691_v54 }
 0x649   : > { %3991 = vmatmul.msk.bf16.vlgmr.msra.gmra.mxu2 %vm2628_vm8, %v3701_v30 }
 0x6cc   : > { %v3742_v6 = vpop.f32.mrf.mxu2 }
 0x6cd   : > { %v3743_v13 = vadd.f32 %v4123_v19, %v3742_v6 }
 0x6cf   : > { %3747 = vst [vmem:[%s791_s30] sm:$0xff] %v3743_v13 }
 0x6d4   : > { %v3744_v49 = vpop.f32.mrf.mxu2 }
 0x6d5   : > { %v3745_v3 = vadd.f32 %v4123_v19, %v3744_v49 }
 0x6d7   : > { %3748 = vst [vmem:[%s791_s30 + $0x8] sm:$0xff] %v3745_v3 }
 0x6d8 PF: > { %s7099_s2 = sld [smem:[#allocation2_spill]] }
 0x6de   : > { %s36_s27 = sadd.s32 1, %s7099_s2  }
 0x6df   : > { %p33_p4 = scmp.ge.s32.totalorder %s36_s27, 4  }
 0x6e1   :  { %35 = sbr.rel (!%p33_p4) target bundleno = 13 (0xd), region = 154 }

</bundles_post_ra>
